<compile_context>
chip_gen: v7x
topology: tpu7x:2x2x1
jax: 0.10.0
libtpu: 0.0.40
codegen_flags: <defaults>
</compile_context>

<pallas_src>
import functools

import jax
import jax.numpy as jnp
from jax.experimental import pallas as pl
from jax.experimental.pallas import tpu as pltpu


LANE = 128  # TPU lane width; fused-gate dim and final output are padded to it


def _round_up(n, m):
    return ((n + m - 1) // m) * m


# ---------------------------------------------------------------------------
# Fused kernel: everything after the embedding gather, in one invocation.
# ---------------------------------------------------------------------------

def fused_memorynet_kernel(
    # activations
    obs_emb_ref,        # (T_obs, B_obs, H)
    cmds_emb_ref,       # (T_cmd, nb_cmds, H)
    ctrl_h0_ref,        # (1, H)     previous controller hidden
    states_in_ref,      # (S, H)     external memory (ignored if not external)
    # obs / cmd / controller GRUs: fused-gate weights, gate order [r, z, n],
    # transposed for x @ W and zero-padded from 3H up to GP lanes
    obs_wih_ref, obs_whh_ref, obs_bih_ref, obs_bhh_ref,   # (H,GP)(H,GP)(1,GP)(1,GP)
    cmd_wih_ref, cmd_whh_ref, cmd_bih_ref, cmd_bhh_ref,
    ctl_wih_ref, ctl_whh_ref, ctl_bih_ref, ctl_bhh_ref,
    # reader MLP: Linear(H,H) -> ReLU -> Linear(H, K*H), 2nd layer split per key
    rd_w1_ref, rd_b1_ref,            # (H, H), (1, H)
    rd_w2_ref, rd_b2_ref,            # (K, H, H), (K, 1, H)
    # DQN MLP; layer-1 weight split into per-key state part and command part
    q_w1s_ref,                       # (K, H, D2)   acts on flatten(state_input)
    q_w1c_ref, q_b1_ref,             # (H, D2), (1, D2)
    q_w2_ref, q_b2_ref,              # (D2, D3), (1, D3)
    q_w3_ref, q_b3_ref,              # (D3, D4), (1, D4)
    q_w4_ref, q_b4_ref,              # (D4, LANE), (1, LANE)  (zero past col 0)
    # outputs
    scores_ref,                      # (nb_cmds, LANE)  column 0 = score
    ctrl_h_ref,                      # (1, H)   new controller hidden
    obs_h_ref,                       # (B_obs, H)  obs encoder final hidden
    cmd_h_ref,                       # (nb_cmds, H) cmd encoder final hidden
    *, H, K, T_obs, T_cmd, external_states,
):
    f32 = jnp.float32

    def gru_step(x, h, wih, whh, bih, bhh):
        # fused gate matmuls: one (B,H) @ (H,GP) per operand, gates [r, z, n]
        gi = jnp.dot(x, wih, preferred_element_type=f32) + bih      # (B, GP)
        gh = jnp.dot(h, whh, preferred_element_type=f32) + bhh      # (B, GP)
        r = jax.nn.sigmoid(gi[:, 0:H] + gh[:, 0:H])
        z = jax.nn.sigmoid(gi[:, H:2 * H] + gh[:, H:2 * H])
        n = jnp.tanh(gi[:, 2 * H:3 * H] + r * gh[:, 2 * H:3 * H])
        return (1.0 - z) * n + z * h

    def gru_seq(x_ref, T, h0, wih_ref, whh_ref, bih_ref, bhh_ref):
        wih, whh = wih_ref[...], whh_ref[...]      # load weights once
        bih, bhh = bih_ref[...], bhh_ref[...]
        h = h0
        for t in range(T):                         # T small & static: unrolled
            h = gru_step(x_ref[t], h, wih, whh, bih, bhh)
        return h

    b_obs = obs_emb_ref.shape[1]
    nb_cmds = cmds_emb_ref.shape[1]

    # --- encoders -----------------------------------------------------------
    obs_h = gru_seq(obs_emb_ref, T_obs, jnp.zeros((b_obs, H), f32),
                    obs_wih_ref, obs_whh_ref, obs_bih_ref, obs_bhh_ref)
    cmd_h = gru_seq(cmds_emb_ref, T_cmd, jnp.zeros((nb_cmds, H), f32),
                    cmd_wih_ref, cmd_whh_ref, cmd_bih_ref, cmd_bhh_ref)

    # --- controller GRU: single step over the obs encoder hidden ------------
    ctrl_h = gru_step(obs_h, ctrl_h0_ref[...],
                      ctl_wih_ref[...], ctl_whh_ref[...],
                      ctl_bih_ref[...], ctl_bhh_ref[...])

    obs_h_ref[...] = obs_h
    cmd_h_ref[...] = cmd_h
    ctrl_h_ref[...] = ctrl_h

    # --- memory to read from -------------------------------------------------
    if external_states:
        states = states_in_ref[...]                # (S, H)
    else:
        states = obs_h                             # first call: states = obs_h
    s_norm = jnp.sqrt(jnp.sum(states * states, axis=-1, keepdims=True))  # (S,1)

    # --- reader MLP + per-key cosine attention + DQN layer-1 state part -----
    rd_h = jnp.maximum(
        jnp.dot(ctrl_h, rd_w1_ref[...], preferred_element_type=f32)
        + rd_b1_ref[...], 0.0)                                           # (1, H)

    d2 = q_b1_ref.shape[-1]
    state_contrib = jnp.zeros((1, d2), f32)
    for i in range(K):
        key_i = (jnp.dot(rd_h, rd_w2_ref[i], preferred_element_type=f32)
                 + rd_b2_ref[i])                                         # (1, H)
        k_norm = jnp.sqrt(jnp.sum(key_i * key_i, axis=-1, keepdims=True))  # (1,1)
        dots = jax.lax.dot_general(key_i, states, (((1,), (1,)), ((), ())),
                                   preferred_element_type=f32)           # (1, S)
        norms = jax.lax.dot_general(k_norm, s_norm, (((1,), (1,)), ((), ())),
                                    preferred_element_type=f32)          # (1, S)
        sim = dots * pl.reciprocal(jnp.maximum(norms, 1e-8), approx=True)
        # softmax over memory slots (dim=1 in the torch code)
        sim = sim - jnp.max(sim, axis=-1, keepdims=True)
        e = jnp.exp(sim)
        w = e * pl.reciprocal(jnp.sum(e, axis=-1, keepdims=True), approx=True)
        read_i = jnp.dot(w, states, preferred_element_type=f32)          # (1, H)
        # == flatten(state_input) @ dqn.W1[:K*H] restricted to key i
        state_contrib = state_contrib + jnp.dot(
            read_i, q_w1s_ref[i], preferred_element_type=f32)            # (1, D2)

    # --- DQN MLP (rows = commands); state part broadcast over commands ------
    h1 = jnp.maximum(
        jnp.dot(cmd_h, q_w1c_ref[...], preferred_element_type=f32)
        + state_contrib + q_b1_ref[...], 0.0)                            # (nb, D2)
    h2 = jnp.maximum(
        jnp.dot(h1, q_w2_ref[...], preferred_element_type=f32) + q_b2_ref[...],
        0.0)
    h3 = jnp.maximum(
        jnp.dot(h2, q_w3_ref[...], preferred_element_type=f32) + q_b3_ref[...],
        0.0)
    scores_ref[...] = (
        jnp.dot(h3, q_w4_ref[...], preferred_element_type=f32) + q_b4_ref[...])


# ---------------------------------------------------------------------------
# Parameter construction (deterministic, matches module shapes / init style)
# ---------------------------------------------------------------------------

def init_params(key, vocab_size, hidden_size, keys=3):
    H, K = hidden_size, keys
    GP = _round_up(3 * H, LANE)          # padded fused-gate width
    ks = iter(jax.random.split(key, 64))

    def uni(shape, scale):
        return jax.random.uniform(next(ks), shape, jnp.float32, -scale, scale)

    gscale = 1.0 / float(H) ** 0.5

    def gru_params():
        # PyTorch stores weight_ih_l0 as (3H, H), gate order [r, z, n]; here the
        # gates stay concatenated, transposed for x @ W, and zero-padded to GP
        # lanes so the fused gate matmul output is lane-dense.
        wih = uni((H, 3 * H), gscale)
        whh = uni((H, 3 * H), gscale)
        bih = uni((1, 3 * H), gscale)
        bhh = uni((1, 3 * H), gscale)
        pad = GP - 3 * H
        return (jnp.pad(wih, ((0, 0), (0, pad))),
                jnp.pad(whh, ((0, 0), (0, pad))),
                jnp.pad(bih, ((0, 0), (0, pad))),
                jnp.pad(bhh, ((0, 0), (0, pad))))

    def linear(fan_in, fan_out):
        s = 1.0 / float(fan_in) ** 0.5
        return uni((fan_in, fan_out), s), uni((1, fan_out), s)

    d1 = H + K * H
    d2, d3, d4 = int(d1 * 0.75), int(d1 * 0.5), int(d1 * 0.25)

    # reader: Linear(H, H) -> ReLU -> Linear(H, K*H); 2nd layer split per key
    rw1, rb1 = linear(H, H)
    rw2, rb2 = linear(H, K * H)
    rd_w2 = jnp.stack([rw2[:, i * H:(i + 1) * H] for i in range(K)])   # (K,H,H)
    rd_b2 = jnp.stack([rb2[:, i * H:(i + 1) * H] for i in range(K)])   # (K,1,H)

    # dqn: 4 Linear layers; layer-1 split into state-read part and cmd part
    qw1, qb1 = linear(d1, d2)
    qw2, qb2 = linear(d2, d3)
    qw3, qb3 = linear(d3, d4)
    qw4, qb4 = linear(d4, 1)
    q_w1s = qw1[:K * H].reshape(K, H, d2)          # acts on flatten(state_input)
    q_w1c = qw1[K * H:]                            # acts on cmd encoder hidden
    q_w4p = jnp.pad(qw4, ((0, 0), (0, LANE - 1)))  # lane-dense final store
    q_b4p = jnp.pad(qb4, ((0, 0), (0, LANE - 1)))

    return {
        "hidden_size": H,
        "keys": K,
        "embedding": jax.random.normal(next(ks), (vocab_size, H), jnp.float32),
        "obs_gru": gru_params(),
        "cmd_gru": gru_params(),
        "ctrl_gru": gru_params(),
        "reader": (rw1, rb1, rd_w2, rd_b2),
        "dqn": (q_w1s, q_w1c, qb1, qw2, qb2, qw3, qb3, q_w4p, q_b4p),
    }


# ---------------------------------------------------------------------------
# MemoryNet.forward (default flags; memory-read path, no memory write)
# ---------------------------------------------------------------------------

def memory_net_forward(params, obs, commands, controller_hidden, states=None):
    """
    obs:      (T_obs, 1)        int32 token ids (time-major, batch 1)
    commands: (T_cmd, nb_cmds)  int32 token ids (nb_cmds acts as the GRU batch)
    controller_hidden: (1, 1, H) float32
    states:   optional (S, H) external memory; None on the first call
    Returns: scores (1, 1, nb_cmds), new_controller_hidden, states, last_cmds
    """
    H = params["hidden_size"]
    K = params["keys"]
    E = params["embedding"]
    nb_cmds = commands.shape[1]
    T_obs, b_obs = obs.shape
    T_cmd = commands.shape[0]

    # Embedding lookups (glue: plain JAX gather).
    obs_emb = E[obs].astype(jnp.float32)         # (T_obs, 1, H)
    cmds_emb = E[commands].astype(jnp.float32)   # (T_cmd, nb_cmds, H)

    external = states is not None
    states_in = states if external else jnp.zeros((1, H), jnp.float32)

    kernel = functools.partial(
        fused_memorynet_kernel,
        H=H, K=K, T_obs=T_obs, T_cmd=T_cmd, external_states=external)

    args = (obs_emb, cmds_emb, controller_hidden.reshape(1, H), states_in,
            *params["obs_gru"], *params["cmd_gru"], *params["ctrl_gru"],
            *params["reader"], *params["dqn"])

    vmem = pl.BlockSpec(memory_space=pltpu.MemorySpace.VMEM)
    scores_pad, ctrl_h, obs_h, cmd_h = pl.pallas_call(
        kernel,
        out_shape=(
            jax.ShapeDtypeStruct((nb_cmds, LANE), jnp.float32),  # scores (padded)
            jax.ShapeDtypeStruct((1, H), jnp.float32),           # new ctrl hidden
            jax.ShapeDtypeStruct((b_obs, H), jnp.float32),       # obs encoder h
            jax.ShapeDtypeStruct((nb_cmds, H), jnp.float32),     # cmd encoder h
        ),
        in_specs=[vmem] * len(args),
        out_specs=(vmem, vmem, vmem, vmem),
    )(*args)

    scores = scores_pad[:, 0].reshape(1, 1, nb_cmds)   # matches torch squeeze(-1)
    new_controller_hidden = ctrl_h.reshape(1, 1, H)

    if states is None:
        new_states = obs_h          # self.states = obs_encoder_hidden.squeeze(0)
    else:
        new_states = states
        # TODO(synk): memory-write branch (writer MLP, cosine-sim argmax
        # overwrite, dynamic torch.cat growth, graph/neighbors bookkeeping) is
        # data-dependent-shape host-side control flow; not implemented here.

    last_cmds = cmd_h               # use_last_action=False branch
    return scores, new_controller_hidden, new_states, last_cmds


# ---------------------------------------------------------------------------
# Demo
# ---------------------------------------------------------------------------

if __name__ == "__main__":
    VOCAB = 50
    HIDDEN = 32
    KEYS = 3
    T_OBS = 8
    T_CMD = 6
    NB_CMDS = 4

    root = jax.random.PRNGKey(0)
    k_params, k_obs, k_cmd = jax.random.split(root, 3)

    params = init_params(k_params, VOCAB, HIDDEN, KEYS)

    obs = jax.random.randint(k_obs, (T_OBS, 1), 0, VOCAB, dtype=jnp.int32)
    commands = jax.random.randint(k_cmd, (T_CMD, NB_CMDS), 0, VOCAB,
                                  dtype=jnp.int32)
    controller_hidden = jnp.zeros((1, 1, HIDDEN), jnp.float32)

    # First call (states=None): memory = obs encoder hidden.
    scores, new_hidden, states, last_cmds = memory_net_forward(
        params, obs, commands, controller_hidden, states=None)
    jax.block_until_ready(scores)
    jax.block_until_ready(new_hidden)

    assert scores.shape == (1, 1, NB_CMDS), scores.shape
    assert new_hidden.shape == (1, 1, HIDDEN), new_hidden.shape
    assert states.shape == (1, HIDDEN), states.shape
    assert last_cmds.shape == (NB_CMDS, HIDDEN), last_cmds.shape
    assert bool(jnp.all(jnp.isfinite(scores)))

    # Second call reusing the returned memory (read path only).
    scores2, _, _, _ = memory_net_forward(
        params, obs, commands, new_hidden, states=states)
    jax.block_until_ready(scores2)
    assert scores2.shape == (1, 1, NB_CMDS)
    assert bool(jnp.all(jnp.isfinite(scores2)))

    print("KERNEL_OK")
</pallas_src>

<mosaic_0001>
module attributes {stable_mosaic.version = 11 : i64} {
  func.func @fused_memorynet_kernel(%arg0: memref<8x1x32xf32, #tpu.memory_space<vmem>>, %arg1: memref<6x4x32xf32, #tpu.memory_space<vmem>>, %arg2: memref<1x32xf32, #tpu.memory_space<vmem>>, %arg3: memref<1x32xf32, #tpu.memory_space<vmem>>, %arg4: memref<32x128xf32, #tpu.memory_space<vmem>>, %arg5: memref<32x128xf32, #tpu.memory_space<vmem>>, %arg6: memref<1x128xf32, #tpu.memory_space<vmem>>, %arg7: memref<1x128xf32, #tpu.memory_space<vmem>>, %arg8: memref<32x128xf32, #tpu.memory_space<vmem>>, %arg9: memref<32x128xf32, #tpu.memory_space<vmem>>, %arg10: memref<1x128xf32, #tpu.memory_space<vmem>>, %arg11: memref<1x128xf32, #tpu.memory_space<vmem>>, %arg12: memref<32x128xf32, #tpu.memory_space<vmem>>, %arg13: memref<32x128xf32, #tpu.memory_space<vmem>>, %arg14: memref<1x128xf32, #tpu.memory_space<vmem>>, %arg15: memref<1x128xf32, #tpu.memory_space<vmem>>, %arg16: memref<32x32xf32, #tpu.memory_space<vmem>>, %arg17: memref<1x32xf32, #tpu.memory_space<vmem>>, %arg18: memref<3x32x32xf32, #tpu.memory_space<vmem>>, %arg19: memref<3x1x32xf32, #tpu.memory_space<vmem>>, %arg20: memref<3x32x96xf32, #tpu.memory_space<vmem>>, %arg21: memref<32x96xf32, #tpu.memory_space<vmem>>, %arg22: memref<1x96xf32, #tpu.memory_space<vmem>>, %arg23: memref<96x64xf32, #tpu.memory_space<vmem>>, %arg24: memref<1x64xf32, #tpu.memory_space<vmem>>, %arg25: memref<64x32xf32, #tpu.memory_space<vmem>>, %arg26: memref<1x32xf32, #tpu.memory_space<vmem>>, %arg27: memref<32x128xf32, #tpu.memory_space<vmem>>, %arg28: memref<1x128xf32, #tpu.memory_space<vmem>>, %arg29: memref<4x128xf32, #tpu.memory_space<vmem>>, %arg30: memref<1x32xf32, #tpu.memory_space<vmem>>, %arg31: memref<1x32xf32, #tpu.memory_space<vmem>>, %arg32: memref<4x32xf32, #tpu.memory_space<vmem>>) attributes {dimension_semantics = [], scalar_prefetch = 0 : i64, scratch_operands = 0 : i64, tpu.core_type = #tpu.core_type<tc>} {
    %cst = arith.constant 0.000000e+00 : f32
    %0 = vector.broadcast %cst : f32 to vector<1x32xf32>
    %c0 = arith.constant 0 : index
    %c0_0 = arith.constant 0 : index
    %1 = vector.load %arg4[%c0, %c0_0] : memref<32x128xf32, #tpu.memory_space<vmem>>, vector<32x128xf32>
    %c0_1 = arith.constant 0 : index
    %c0_2 = arith.constant 0 : index
    %2 = vector.load %arg5[%c0_1, %c0_2] : memref<32x128xf32, #tpu.memory_space<vmem>>, vector<32x128xf32>
    %c0_3 = arith.constant 0 : index
    %c0_4 = arith.constant 0 : index
    %3 = vector.load %arg6[%c0_3, %c0_4] : memref<1x128xf32, #tpu.memory_space<vmem>>, vector<1x128xf32>
    %c0_5 = arith.constant 0 : index
    %c0_6 = arith.constant 0 : index
    %4 = vector.load %arg7[%c0_5, %c0_6] : memref<1x128xf32, #tpu.memory_space<vmem>>, vector<1x128xf32>
    %c0_7 = arith.constant 0 : index
    %c0_8 = arith.constant 0 : index
    %c0_9 = arith.constant 0 : index
    %5 = vector.load %arg0[%c0_7, %c0_8, %c0_9] : memref<8x1x32xf32, #tpu.memory_space<vmem>>, vector<1x1x32xf32>
    %6 = vector.shape_cast %5 : vector<1x1x32xf32> to vector<1x32xf32>
    %cst_10 = arith.constant dense<0.000000e+00> : vector<1x128xf32>
    %7 = tpu.matmul %6, %1, %cst_10 {dimension_numbers = #tpu.dot_dimension_numbers<[1], [0], [0], [1], [0, 0, 1, 1], [], []>} : vector<1x32xf32>, vector<32x128xf32>, vector<1x128xf32> -> vector<1x128xf32>
    %8 = arith.addf %7, %3 : vector<1x128xf32>
    %cst_11 = arith.constant dense<0.000000e+00> : vector<1x128xf32>
    %9 = tpu.matmul %0, %2, %cst_11 {dimension_numbers = #tpu.dot_dimension_numbers<[1], [0], [0], [1], [0, 0, 1, 1], [], []>} : vector<1x32xf32>, vector<32x128xf32>, vector<1x128xf32> -> vector<1x128xf32>
    %10 = arith.addf %9, %4 : vector<1x128xf32>
    %11 = vector.extract_strided_slice %8 {offsets = [0, 0], sizes = [1, 32], strides = [1, 1]} : vector<1x128xf32> to vector<1x32xf32>
    %12 = vector.extract_strided_slice %10 {offsets = [0, 0], sizes = [1, 32], strides = [1, 1]} : vector<1x128xf32> to vector<1x32xf32>
    %13 = arith.addf %11, %12 : vector<1x32xf32>
    %14 = arith.negf %13 : vector<1x32xf32>
    %15 = math.exp %14 : vector<1x32xf32>
    %cst_12 = arith.constant 1.000000e+00 : f32
    %16 = vector.broadcast %cst_12 : f32 to vector<1x32xf32>
    %17 = arith.addf %16, %15 : vector<1x32xf32>
    %18 = arith.divf %16, %17 : vector<1x32xf32>
    %19 = vector.extract_strided_slice %8 {offsets = [0, 32], sizes = [1, 32], strides = [1, 1]} : vector<1x128xf32> to vector<1x32xf32>
    %20 = vector.extract_strided_slice %10 {offsets = [0, 32], sizes = [1, 32], strides = [1, 1]} : vector<1x128xf32> to vector<1x32xf32>
    %21 = arith.addf %19, %20 : vector<1x32xf32>
    %22 = arith.negf %21 : vector<1x32xf32>
    %23 = math.exp %22 : vector<1x32xf32>
    %cst_13 = arith.constant 1.000000e+00 : f32
    %24 = vector.broadcast %cst_13 : f32 to vector<1x32xf32>
    %25 = arith.addf %24, %23 : vector<1x32xf32>
    %26 = arith.divf %24, %25 : vector<1x32xf32>
    %27 = vector.extract_strided_slice %8 {offsets = [0, 64], sizes = [1, 32], strides = [1, 1]} : vector<1x128xf32> to vector<1x32xf32>
    %28 = vector.extract_strided_slice %10 {offsets = [0, 64], sizes = [1, 32], strides = [1, 1]} : vector<1x128xf32> to vector<1x32xf32>
    %29 = arith.mulf %18, %28 : vector<1x32xf32>
    %30 = arith.addf %27, %29 : vector<1x32xf32>
    %31 = math.tanh %30 : vector<1x32xf32>
    %cst_14 = arith.constant 1.000000e+00 : f32
    %32 = vector.broadcast %cst_14 : f32 to vector<1x32xf32>
    %33 = arith.subf %32, %26 : vector<1x32xf32>
    %34 = arith.mulf %33, %31 : vector<1x32xf32>
    %35 = arith.mulf %26, %0 : vector<1x32xf32>
    %36 = arith.addf %34, %35 : vector<1x32xf32>
    %c1 = arith.constant 1 : index
    %c0_15 = arith.constant 0 : index
    %c0_16 = arith.constant 0 : index
    %37 = vector.load %arg0[%c1, %c0_15, %c0_16] : memref<8x1x32xf32, #tpu.memory_space<vmem>>, vector<1x1x32xf32>
    %38 = vector.shape_cast %37 : vector<1x1x32xf32> to vector<1x32xf32>
    %cst_17 = arith.constant dense<0.000000e+00> : vector<1x128xf32>
    %39 = tpu.matmul %38, %1, %cst_17 {dimension_numbers = #tpu.dot_dimension_numbers<[1], [0], [0], [1], [0, 0, 1, 1], [], []>} : vector<1x32xf32>, vector<32x128xf32>, vector<1x128xf32> -> vector<1x128xf32>
    %40 = arith.addf %39, %3 : vector<1x128xf32>
    %cst_18 = arith.constant dense<0.000000e+00> : vector<1x128xf32>
    %41 = tpu.matmul %36, %2, %cst_18 {dimension_numbers = #tpu.dot_dimension_numbers<[1], [0], [0], [1], [0, 0, 1, 1], [], []>} : vector<1x32xf32>, vector<32x128xf32>, vector<1x128xf32> -> vector<1x128xf32>
    %42 = arith.addf %41, %4 : vector<1x128xf32>
    %43 = vector.extract_strided_slice %40 {offsets = [0, 0], sizes = [1, 32], strides = [1, 1]} : vector<1x128xf32> to vector<1x32xf32>
    %44 = vector.extract_strided_slice %42 {offsets = [0, 0], sizes = [1, 32], strides = [1, 1]} : vector<1x128xf32> to vector<1x32xf32>
    %45 = arith.addf %43, %44 : vector<1x32xf32>
    %46 = arith.negf %45 : vector<1x32xf32>
    %47 = math.exp %46 : vector<1x32xf32>
    %cst_19 = arith.constant 1.000000e+00 : f32
    %48 = vector.broadcast %cst_19 : f32 to vector<1x32xf32>
    %49 = arith.addf %48, %47 : vector<1x32xf32>
    %50 = arith.divf %48, %49 : vector<1x32xf32>
    %51 = vector.extract_strided_slice %40 {offsets = [0, 32], sizes = [1, 32], strides = [1, 1]} : vector<1x128xf32> to vector<1x32xf32>
    %52 = vector.extract_strided_slice %42 {offsets = [0, 32], sizes = [1, 32], strides = [1, 1]} : vector<1x128xf32> to vector<1x32xf32>
    %53 = arith.addf %51, %52 : vector<1x32xf32>
    %54 = arith.negf %53 : vector<1x32xf32>
    %55 = math.exp %54 : vector<1x32xf32>
    %cst_20 = arith.constant 1.000000e+00 : f32
    %56 = vector.broadcast %cst_20 : f32 to vector<1x32xf32>
    %57 = arith.addf %56, %55 : vector<1x32xf32>
    %58 = arith.divf %56, %57 : vector<1x32xf32>
    %59 = vector.extract_strided_slice %40 {offsets = [0, 64], sizes = [1, 32], strides = [1, 1]} : vector<1x128xf32> to vector<1x32xf32>
    %60 = vector.extract_strided_slice %42 {offsets = [0, 64], sizes = [1, 32], strides = [1, 1]} : vector<1x128xf32> to vector<1x32xf32>
    %61 = arith.mulf %50, %60 : vector<1x32xf32>
    %62 = arith.addf %59, %61 : vector<1x32xf32>
    %63 = math.tanh %62 : vector<1x32xf32>
    %cst_21 = arith.constant 1.000000e+00 : f32
    %64 = vector.broadcast %cst_21 : f32 to vector<1x32xf32>
    %65 = arith.subf %64, %58 : vector<1x32xf32>
    %66 = arith.mulf %65, %63 : vector<1x32xf32>
    %67 = arith.mulf %58, %36 : vector<1x32xf32>
    %68 = arith.addf %66, %67 : vector<1x32xf32>
    %c2 = arith.constant 2 : index
    %c0_22 = arith.constant 0 : index
    %c0_23 = arith.constant 0 : index
    %69 = vector.load %arg0[%c2, %c0_22, %c0_23] : memref<8x1x32xf32, #tpu.memory_space<vmem>>, vector<1x1x32xf32>
    %70 = vector.shape_cast %69 : vector<1x1x32xf32> to vector<1x32xf32>
    %cst_24 = arith.constant dense<0.000000e+00> : vector<1x128xf32>
    %71 = tpu.matmul %70, %1, %cst_24 {dimension_numbers = #tpu.dot_dimension_numbers<[1], [0], [0], [1], [0, 0, 1, 1], [], []>} : vector<1x32xf32>, vector<32x128xf32>, vector<1x128xf32> -> vector<1x128xf32>
    %72 = arith.addf %71, %3 : vector<1x128xf32>
    %cst_25 = arith.constant dense<0.000000e+00> : vector<1x128xf32>
    %73 = tpu.matmul %68, %2, %cst_25 {dimension_numbers = #tpu.dot_dimension_numbers<[1], [0], [0], [1], [0, 0, 1, 1], [], []>} : vector<1x32xf32>, vector<32x128xf32>, vector<1x128xf32> -> vector<1x128xf32>
    %74 = arith.addf %73, %4 : vector<1x128xf32>
    %75 = vector.extract_strided_slice %72 {offsets = [0, 0], sizes = [1, 32], strides = [1, 1]} : vector<1x128xf32> to vector<1x32xf32>
    %76 = vector.extract_strided_slice %74 {offsets = [0, 0], sizes = [1, 32], strides = [1, 1]} : vector<1x128xf32> to vector<1x32xf32>
    %77 = arith.addf %75, %76 : vector<1x32xf32>
    %78 = arith.negf %77 : vector<1x32xf32>
    %79 = math.exp %78 : vector<1x32xf32>
    %cst_26 = arith.constant 1.000000e+00 : f32
    %80 = vector.broadcast %cst_26 : f32 to vector<1x32xf32>
    %81 = arith.addf %80, %79 : vector<1x32xf32>
    %82 = arith.divf %80, %81 : vector<1x32xf32>
    %83 = vector.extract_strided_slice %72 {offsets = [0, 32], sizes = [1, 32], strides = [1, 1]} : vector<1x128xf32> to vector<1x32xf32>
    %84 = vector.extract_strided_slice %74 {offsets = [0, 32], sizes = [1, 32], strides = [1, 1]} : vector<1x128xf32> to vector<1x32xf32>
    %85 = arith.addf %83, %84 : vector<1x32xf32>
    %86 = arith.negf %85 : vector<1x32xf32>
    %87 = math.exp %86 : vector<1x32xf32>
    %cst_27 = arith.constant 1.000000e+00 : f32
    %88 = vector.broadcast %cst_27 : f32 to vector<1x32xf32>
    %89 = arith.addf %88, %87 : vector<1x32xf32>
    %90 = arith.divf %88, %89 : vector<1x32xf32>
    %91 = vector.extract_strided_slice %72 {offsets = [0, 64], sizes = [1, 32], strides = [1, 1]} : vector<1x128xf32> to vector<1x32xf32>
    %92 = vector.extract_strided_slice %74 {offsets = [0, 64], sizes = [1, 32], strides = [1, 1]} : vector<1x128xf32> to vector<1x32xf32>
    %93 = arith.mulf %82, %92 : vector<1x32xf32>
    %94 = arith.addf %91, %93 : vector<1x32xf32>
    %95 = math.tanh %94 : vector<1x32xf32>
    %cst_28 = arith.constant 1.000000e+00 : f32
    %96 = vector.broadcast %cst_28 : f32 to vector<1x32xf32>
    %97 = arith.subf %96, %90 : vector<1x32xf32>
    %98 = arith.mulf %97, %95 : vector<1x32xf32>
    %99 = arith.mulf %90, %68 : vector<1x32xf32>
    %100 = arith.addf %98, %99 : vector<1x32xf32>
    %c3 = arith.constant 3 : index
    %c0_29 = arith.constant 0 : index
    %c0_30 = arith.constant 0 : index
    %101 = vector.load %arg0[%c3, %c0_29, %c0_30] : memref<8x1x32xf32, #tpu.memory_space<vmem>>, vector<1x1x32xf32>
    %102 = vector.shape_cast %101 : vector<1x1x32xf32> to vector<1x32xf32>
    %cst_31 = arith.constant dense<0.000000e+00> : vector<1x128xf32>
    %103 = tpu.matmul %102, %1, %cst_31 {dimension_numbers = #tpu.dot_dimension_numbers<[1], [0], [0], [1], [0, 0, 1, 1], [], []>} : vector<1x32xf32>, vector<32x128xf32>, vector<1x128xf32> -> vector<1x128xf32>
    %104 = arith.addf %103, %3 : vector<1x128xf32>
    %cst_32 = arith.constant dense<0.000000e+00> : vector<1x128xf32>
    %105 = tpu.matmul %100, %2, %cst_32 {dimension_numbers = #tpu.dot_dimension_numbers<[1], [0], [0], [1], [0, 0, 1, 1], [], []>} : vector<1x32xf32>, vector<32x128xf32>, vector<1x128xf32> -> vector<1x128xf32>
    %106 = arith.addf %105, %4 : vector<1x128xf32>
    %107 = vector.extract_strided_slice %104 {offsets = [0, 0], sizes = [1, 32], strides = [1, 1]} : vector<1x128xf32> to vector<1x32xf32>
    %108 = vector.extract_strided_slice %106 {offsets = [0, 0], sizes = [1, 32], strides = [1, 1]} : vector<1x128xf32> to vector<1x32xf32>
    %109 = arith.addf %107, %108 : vector<1x32xf32>
    %110 = arith.negf %109 : vector<1x32xf32>
    %111 = math.exp %110 : vector<1x32xf32>
    %cst_33 = arith.constant 1.000000e+00 : f32
    %112 = vector.broadcast %cst_33 : f32 to vector<1x32xf32>
    %113 = arith.addf %112, %111 : vector<1x32xf32>
    %114 = arith.divf %112, %113 : vector<1x32xf32>
    %115 = vector.extract_strided_slice %104 {offsets = [0, 32], sizes = [1, 32], strides = [1, 1]} : vector<1x128xf32> to vector<1x32xf32>
    %116 = vector.extract_strided_slice %106 {offsets = [0, 32], sizes = [1, 32], strides = [1, 1]} : vector<1x128xf32> to vector<1x32xf32>
    %117 = arith.addf %115, %116 : vector<1x32xf32>
    %118 = arith.negf %117 : vector<1x32xf32>
    %119 = math.exp %118 : vector<1x32xf32>
    %cst_34 = arith.constant 1.000000e+00 : f32
    %120 = vector.broadcast %cst_34 : f32 to vector<1x32xf32>
    %121 = arith.addf %120, %119 : vector<1x32xf32>
    %122 = arith.divf %120, %121 : vector<1x32xf32>
    %123 = vector.extract_strided_slice %104 {offsets = [0, 64], sizes = [1, 32], strides = [1, 1]} : vector<1x128xf32> to vector<1x32xf32>
    %124 = vector.extract_strided_slice %106 {offsets = [0, 64], sizes = [1, 32], strides = [1, 1]} : vector<1x128xf32> to vector<1x32xf32>
    %125 = arith.mulf %114, %124 : vector<1x32xf32>
    %126 = arith.addf %123, %125 : vector<1x32xf32>
    %127 = math.tanh %126 : vector<1x32xf32>
    %cst_35 = arith.constant 1.000000e+00 : f32
    %128 = vector.broadcast %cst_35 : f32 to vector<1x32xf32>
    %129 = arith.subf %128, %122 : vector<1x32xf32>
    %130 = arith.mulf %129, %127 : vector<1x32xf32>
    %131 = arith.mulf %122, %100 : vector<1x32xf32>
    %132 = arith.addf %130, %131 : vector<1x32xf32>
    %c4 = arith.constant 4 : index
    %c0_36 = arith.constant 0 : index
    %c0_37 = arith.constant 0 : index
    %133 = vector.load %arg0[%c4, %c0_36, %c0_37] : memref<8x1x32xf32, #tpu.memory_space<vmem>>, vector<1x1x32xf32>
    %134 = vector.shape_cast %133 : vector<1x1x32xf32> to vector<1x32xf32>
    %cst_38 = arith.constant dense<0.000000e+00> : vector<1x128xf32>
    %135 = tpu.matmul %134, %1, %cst_38 {dimension_numbers = #tpu.dot_dimension_numbers<[1], [0], [0], [1], [0, 0, 1, 1], [], []>} : vector<1x32xf32>, vector<32x128xf32>, vector<1x128xf32> -> vector<1x128xf32>
    %136 = arith.addf %135, %3 : vector<1x128xf32>
    %cst_39 = arith.constant dense<0.000000e+00> : vector<1x128xf32>
    %137 = tpu.matmul %132, %2, %cst_39 {dimension_numbers = #tpu.dot_dimension_numbers<[1], [0], [0], [1], [0, 0, 1, 1], [], []>} : vector<1x32xf32>, vector<32x128xf32>, vector<1x128xf32> -> vector<1x128xf32>
    %138 = arith.addf %137, %4 : vector<1x128xf32>
    %139 = vector.extract_strided_slice %136 {offsets = [0, 0], sizes = [1, 32], strides = [1, 1]} : vector<1x128xf32> to vector<1x32xf32>
    %140 = vector.extract_strided_slice %138 {offsets = [0, 0], sizes = [1, 32], strides = [1, 1]} : vector<1x128xf32> to vector<1x32xf32>
    %141 = arith.addf %139, %140 : vector<1x32xf32>
    %142 = arith.negf %141 : vector<1x32xf32>
    %143 = math.exp %142 : vector<1x32xf32>
    %cst_40 = arith.constant 1.000000e+00 : f32
    %144 = vector.broadcast %cst_40 : f32 to vector<1x32xf32>
    %145 = arith.addf %144, %143 : vector<1x32xf32>
    %146 = arith.divf %144, %145 : vector<1x32xf32>
    %147 = vector.extract_strided_slice %136 {offsets = [0, 32], sizes = [1, 32], strides = [1, 1]} : vector<1x128xf32> to vector<1x32xf32>
    %148 = vector.extract_strided_slice %138 {offsets = [0, 32], sizes = [1, 32], strides = [1, 1]} : vector<1x128xf32> to vector<1x32xf32>
    %149 = arith.addf %147, %148 : vector<1x32xf32>
    %150 = arith.negf %149 : vector<1x32xf32>
    %151 = math.exp %150 : vector<1x32xf32>
    %cst_41 = arith.constant 1.000000e+00 : f32
    %152 = vector.broadcast %cst_41 : f32 to vector<1x32xf32>
    %153 = arith.addf %152, %151 : vector<1x32xf32>
    %154 = arith.divf %152, %153 : vector<1x32xf32>
    %155 = vector.extract_strided_slice %136 {offsets = [0, 64], sizes = [1, 32], strides = [1, 1]} : vector<1x128xf32> to vector<1x32xf32>
    %156 = vector.extract_strided_slice %138 {offsets = [0, 64], sizes = [1, 32], strides = [1, 1]} : vector<1x128xf32> to vector<1x32xf32>
    %157 = arith.mulf %146, %156 : vector<1x32xf32>
    %158 = arith.addf %155, %157 : vector<1x32xf32>
    %159 = math.tanh %158 : vector<1x32xf32>
    %cst_42 = arith.constant 1.000000e+00 : f32
    %160 = vector.broadcast %cst_42 : f32 to vector<1x32xf32>
    %161 = arith.subf %160, %154 : vector<1x32xf32>
    %162 = arith.mulf %161, %159 : vector<1x32xf32>
    %163 = arith.mulf %154, %132 : vector<1x32xf32>
    %164 = arith.addf %162, %163 : vector<1x32xf32>
    %c5 = arith.constant 5 : index
    %c0_43 = arith.constant 0 : index
    %c0_44 = arith.constant 0 : index
    %165 = vector.load %arg0[%c5, %c0_43, %c0_44] : memref<8x1x32xf32, #tpu.memory_space<vmem>>, vector<1x1x32xf32>
    %166 = vector.shape_cast %165 : vector<1x1x32xf32> to vector<1x32xf32>
    %cst_45 = arith.constant dense<0.000000e+00> : vector<1x128xf32>
    %167 = tpu.matmul %166, %1, %cst_45 {dimension_numbers = #tpu.dot_dimension_numbers<[1], [0], [0], [1], [0, 0, 1, 1], [], []>} : vector<1x32xf32>, vector<32x128xf32>, vector<1x128xf32> -> vector<1x128xf32>
    %168 = arith.addf %167, %3 : vector<1x128xf32>
    %cst_46 = arith.constant dense<0.000000e+00> : vector<1x128xf32>
    %169 = tpu.matmul %164, %2, %cst_46 {dimension_numbers = #tpu.dot_dimension_numbers<[1], [0], [0], [1], [0, 0, 1, 1], [], []>} : vector<1x32xf32>, vector<32x128xf32>, vector<1x128xf32> -> vector<1x128xf32>
    %170 = arith.addf %169, %4 : vector<1x128xf32>
    %171 = vector.extract_strided_slice %168 {offsets = [0, 0], sizes = [1, 32], strides = [1, 1]} : vector<1x128xf32> to vector<1x32xf32>
    %172 = vector.extract_strided_slice %170 {offsets = [0, 0], sizes = [1, 32], strides = [1, 1]} : vector<1x128xf32> to vector<1x32xf32>
    %173 = arith.addf %171, %172 : vector<1x32xf32>
    %174 = arith.negf %173 : vector<1x32xf32>
    %175 = math.exp %174 : vector<1x32xf32>
    %cst_47 = arith.constant 1.000000e+00 : f32
    %176 = vector.broadcast %cst_47 : f32 to vector<1x32xf32>
    %177 = arith.addf %176, %175 : vector<1x32xf32>
    %178 = arith.divf %176, %177 : vector<1x32xf32>
    %179 = vector.extract_strided_slice %168 {offsets = [0, 32], sizes = [1, 32], strides = [1, 1]} : vector<1x128xf32> to vector<1x32xf32>
    %180 = vector.extract_strided_slice %170 {offsets = [0, 32], sizes = [1, 32], strides = [1, 1]} : vector<1x128xf32> to vector<1x32xf32>
    %181 = arith.addf %179, %180 : vector<1x32xf32>
    %182 = arith.negf %181 : vector<1x32xf32>
    %183 = math.exp %182 : vector<1x32xf32>
    %cst_48 = arith.constant 1.000000e+00 : f32
    %184 = vector.broadcast %cst_48 : f32 to vector<1x32xf32>
    %185 = arith.addf %184, %183 : vector<1x32xf32>
    %186 = arith.divf %184, %185 : vector<1x32xf32>
    %187 = vector.extract_strided_slice %168 {offsets = [0, 64], sizes = [1, 32], strides = [1, 1]} : vector<1x128xf32> to vector<1x32xf32>
    %188 = vector.extract_strided_slice %170 {offsets = [0, 64], sizes = [1, 32], strides = [1, 1]} : vector<1x128xf32> to vector<1x32xf32>
    %189 = arith.mulf %178, %188 : vector<1x32xf32>
    %190 = arith.addf %187, %189 : vector<1x32xf32>
    %191 = math.tanh %190 : vector<1x32xf32>
    %cst_49 = arith.constant 1.000000e+00 : f32
    %192 = vector.broadcast %cst_49 : f32 to vector<1x32xf32>
    %193 = arith.subf %192, %186 : vector<1x32xf32>
    %194 = arith.mulf %193, %191 : vector<1x32xf32>
    %195 = arith.mulf %186, %164 : vector<1x32xf32>
    %196 = arith.addf %194, %195 : vector<1x32xf32>
    %c6 = arith.constant 6 : index
    %c0_50 = arith.constant 0 : index
    %c0_51 = arith.constant 0 : index
    %197 = vector.load %arg0[%c6, %c0_50, %c0_51] : memref<8x1x32xf32, #tpu.memory_space<vmem>>, vector<1x1x32xf32>
    %198 = vector.shape_cast %197 : vector<1x1x32xf32> to vector<1x32xf32>
    %cst_52 = arith.constant dense<0.000000e+00> : vector<1x128xf32>
    %199 = tpu.matmul %198, %1, %cst_52 {dimension_numbers = #tpu.dot_dimension_numbers<[1], [0], [0], [1], [0, 0, 1, 1], [], []>} : vector<1x32xf32>, vector<32x128xf32>, vector<1x128xf32> -> vector<1x128xf32>
    %200 = arith.addf %199, %3 : vector<1x128xf32>
    %cst_53 = arith.constant dense<0.000000e+00> : vector<1x128xf32>
    %201 = tpu.matmul %196, %2, %cst_53 {dimension_numbers = #tpu.dot_dimension_numbers<[1], [0], [0], [1], [0, 0, 1, 1], [], []>} : vector<1x32xf32>, vector<32x128xf32>, vector<1x128xf32> -> vector<1x128xf32>
    %202 = arith.addf %201, %4 : vector<1x128xf32>
    %203 = vector.extract_strided_slice %200 {offsets = [0, 0], sizes = [1, 32], strides = [1, 1]} : vector<1x128xf32> to vector<1x32xf32>
    %204 = vector.extract_strided_slice %202 {offsets = [0, 0], sizes = [1, 32], strides = [1, 1]} : vector<1x128xf32> to vector<1x32xf32>
    %205 = arith.addf %203, %204 : vector<1x32xf32>
    %206 = arith.negf %205 : vector<1x32xf32>
    %207 = math.exp %206 : vector<1x32xf32>
    %cst_54 = arith.constant 1.000000e+00 : f32
    %208 = vector.broadcast %cst_54 : f32 to vector<1x32xf32>
    %209 = arith.addf %208, %207 : vector<1x32xf32>
    %210 = arith.divf %208, %209 : vector<1x32xf32>
    %211 = vector.extract_strided_slice %200 {offsets = [0, 32], sizes = [1, 32], strides = [1, 1]} : vector<1x128xf32> to vector<1x32xf32>
    %212 = vector.extract_strided_slice %202 {offsets = [0, 32], sizes = [1, 32], strides = [1, 1]} : vector<1x128xf32> to vector<1x32xf32>
    %213 = arith.addf %211, %212 : vector<1x32xf32>
    %214 = arith.negf %213 : vector<1x32xf32>
    %215 = math.exp %214 : vector<1x32xf32>
    %cst_55 = arith.constant 1.000000e+00 : f32
    %216 = vector.broadcast %cst_55 : f32 to vector<1x32xf32>
    %217 = arith.addf %216, %215 : vector<1x32xf32>
    %218 = arith.divf %216, %217 : vector<1x32xf32>
    %219 = vector.extract_strided_slice %200 {offsets = [0, 64], sizes = [1, 32], strides = [1, 1]} : vector<1x128xf32> to vector<1x32xf32>
    %220 = vector.extract_strided_slice %202 {offsets = [0, 64], sizes = [1, 32], strides = [1, 1]} : vector<1x128xf32> to vector<1x32xf32>
    %221 = arith.mulf %210, %220 : vector<1x32xf32>
    %222 = arith.addf %219, %221 : vector<1x32xf32>
    %223 = math.tanh %222 : vector<1x32xf32>
    %cst_56 = arith.constant 1.000000e+00 : f32
    %224 = vector.broadcast %cst_56 : f32 to vector<1x32xf32>
    %225 = arith.subf %224, %218 : vector<1x32xf32>
    %226 = arith.mulf %225, %223 : vector<1x32xf32>
    %227 = arith.mulf %218, %196 : vector<1x32xf32>
    %228 = arith.addf %226, %227 : vector<1x32xf32>
    %c7 = arith.constant 7 : index
    %c0_57 = arith.constant 0 : index
    %c0_58 = arith.constant 0 : index
    %229 = vector.load %arg0[%c7, %c0_57, %c0_58] : memref<8x1x32xf32, #tpu.memory_space<vmem>>, vector<1x1x32xf32>
    %230 = vector.shape_cast %229 : vector<1x1x32xf32> to vector<1x32xf32>
    %cst_59 = arith.constant dense<0.000000e+00> : vector<1x128xf32>
    %231 = tpu.matmul %230, %1, %cst_59 {dimension_numbers = #tpu.dot_dimension_numbers<[1], [0], [0], [1], [0, 0, 1, 1], [], []>} : vector<1x32xf32>, vector<32x128xf32>, vector<1x128xf32> -> vector<1x128xf32>
    %232 = arith.addf %231, %3 : vector<1x128xf32>
    %cst_60 = arith.constant dense<0.000000e+00> : vector<1x128xf32>
    %233 = tpu.matmul %228, %2, %cst_60 {dimension_numbers = #tpu.dot_dimension_numbers<[1], [0], [0], [1], [0, 0, 1, 1], [], []>} : vector<1x32xf32>, vector<32x128xf32>, vector<1x128xf32> -> vector<1x128xf32>
    %234 = arith.addf %233, %4 : vector<1x128xf32>
    %235 = vector.extract_strided_slice %232 {offsets = [0, 0], sizes = [1, 32], strides = [1, 1]} : vector<1x128xf32> to vector<1x32xf32>
    %236 = vector.extract_strided_slice %234 {offsets = [0, 0], sizes = [1, 32], strides = [1, 1]} : vector<1x128xf32> to vector<1x32xf32>
    %237 = arith.addf %235, %236 : vector<1x32xf32>
    %238 = arith.negf %237 : vector<1x32xf32>
    %239 = math.exp %238 : vector<1x32xf32>
    %cst_61 = arith.constant 1.000000e+00 : f32
    %240 = vector.broadcast %cst_61 : f32 to vector<1x32xf32>
    %241 = arith.addf %240, %239 : vector<1x32xf32>
    %242 = arith.divf %240, %241 : vector<1x32xf32>
    %243 = vector.extract_strided_slice %232 {offsets = [0, 32], sizes = [1, 32], strides = [1, 1]} : vector<1x128xf32> to vector<1x32xf32>
    %244 = vector.extract_strided_slice %234 {offsets = [0, 32], sizes = [1, 32], strides = [1, 1]} : vector<1x128xf32> to vector<1x32xf32>
    %245 = arith.addf %243, %244 : vector<1x32xf32>
    %246 = arith.negf %245 : vector<1x32xf32>
    %247 = math.exp %246 : vector<1x32xf32>
    %cst_62 = arith.constant 1.000000e+00 : f32
    %248 = vector.broadcast %cst_62 : f32 to vector<1x32xf32>
    %249 = arith.addf %248, %247 : vector<1x32xf32>
    %250 = arith.divf %248, %249 : vector<1x32xf32>
    %251 = vector.extract_strided_slice %232 {offsets = [0, 64], sizes = [1, 32], strides = [1, 1]} : vector<1x128xf32> to vector<1x32xf32>
    %252 = vector.extract_strided_slice %234 {offsets = [0, 64], sizes = [1, 32], strides = [1, 1]} : vector<1x128xf32> to vector<1x32xf32>
    %253 = arith.mulf %242, %252 : vector<1x32xf32>
    %254 = arith.addf %251, %253 : vector<1x32xf32>
    %255 = math.tanh %254 : vector<1x32xf32>
    %cst_63 = arith.constant 1.000000e+00 : f32
    %256 = vector.broadcast %cst_63 : f32 to vector<1x32xf32>
    %257 = arith.subf %256, %250 : vector<1x32xf32>
    %258 = arith.mulf %257, %255 : vector<1x32xf32>
    %259 = arith.mulf %250, %228 : vector<1x32xf32>
    %260 = arith.addf %258, %259 : vector<1x32xf32>
    %cst_64 = arith.constant 0.000000e+00 : f32
    %261 = vector.broadcast %cst_64 : f32 to vector<4x32xf32>
    %c0_65 = arith.constant 0 : index
    %c0_66 = arith.constant 0 : index
    %262 = vector.load %arg8[%c0_65, %c0_66] : memref<32x128xf32, #tpu.memory_space<vmem>>, vector<32x128xf32>
    %c0_67 = arith.constant 0 : index
    %c0_68 = arith.constant 0 : index
    %263 = vector.load %arg9[%c0_67, %c0_68] : memref<32x128xf32, #tpu.memory_space<vmem>>, vector<32x128xf32>
    %c0_69 = arith.constant 0 : index
    %c0_70 = arith.constant 0 : index
    %264 = vector.load %arg10[%c0_69, %c0_70] : memref<1x128xf32, #tpu.memory_space<vmem>>, vector<1x128xf32>
    %c0_71 = arith.constant 0 : index
    %c0_72 = arith.constant 0 : index
    %265 = vector.load %arg11[%c0_71, %c0_72] : memref<1x128xf32, #tpu.memory_space<vmem>>, vector<1x128xf32>
    %c0_73 = arith.constant 0 : index
    %c0_74 = arith.constant 0 : index
    %c0_75 = arith.constant 0 : index
    %266 = vector.load %arg1[%c0_73, %c0_74, %c0_75] : memref<6x4x32xf32, #tpu.memory_space<vmem>>, vector<1x4x32xf32>
    %267 = vector.shape_cast %266 : vector<1x4x32xf32> to vector<4x32xf32>
    %cst_76 = arith.constant dense<0.000000e+00> : vector<4x128xf32>
    %268 = tpu.matmul %267, %262, %cst_76 {dimension_numbers = #tpu.dot_dimension_numbers<[1], [0], [0], [1], [0, 0, 1, 1], [], []>} : vector<4x32xf32>, vector<32x128xf32>, vector<4x128xf32> -> vector<4x128xf32>
    %269 = vector.broadcast %264 : vector<1x128xf32> to vector<4x128xf32>
    %270 = arith.addf %268, %269 : vector<4x128xf32>
    %cst_77 = arith.constant dense<0.000000e+00> : vector<4x128xf32>
    %271 = tpu.matmul %261, %263, %cst_77 {dimension_numbers = #tpu.dot_dimension_numbers<[1], [0], [0], [1], [0, 0, 1, 1], [], []>} : vector<4x32xf32>, vector<32x128xf32>, vector<4x128xf32> -> vector<4x128xf32>
    %272 = vector.broadcast %265 : vector<1x128xf32> to vector<4x128xf32>
    %273 = arith.addf %271, %272 : vector<4x128xf32>
    %274 = vector.extract_strided_slice %270 {offsets = [0, 0], sizes = [4, 32], strides = [1, 1]} : vector<4x128xf32> to vector<4x32xf32>
    %275 = vector.extract_strided_slice %273 {offsets = [0, 0], sizes = [4, 32], strides = [1, 1]} : vector<4x128xf32> to vector<4x32xf32>
    %276 = arith.addf %274, %275 : vector<4x32xf32>
    %277 = arith.negf %276 : vector<4x32xf32>
    %278 = math.exp %277 : vector<4x32xf32>
    %cst_78 = arith.constant 1.000000e+00 : f32
    %279 = vector.broadcast %cst_78 : f32 to vector<4x32xf32>
    %280 = arith.addf %279, %278 : vector<4x32xf32>
    %281 = arith.divf %279, %280 : vector<4x32xf32>
    %282 = vector.extract_strided_slice %270 {offsets = [0, 32], sizes = [4, 32], strides = [1, 1]} : vector<4x128xf32> to vector<4x32xf32>
    %283 = vector.extract_strided_slice %273 {offsets = [0, 32], sizes = [4, 32], strides = [1, 1]} : vector<4x128xf32> to vector<4x32xf32>
    %284 = arith.addf %282, %283 : vector<4x32xf32>
    %285 = arith.negf %284 : vector<4x32xf32>
    %286 = math.exp %285 : vector<4x32xf32>
    %cst_79 = arith.constant 1.000000e+00 : f32
    %287 = vector.broadcast %cst_79 : f32 to vector<4x32xf32>
    %288 = arith.addf %287, %286 : vector<4x32xf32>
    %289 = arith.divf %287, %288 : vector<4x32xf32>
    %290 = vector.extract_strided_slice %270 {offsets = [0, 64], sizes = [4, 32], strides = [1, 1]} : vector<4x128xf32> to vector<4x32xf32>
    %291 = vector.extract_strided_slice %273 {offsets = [0, 64], sizes = [4, 32], strides = [1, 1]} : vector<4x128xf32> to vector<4x32xf32>
    %292 = arith.mulf %281, %291 : vector<4x32xf32>
    %293 = arith.addf %290, %292 : vector<4x32xf32>
    %294 = math.tanh %293 : vector<4x32xf32>
    %cst_80 = arith.constant 1.000000e+00 : f32
    %295 = vector.broadcast %cst_80 : f32 to vector<4x32xf32>
    %296 = arith.subf %295, %289 : vector<4x32xf32>
    %297 = arith.mulf %296, %294 : vector<4x32xf32>
    %298 = arith.mulf %289, %261 : vector<4x32xf32>
    %299 = arith.addf %297, %298 : vector<4x32xf32>
    %c1_81 = arith.constant 1 : index
    %c0_82 = arith.constant 0 : index
    %c0_83 = arith.constant 0 : index
    %300 = vector.load %arg1[%c1_81, %c0_82, %c0_83] : memref<6x4x32xf32, #tpu.memory_space<vmem>>, vector<1x4x32xf32>
    %301 = vector.shape_cast %300 : vector<1x4x32xf32> to vector<4x32xf32>
    %cst_84 = arith.constant dense<0.000000e+00> : vector<4x128xf32>
    %302 = tpu.matmul %301, %262, %cst_84 {dimension_numbers = #tpu.dot_dimension_numbers<[1], [0], [0], [1], [0, 0, 1, 1], [], []>} : vector<4x32xf32>, vector<32x128xf32>, vector<4x128xf32> -> vector<4x128xf32>
    %303 = vector.broadcast %264 : vector<1x128xf32> to vector<4x128xf32>
    %304 = arith.addf %302, %303 : vector<4x128xf32>
    %cst_85 = arith.constant dense<0.000000e+00> : vector<4x128xf32>
    %305 = tpu.matmul %299, %263, %cst_85 {dimension_numbers = #tpu.dot_dimension_numbers<[1], [0], [0], [1], [0, 0, 1, 1], [], []>} : vector<4x32xf32>, vector<32x128xf32>, vector<4x128xf32> -> vector<4x128xf32>
    %306 = vector.broadcast %265 : vector<1x128xf32> to vector<4x128xf32>
    %307 = arith.addf %305, %306 : vector<4x128xf32>
    %308 = vector.extract_strided_slice %304 {offsets = [0, 0], sizes = [4, 32], strides = [1, 1]} : vector<4x128xf32> to vector<4x32xf32>
    %309 = vector.extract_strided_slice %307 {offsets = [0, 0], sizes = [4, 32], strides = [1, 1]} : vector<4x128xf32> to vector<4x32xf32>
    %310 = arith.addf %308, %309 : vector<4x32xf32>
    %311 = arith.negf %310 : vector<4x32xf32>
    %312 = math.exp %311 : vector<4x32xf32>
    %cst_86 = arith.constant 1.000000e+00 : f32
    %313 = vector.broadcast %cst_86 : f32 to vector<4x32xf32>
    %314 = arith.addf %313, %312 : vector<4x32xf32>
    %315 = arith.divf %313, %314 : vector<4x32xf32>
    %316 = vector.extract_strided_slice %304 {offsets = [0, 32], sizes = [4, 32], strides = [1, 1]} : vector<4x128xf32> to vector<4x32xf32>
    %317 = vector.extract_strided_slice %307 {offsets = [0, 32], sizes = [4, 32], strides = [1, 1]} : vector<4x128xf32> to vector<4x32xf32>
    %318 = arith.addf %316, %317 : vector<4x32xf32>
    %319 = arith.negf %318 : vector<4x32xf32>
    %320 = math.exp %319 : vector<4x32xf32>
    %cst_87 = arith.constant 1.000000e+00 : f32
    %321 = vector.broadcast %cst_87 : f32 to vector<4x32xf32>
    %322 = arith.addf %321, %320 : vector<4x32xf32>
    %323 = arith.divf %321, %322 : vector<4x32xf32>
    %324 = vector.extract_strided_slice %304 {offsets = [0, 64], sizes = [4, 32], strides = [1, 1]} : vector<4x128xf32> to vector<4x32xf32>
    %325 = vector.extract_strided_slice %307 {offsets = [0, 64], sizes = [4, 32], strides = [1, 1]} : vector<4x128xf32> to vector<4x32xf32>
    %326 = arith.mulf %315, %325 : vector<4x32xf32>
    %327 = arith.addf %324, %326 : vector<4x32xf32>
    %328 = math.tanh %327 : vector<4x32xf32>
    %cst_88 = arith.constant 1.000000e+00 : f32
    %329 = vector.broadcast %cst_88 : f32 to vector<4x32xf32>
    %330 = arith.subf %329, %323 : vector<4x32xf32>
    %331 = arith.mulf %330, %328 : vector<4x32xf32>
    %332 = arith.mulf %323, %299 : vector<4x32xf32>
    %333 = arith.addf %331, %332 : vector<4x32xf32>
    %c2_89 = arith.constant 2 : index
    %c0_90 = arith.constant 0 : index
    %c0_91 = arith.constant 0 : index
    %334 = vector.load %arg1[%c2_89, %c0_90, %c0_91] : memref<6x4x32xf32, #tpu.memory_space<vmem>>, vector<1x4x32xf32>
    %335 = vector.shape_cast %334 : vector<1x4x32xf32> to vector<4x32xf32>
    %cst_92 = arith.constant dense<0.000000e+00> : vector<4x128xf32>
    %336 = tpu.matmul %335, %262, %cst_92 {dimension_numbers = #tpu.dot_dimension_numbers<[1], [0], [0], [1], [0, 0, 1, 1], [], []>} : vector<4x32xf32>, vector<32x128xf32>, vector<4x128xf32> -> vector<4x128xf32>
    %337 = vector.broadcast %264 : vector<1x128xf32> to vector<4x128xf32>
    %338 = arith.addf %336, %337 : vector<4x128xf32>
    %cst_93 = arith.constant dense<0.000000e+00> : vector<4x128xf32>
    %339 = tpu.matmul %333, %263, %cst_93 {dimension_numbers = #tpu.dot_dimension_numbers<[1], [0], [0], [1], [0, 0, 1, 1], [], []>} : vector<4x32xf32>, vector<32x128xf32>, vector<4x128xf32> -> vector<4x128xf32>
    %340 = vector.broadcast %265 : vector<1x128xf32> to vector<4x128xf32>
    %341 = arith.addf %339, %340 : vector<4x128xf32>
    %342 = vector.extract_strided_slice %338 {offsets = [0, 0], sizes = [4, 32], strides = [1, 1]} : vector<4x128xf32> to vector<4x32xf32>
    %343 = vector.extract_strided_slice %341 {offsets = [0, 0], sizes = [4, 32], strides = [1, 1]} : vector<4x128xf32> to vector<4x32xf32>
    %344 = arith.addf %342, %343 : vector<4x32xf32>
    %345 = arith.negf %344 : vector<4x32xf32>
    %346 = math.exp %345 : vector<4x32xf32>
    %cst_94 = arith.constant 1.000000e+00 : f32
    %347 = vector.broadcast %cst_94 : f32 to vector<4x32xf32>
    %348 = arith.addf %347, %346 : vector<4x32xf32>
    %349 = arith.divf %347, %348 : vector<4x32xf32>
    %350 = vector.extract_strided_slice %338 {offsets = [0, 32], sizes = [4, 32], strides = [1, 1]} : vector<4x128xf32> to vector<4x32xf32>
    %351 = vector.extract_strided_slice %341 {offsets = [0, 32], sizes = [4, 32], strides = [1, 1]} : vector<4x128xf32> to vector<4x32xf32>
    %352 = arith.addf %350, %351 : vector<4x32xf32>
    %353 = arith.negf %352 : vector<4x32xf32>
    %354 = math.exp %353 : vector<4x32xf32>
    %cst_95 = arith.constant 1.000000e+00 : f32
    %355 = vector.broadcast %cst_95 : f32 to vector<4x32xf32>
    %356 = arith.addf %355, %354 : vector<4x32xf32>
    %357 = arith.divf %355, %356 : vector<4x32xf32>
    %358 = vector.extract_strided_slice %338 {offsets = [0, 64], sizes = [4, 32], strides = [1, 1]} : vector<4x128xf32> to vector<4x32xf32>
    %359 = vector.extract_strided_slice %341 {offsets = [0, 64], sizes = [4, 32], strides = [1, 1]} : vector<4x128xf32> to vector<4x32xf32>
    %360 = arith.mulf %349, %359 : vector<4x32xf32>
    %361 = arith.addf %358, %360 : vector<4x32xf32>
    %362 = math.tanh %361 : vector<4x32xf32>
    %cst_96 = arith.constant 1.000000e+00 : f32
    %363 = vector.broadcast %cst_96 : f32 to vector<4x32xf32>
    %364 = arith.subf %363, %357 : vector<4x32xf32>
    %365 = arith.mulf %364, %362 : vector<4x32xf32>
    %366 = arith.mulf %357, %333 : vector<4x32xf32>
    %367 = arith.addf %365, %366 : vector<4x32xf32>
    %c3_97 = arith.constant 3 : index
    %c0_98 = arith.constant 0 : index
    %c0_99 = arith.constant 0 : index
    %368 = vector.load %arg1[%c3_97, %c0_98, %c0_99] : memref<6x4x32xf32, #tpu.memory_space<vmem>>, vector<1x4x32xf32>
    %369 = vector.shape_cast %368 : vector<1x4x32xf32> to vector<4x32xf32>
    %cst_100 = arith.constant dense<0.000000e+00> : vector<4x128xf32>
    %370 = tpu.matmul %369, %262, %cst_100 {dimension_numbers = #tpu.dot_dimension_numbers<[1], [0], [0], [1], [0, 0, 1, 1], [], []>} : vector<4x32xf32>, vector<32x128xf32>, vector<4x128xf32> -> vector<4x128xf32>
    %371 = vector.broadcast %264 : vector<1x128xf32> to vector<4x128xf32>
    %372 = arith.addf %370, %371 : vector<4x128xf32>
    %cst_101 = arith.constant dense<0.000000e+00> : vector<4x128xf32>
    %373 = tpu.matmul %367, %263, %cst_101 {dimension_numbers = #tpu.dot_dimension_numbers<[1], [0], [0], [1], [0, 0, 1, 1], [], []>} : vector<4x32xf32>, vector<32x128xf32>, vector<4x128xf32> -> vector<4x128xf32>
    %374 = vector.broadcast %265 : vector<1x128xf32> to vector<4x128xf32>
    %375 = arith.addf %373, %374 : vector<4x128xf32>
    %376 = vector.extract_strided_slice %372 {offsets = [0, 0], sizes = [4, 32], strides = [1, 1]} : vector<4x128xf32> to vector<4x32xf32>
    %377 = vector.extract_strided_slice %375 {offsets = [0, 0], sizes = [4, 32], strides = [1, 1]} : vector<4x128xf32> to vector<4x32xf32>
    %378 = arith.addf %376, %377 : vector<4x32xf32>
    %379 = arith.negf %378 : vector<4x32xf32>
    %380 = math.exp %379 : vector<4x32xf32>
    %cst_102 = arith.constant 1.000000e+00 : f32
    %381 = vector.broadcast %cst_102 : f32 to vector<4x32xf32>
    %382 = arith.addf %381, %380 : vector<4x32xf32>
    %383 = arith.divf %381, %382 : vector<4x32xf32>
    %384 = vector.extract_strided_slice %372 {offsets = [0, 32], sizes = [4, 32], strides = [1, 1]} : vector<4x128xf32> to vector<4x32xf32>
    %385 = vector.extract_strided_slice %375 {offsets = [0, 32], sizes = [4, 32], strides = [1, 1]} : vector<4x128xf32> to vector<4x32xf32>
    %386 = arith.addf %384, %385 : vector<4x32xf32>
    %387 = arith.negf %386 : vector<4x32xf32>
    %388 = math.exp %387 : vector<4x32xf32>
    %cst_103 = arith.constant 1.000000e+00 : f32
    %389 = vector.broadcast %cst_103 : f32 to vector<4x32xf32>
    %390 = arith.addf %389, %388 : vector<4x32xf32>
    %391 = arith.divf %389, %390 : vector<4x32xf32>
    %392 = vector.extract_strided_slice %372 {offsets = [0, 64], sizes = [4, 32], strides = [1, 1]} : vector<4x128xf32> to vector<4x32xf32>
    %393 = vector.extract_strided_slice %375 {offsets = [0, 64], sizes = [4, 32], strides = [1, 1]} : vector<4x128xf32> to vector<4x32xf32>
    %394 = arith.mulf %383, %393 : vector<4x32xf32>
    %395 = arith.addf %392, %394 : vector<4x32xf32>
    %396 = math.tanh %395 : vector<4x32xf32>
    %cst_104 = arith.constant 1.000000e+00 : f32
    %397 = vector.broadcast %cst_104 : f32 to vector<4x32xf32>
    %398 = arith.subf %397, %391 : vector<4x32xf32>
    %399 = arith.mulf %398, %396 : vector<4x32xf32>
    %400 = arith.mulf %391, %367 : vector<4x32xf32>
    %401 = arith.addf %399, %400 : vector<4x32xf32>
    %c4_105 = arith.constant 4 : index
    %c0_106 = arith.constant 0 : index
    %c0_107 = arith.constant 0 : index
    %402 = vector.load %arg1[%c4_105, %c0_106, %c0_107] : memref<6x4x32xf32, #tpu.memory_space<vmem>>, vector<1x4x32xf32>
    %403 = vector.shape_cast %402 : vector<1x4x32xf32> to vector<4x32xf32>
    %cst_108 = arith.constant dense<0.000000e+00> : vector<4x128xf32>
    %404 = tpu.matmul %403, %262, %cst_108 {dimension_numbers = #tpu.dot_dimension_numbers<[1], [0], [0], [1], [0, 0, 1, 1], [], []>} : vector<4x32xf32>, vector<32x128xf32>, vector<4x128xf32> -> vector<4x128xf32>
    %405 = vector.broadcast %264 : vector<1x128xf32> to vector<4x128xf32>
    %406 = arith.addf %404, %405 : vector<4x128xf32>
    %cst_109 = arith.constant dense<0.000000e+00> : vector<4x128xf32>
    %407 = tpu.matmul %401, %263, %cst_109 {dimension_numbers = #tpu.dot_dimension_numbers<[1], [0], [0], [1], [0, 0, 1, 1], [], []>} : vector<4x32xf32>, vector<32x128xf32>, vector<4x128xf32> -> vector<4x128xf32>
    %408 = vector.broadcast %265 : vector<1x128xf32> to vector<4x128xf32>
    %409 = arith.addf %407, %408 : vector<4x128xf32>
    %410 = vector.extract_strided_slice %406 {offsets = [0, 0], sizes = [4, 32], strides = [1, 1]} : vector<4x128xf32> to vector<4x32xf32>
    %411 = vector.extract_strided_slice %409 {offsets = [0, 0], sizes = [4, 32], strides = [1, 1]} : vector<4x128xf32> to vector<4x32xf32>
    %412 = arith.addf %410, %411 : vector<4x32xf32>
    %413 = arith.negf %412 : vector<4x32xf32>
    %414 = math.exp %413 : vector<4x32xf32>
    %cst_110 = arith.constant 1.000000e+00 : f32
    %415 = vector.broadcast %cst_110 : f32 to vector<4x32xf32>
    %416 = arith.addf %415, %414 : vector<4x32xf32>
    %417 = arith.divf %415, %416 : vector<4x32xf32>
    %418 = vector.extract_strided_slice %406 {offsets = [0, 32], sizes = [4, 32], strides = [1, 1]} : vector<4x128xf32> to vector<4x32xf32>
    %419 = vector.extract_strided_slice %409 {offsets = [0, 32], sizes = [4, 32], strides = [1, 1]} : vector<4x128xf32> to vector<4x32xf32>
    %420 = arith.addf %418, %419 : vector<4x32xf32>
    %421 = arith.negf %420 : vector<4x32xf32>
    %422 = math.exp %421 : vector<4x32xf32>
    %cst_111 = arith.constant 1.000000e+00 : f32
    %423 = vector.broadcast %cst_111 : f32 to vector<4x32xf32>
    %424 = arith.addf %423, %422 : vector<4x32xf32>
    %425 = arith.divf %423, %424 : vector<4x32xf32>
    %426 = vector.extract_strided_slice %406 {offsets = [0, 64], sizes = [4, 32], strides = [1, 1]} : vector<4x128xf32> to vector<4x32xf32>
    %427 = vector.extract_strided_slice %409 {offsets = [0, 64], sizes = [4, 32], strides = [1, 1]} : vector<4x128xf32> to vector<4x32xf32>
    %428 = arith.mulf %417, %427 : vector<4x32xf32>
    %429 = arith.addf %426, %428 : vector<4x32xf32>
    %430 = math.tanh %429 : vector<4x32xf32>
    %cst_112 = arith.constant 1.000000e+00 : f32
    %431 = vector.broadcast %cst_112 : f32 to vector<4x32xf32>
    %432 = arith.subf %431, %425 : vector<4x32xf32>
    %433 = arith.mulf %432, %430 : vector<4x32xf32>
    %434 = arith.mulf %425, %401 : vector<4x32xf32>
    %435 = arith.addf %433, %434 : vector<4x32xf32>
    %c5_113 = arith.constant 5 : index
    %c0_114 = arith.constant 0 : index
    %c0_115 = arith.constant 0 : index
    %436 = vector.load %arg1[%c5_113, %c0_114, %c0_115] : memref<6x4x32xf32, #tpu.memory_space<vmem>>, vector<1x4x32xf32>
    %437 = vector.shape_cast %436 : vector<1x4x32xf32> to vector<4x32xf32>
    %cst_116 = arith.constant dense<0.000000e+00> : vector<4x128xf32>
    %438 = tpu.matmul %437, %262, %cst_116 {dimension_numbers = #tpu.dot_dimension_numbers<[1], [0], [0], [1], [0, 0, 1, 1], [], []>} : vector<4x32xf32>, vector<32x128xf32>, vector<4x128xf32> -> vector<4x128xf32>
    %439 = vector.broadcast %264 : vector<1x128xf32> to vector<4x128xf32>
    %440 = arith.addf %438, %439 : vector<4x128xf32>
    %cst_117 = arith.constant dense<0.000000e+00> : vector<4x128xf32>
    %441 = tpu.matmul %435, %263, %cst_117 {dimension_numbers = #tpu.dot_dimension_numbers<[1], [0], [0], [1], [0, 0, 1, 1], [], []>} : vector<4x32xf32>, vector<32x128xf32>, vector<4x128xf32> -> vector<4x128xf32>
    %442 = vector.broadcast %265 : vector<1x128xf32> to vector<4x128xf32>
    %443 = arith.addf %441, %442 : vector<4x128xf32>
    %444 = vector.extract_strided_slice %440 {offsets = [0, 0], sizes = [4, 32], strides = [1, 1]} : vector<4x128xf32> to vector<4x32xf32>
    %445 = vector.extract_strided_slice %443 {offsets = [0, 0], sizes = [4, 32], strides = [1, 1]} : vector<4x128xf32> to vector<4x32xf32>
    %446 = arith.addf %444, %445 : vector<4x32xf32>
    %447 = arith.negf %446 : vector<4x32xf32>
    %448 = math.exp %447 : vector<4x32xf32>
    %cst_118 = arith.constant 1.000000e+00 : f32
    %449 = vector.broadcast %cst_118 : f32 to vector<4x32xf32>
    %450 = arith.addf %449, %448 : vector<4x32xf32>
    %451 = arith.divf %449, %450 : vector<4x32xf32>
    %452 = vector.extract_strided_slice %440 {offsets = [0, 32], sizes = [4, 32], strides = [1, 1]} : vector<4x128xf32> to vector<4x32xf32>
    %453 = vector.extract_strided_slice %443 {offsets = [0, 32], sizes = [4, 32], strides = [1, 1]} : vector<4x128xf32> to vector<4x32xf32>
    %454 = arith.addf %452, %453 : vector<4x32xf32>
    %455 = arith.negf %454 : vector<4x32xf32>
    %456 = math.exp %455 : vector<4x32xf32>
    %cst_119 = arith.constant 1.000000e+00 : f32
    %457 = vector.broadcast %cst_119 : f32 to vector<4x32xf32>
    %458 = arith.addf %457, %456 : vector<4x32xf32>
    %459 = arith.divf %457, %458 : vector<4x32xf32>
    %460 = vector.extract_strided_slice %440 {offsets = [0, 64], sizes = [4, 32], strides = [1, 1]} : vector<4x128xf32> to vector<4x32xf32>
    %461 = vector.extract_strided_slice %443 {offsets = [0, 64], sizes = [4, 32], strides = [1, 1]} : vector<4x128xf32> to vector<4x32xf32>
    %462 = arith.mulf %451, %461 : vector<4x32xf32>
    %463 = arith.addf %460, %462 : vector<4x32xf32>
    %464 = math.tanh %463 : vector<4x32xf32>
    %cst_120 = arith.constant 1.000000e+00 : f32
    %465 = vector.broadcast %cst_120 : f32 to vector<4x32xf32>
    %466 = arith.subf %465, %459 : vector<4x32xf32>
    %467 = arith.mulf %466, %464 : vector<4x32xf32>
    %468 = arith.mulf %459, %435 : vector<4x32xf32>
    %469 = arith.addf %467, %468 : vector<4x32xf32>
    %c0_121 = arith.constant 0 : index
    %c0_122 = arith.constant 0 : index
    %470 = vector.load %arg2[%c0_121, %c0_122] : memref<1x32xf32, #tpu.memory_space<vmem>>, vector<1x32xf32>
    %c0_123 = arith.constant 0 : index
    %c0_124 = arith.constant 0 : index
    %471 = vector.load %arg12[%c0_123, %c0_124] : memref<32x128xf32, #tpu.memory_space<vmem>>, vector<32x128xf32>
    %c0_125 = arith.constant 0 : index
    %c0_126 = arith.constant 0 : index
    %472 = vector.load %arg13[%c0_125, %c0_126] : memref<32x128xf32, #tpu.memory_space<vmem>>, vector<32x128xf32>
    %c0_127 = arith.constant 0 : index
    %c0_128 = arith.constant 0 : index
    %473 = vector.load %arg14[%c0_127, %c0_128] : memref<1x128xf32, #tpu.memory_space<vmem>>, vector<1x128xf32>
    %c0_129 = arith.constant 0 : index
    %c0_130 = arith.constant 0 : index
    %474 = vector.load %arg15[%c0_129, %c0_130] : memref<1x128xf32, #tpu.memory_space<vmem>>, vector<1x128xf32>
    %cst_131 = arith.constant dense<0.000000e+00> : vector<1x128xf32>
    %475 = tpu.matmul %260, %471, %cst_131 {dimension_numbers = #tpu.dot_dimension_numbers<[1], [0], [0], [1], [0, 0, 1, 1], [], []>} : vector<1x32xf32>, vector<32x128xf32>, vector<1x128xf32> -> vector<1x128xf32>
    %476 = arith.addf %475, %473 : vector<1x128xf32>
    %cst_132 = arith.constant dense<0.000000e+00> : vector<1x128xf32>
    %477 = tpu.matmul %470, %472, %cst_132 {dimension_numbers = #tpu.dot_dimension_numbers<[1], [0], [0], [1], [0, 0, 1, 1], [], []>} : vector<1x32xf32>, vector<32x128xf32>, vector<1x128xf32> -> vector<1x128xf32>
    %478 = arith.addf %477, %474 : vector<1x128xf32>
    %479 = vector.extract_strided_slice %476 {offsets = [0, 0], sizes = [1, 32], strides = [1, 1]} : vector<1x128xf32> to vector<1x32xf32>
    %480 = vector.extract_strided_slice %478 {offsets = [0, 0], sizes = [1, 32], strides = [1, 1]} : vector<1x128xf32> to vector<1x32xf32>
    %481 = arith.addf %479, %480 : vector<1x32xf32>
    %482 = arith.negf %481 : vector<1x32xf32>
    %483 = math.exp %482 : vector<1x32xf32>
    %cst_133 = arith.constant 1.000000e+00 : f32
    %484 = vector.broadcast %cst_133 : f32 to vector<1x32xf32>
    %485 = arith.addf %484, %483 : vector<1x32xf32>
    %486 = arith.divf %484, %485 : vector<1x32xf32>
    %487 = vector.extract_strided_slice %476 {offsets = [0, 32], sizes = [1, 32], strides = [1, 1]} : vector<1x128xf32> to vector<1x32xf32>
    %488 = vector.extract_strided_slice %478 {offsets = [0, 32], sizes = [1, 32], strides = [1, 1]} : vector<1x128xf32> to vector<1x32xf32>
    %489 = arith.addf %487, %488 : vector<1x32xf32>
    %490 = arith.negf %489 : vector<1x32xf32>
    %491 = math.exp %490 : vector<1x32xf32>
    %cst_134 = arith.constant 1.000000e+00 : f32
    %492 = vector.broadcast %cst_134 : f32 to vector<1x32xf32>
    %493 = arith.addf %492, %491 : vector<1x32xf32>
    %494 = arith.divf %492, %493 : vector<1x32xf32>
    %495 = vector.extract_strided_slice %476 {offsets = [0, 64], sizes = [1, 32], strides = [1, 1]} : vector<1x128xf32> to vector<1x32xf32>
    %496 = vector.extract_strided_slice %478 {offsets = [0, 64], sizes = [1, 32], strides = [1, 1]} : vector<1x128xf32> to vector<1x32xf32>
    %497 = arith.mulf %486, %496 : vector<1x32xf32>
    %498 = arith.addf %495, %497 : vector<1x32xf32>
    %499 = math.tanh %498 : vector<1x32xf32>
    %cst_135 = arith.constant 1.000000e+00 : f32
    %500 = vector.broadcast %cst_135 : f32 to vector<1x32xf32>
    %501 = arith.subf %500, %494 : vector<1x32xf32>
    %502 = arith.mulf %501, %499 : vector<1x32xf32>
    %503 = arith.mulf %494, %470 : vector<1x32xf32>
    %504 = arith.addf %502, %503 : vector<1x32xf32>
    %c0_136 = arith.constant 0 : index
    %c0_137 = arith.constant 0 : index
    %505 = vector.load %arg31[%c0_136, %c0_137] : memref<1x32xf32, #tpu.memory_space<vmem>>, vector<1x32xf32>
    tpu.vector_store %arg31[%c0_136, %c0_137], %260 {strides = array<i32>} : memref<1x32xf32, #tpu.memory_space<vmem>>, vector<1x32xf32>,
    %c0_138 = arith.constant 0 : index
    %c0_139 = arith.constant 0 : index
    %506 = vector.load %arg32[%c0_138, %c0_139] : memref<4x32xf32, #tpu.memory_space<vmem>>, vector<4x32xf32>
    tpu.vector_store %arg32[%c0_138, %c0_139], %469 {strides = array<i32>} : memref<4x32xf32, #tpu.memory_space<vmem>>, vector<4x32xf32>,
    %c0_140 = arith.constant 0 : index
    %c0_141 = arith.constant 0 : index
    %507 = vector.load %arg30[%c0_140, %c0_141] : memref<1x32xf32, #tpu.memory_space<vmem>>, vector<1x32xf32>
    tpu.vector_store %arg30[%c0_140, %c0_141], %504 {strides = array<i32>} : memref<1x32xf32, #tpu.memory_space<vmem>>, vector<1x32xf32>,
    %508 = arith.mulf %260, %260 : vector<1x32xf32>
    %cst_142 = arith.constant dense<0.000000e+00> : vector<1xf32>
    %509 = vector.multi_reduction <add>, %508, %cst_142 [1] : vector<1x32xf32> to vector<1xf32>
    %510 = vector.shape_cast %509 : vector<1xf32> to vector<1x1xf32>
    %511 = math.sqrt %510 : vector<1x1xf32>
    %c0_143 = arith.constant 0 : index
    %c0_144 = arith.constant 0 : index
    %512 = vector.load %arg16[%c0_143, %c0_144] : memref<32x32xf32, #tpu.memory_space<vmem>>, vector<32x32xf32>
    %cst_145 = arith.constant dense<0.000000e+00> : vector<1x32xf32>
    %513 = tpu.matmul %504, %512, %cst_145 {dimension_numbers = #tpu.dot_dimension_numbers<[1], [0], [0], [1], [0, 0, 1, 1], [], []>} : vector<1x32xf32>, vector<32x32xf32>, vector<1x32xf32> -> vector<1x32xf32>
    %c0_146 = arith.constant 0 : index
    %c0_147 = arith.constant 0 : index
    %514 = vector.load %arg17[%c0_146, %c0_147] : memref<1x32xf32, #tpu.memory_space<vmem>>, vector<1x32xf32>
    %515 = arith.addf %513, %514 : vector<1x32xf32>
    %cst_148 = arith.constant 0.000000e+00 : f32
    %516 = vector.broadcast %cst_148 : f32 to vector<1x32xf32>
    %517 = arith.maximumf %515, %516 : vector<1x32xf32>
    %cst_149 = arith.constant 0.000000e+00 : f32
    %518 = vector.broadcast %cst_149 : f32 to vector<1x96xf32>
    %c0_150 = arith.constant 0 : index
    %c0_151 = arith.constant 0 : index
    %c0_152 = arith.constant 0 : index
    %519 = vector.load %arg18[%c0_150, %c0_151, %c0_152] : memref<3x32x32xf32, #tpu.memory_space<vmem>>, vector<1x32x32xf32>
    %520 = vector.shape_cast %519 : vector<1x32x32xf32> to vector<32x32xf32>
    %cst_153 = arith.constant dense<0.000000e+00> : vector<1x32xf32>
    %521 = tpu.matmul %517, %520, %cst_153 {dimension_numbers = #tpu.dot_dimension_numbers<[1], [0], [0], [1], [0, 0, 1, 1], [], []>} : vector<1x32xf32>, vector<32x32xf32>, vector<1x32xf32> -> vector<1x32xf32>
    %c0_154 = arith.constant 0 : index
    %c0_155 = arith.constant 0 : index
    %c0_156 = arith.constant 0 : index
    %522 = vector.load %arg19[%c0_154, %c0_155, %c0_156] : memref<3x1x32xf32, #tpu.memory_space<vmem>>, vector<1x1x32xf32>
    %523 = vector.shape_cast %522 : vector<1x1x32xf32> to vector<1x32xf32>
    %524 = arith.addf %521, %523 : vector<1x32xf32>
    %525 = arith.mulf %524, %524 : vector<1x32xf32>
    %cst_157 = arith.constant dense<0.000000e+00> : vector<1xf32>
    %526 = vector.multi_reduction <add>, %525, %cst_157 [1] : vector<1x32xf32> to vector<1xf32>
    %527 = vector.shape_cast %526 : vector<1xf32> to vector<1x1xf32>
    %528 = math.sqrt %527 : vector<1x1xf32>
    %cst_158 = arith.constant dense<0.000000e+00> : vector<1x1xf32>
    %529 = tpu.matmul %524, %260, %cst_158 {dimension_numbers = #tpu.dot_dimension_numbers<[1], [1], [0], [0], [0, 0, 1, 0], [], []>} : vector<1x32xf32>, vector<1x32xf32>, vector<1x1xf32> -> vector<1x1xf32>
    %cst_159 = arith.constant dense<0.000000e+00> : vector<1x1xf32>
    %530 = tpu.matmul %528, %511, %cst_159 {dimension_numbers = #tpu.dot_dimension_numbers<[1], [1], [0], [0], [0, 0, 1, 0], [], []>} : vector<1x1xf32>, vector<1x1xf32>, vector<1x1xf32> -> vector<1x1xf32>
    %cst_160 = arith.constant 9.99999993E-9 : f32
    %531 = vector.broadcast %cst_160 : f32 to vector<1x1xf32>
    %532 = arith.maximumf %530, %531 : vector<1x1xf32>
    %533 = tpu.reciprocal %532 {approx = true} : vector<1x1xf32> -> vector<1x1xf32>
    %534 = arith.mulf %529, %533 : vector<1x1xf32>
    %cst_161 = arith.constant dense<0xFF800000> : vector<1xf32>
    %535 = vector.multi_reduction <maximumf>, %534, %cst_161 [1] : vector<1x1xf32> to vector<1xf32>
    %536 = vector.shape_cast %535 : vector<1xf32> to vector<1x1xf32>
    %537 = arith.subf %534, %536 : vector<1x1xf32>
    %538 = math.exp %537 : vector<1x1xf32>
    %cst_162 = arith.constant dense<0.000000e+00> : vector<1xf32>
    %539 = vector.multi_reduction <add>, %538, %cst_162 [1] : vector<1x1xf32> to vector<1xf32>
    %540 = vector.shape_cast %539 : vector<1xf32> to vector<1x1xf32>
    %541 = tpu.reciprocal %540 {approx = true} : vector<1x1xf32> -> vector<1x1xf32>
    %542 = arith.mulf %538, %541 : vector<1x1xf32>
    %cst_163 = arith.constant dense<0.000000e+00> : vector<1x32xf32>
    %543 = tpu.matmul %542, %260, %cst_163 {dimension_numbers = #tpu.dot_dimension_numbers<[1], [0], [0], [1], [0, 0, 1, 1], [], []>} : vector<1x1xf32>, vector<1x32xf32>, vector<1x32xf32> -> vector<1x32xf32>
    %c0_164 = arith.constant 0 : index
    %c0_165 = arith.constant 0 : index
    %c0_166 = arith.constant 0 : index
    %544 = vector.load %arg20[%c0_164, %c0_165, %c0_166] : memref<3x32x96xf32, #tpu.memory_space<vmem>>, vector<1x32x96xf32>
    %545 = vector.shape_cast %544 : vector<1x32x96xf32> to vector<32x96xf32>
    %cst_167 = arith.constant dense<0.000000e+00> : vector<1x96xf32>
    %546 = tpu.matmul %543, %545, %cst_167 {dimension_numbers = #tpu.dot_dimension_numbers<[1], [0], [0], [1], [0, 0, 1, 1], [], []>} : vector<1x32xf32>, vector<32x96xf32>, vector<1x96xf32> -> vector<1x96xf32>
    %547 = arith.addf %518, %546 : vector<1x96xf32>
    %c1_168 = arith.constant 1 : index
    %c0_169 = arith.constant 0 : index
    %c0_170 = arith.constant 0 : index
    %548 = vector.load %arg18[%c1_168, %c0_169, %c0_170] : memref<3x32x32xf32, #tpu.memory_space<vmem>>, vector<1x32x32xf32>
    %549 = vector.shape_cast %548 : vector<1x32x32xf32> to vector<32x32xf32>
    %cst_171 = arith.constant dense<0.000000e+00> : vector<1x32xf32>
    %550 = tpu.matmul %517, %549, %cst_171 {dimension_numbers = #tpu.dot_dimension_numbers<[1], [0], [0], [1], [0, 0, 1, 1], [], []>} : vector<1x32xf32>, vector<32x32xf32>, vector<1x32xf32> -> vector<1x32xf32>
    %c1_172 = arith.constant 1 : index
    %c0_173 = arith.constant 0 : index
    %c0_174 = arith.constant 0 : index
    %551 = vector.load %arg19[%c1_172, %c0_173, %c0_174] : memref<3x1x32xf32, #tpu.memory_space<vmem>>, vector<1x1x32xf32>
    %552 = vector.shape_cast %551 : vector<1x1x32xf32> to vector<1x32xf32>
    %553 = arith.addf %550, %552 : vector<1x32xf32>
    %554 = arith.mulf %553, %553 : vector<1x32xf32>
    %cst_175 = arith.constant dense<0.000000e+00> : vector<1xf32>
    %555 = vector.multi_reduction <add>, %554, %cst_175 [1] : vector<1x32xf32> to vector<1xf32>
    %556 = vector.shape_cast %555 : vector<1xf32> to vector<1x1xf32>
    %557 = math.sqrt %556 : vector<1x1xf32>
    %cst_176 = arith.constant dense<0.000000e+00> : vector<1x1xf32>
    %558 = tpu.matmul %553, %260, %cst_176 {dimension_numbers = #tpu.dot_dimension_numbers<[1], [1], [0], [0], [0, 0, 1, 0], [], []>} : vector<1x32xf32>, vector<1x32xf32>, vector<1x1xf32> -> vector<1x1xf32>
    %cst_177 = arith.constant dense<0.000000e+00> : vector<1x1xf32>
    %559 = tpu.matmul %557, %511, %cst_177 {dimension_numbers = #tpu.dot_dimension_numbers<[1], [1], [0], [0], [0, 0, 1, 0], [], []>} : vector<1x1xf32>, vector<1x1xf32>, vector<1x1xf32> -> vector<1x1xf32>
    %cst_178 = arith.constant 9.99999993E-9 : f32
    %560 = vector.broadcast %cst_178 : f32 to vector<1x1xf32>
    %561 = arith.maximumf %559, %560 : vector<1x1xf32>
    %562 = tpu.reciprocal %561 {approx = true} : vector<1x1xf32> -> vector<1x1xf32>
    %563 = arith.mulf %558, %562 : vector<1x1xf32>
    %cst_179 = arith.constant dense<0xFF800000> : vector<1xf32>
    %564 = vector.multi_reduction <maximumf>, %563, %cst_179 [1] : vector<1x1xf32> to vector<1xf32>
    %565 = vector.shape_cast %564 : vector<1xf32> to vector<1x1xf32>
    %566 = arith.subf %563, %565 : vector<1x1xf32>
    %567 = math.exp %566 : vector<1x1xf32>
    %cst_180 = arith.constant dense<0.000000e+00> : vector<1xf32>
    %568 = vector.multi_reduction <add>, %567, %cst_180 [1] : vector<1x1xf32> to vector<1xf32>
    %569 = vector.shape_cast %568 : vector<1xf32> to vector<1x1xf32>
    %570 = tpu.reciprocal %569 {approx = true} : vector<1x1xf32> -> vector<1x1xf32>
    %571 = arith.mulf %567, %570 : vector<1x1xf32>
    %cst_181 = arith.constant dense<0.000000e+00> : vector<1x32xf32>
    %572 = tpu.matmul %571, %260, %cst_181 {dimension_numbers = #tpu.dot_dimension_numbers<[1], [0], [0], [1], [0, 0, 1, 1], [], []>} : vector<1x1xf32>, vector<1x32xf32>, vector<1x32xf32> -> vector<1x32xf32>
    %c1_182 = arith.constant 1 : index
    %c0_183 = arith.constant 0 : index
    %c0_184 = arith.constant 0 : index
    %573 = vector.load %arg20[%c1_182, %c0_183, %c0_184] : memref<3x32x96xf32, #tpu.memory_space<vmem>>, vector<1x32x96xf32>
    %574 = vector.shape_cast %573 : vector<1x32x96xf32> to vector<32x96xf32>
    %cst_185 = arith.constant dense<0.000000e+00> : vector<1x96xf32>
    %575 = tpu.matmul %572, %574, %cst_185 {dimension_numbers = #tpu.dot_dimension_numbers<[1], [0], [0], [1], [0, 0, 1, 1], [], []>} : vector<1x32xf32>, vector<32x96xf32>, vector<1x96xf32> -> vector<1x96xf32>
    %576 = arith.addf %547, %575 : vector<1x96xf32>
    %c2_186 = arith.constant 2 : index
    %c0_187 = arith.constant 0 : index
    %c0_188 = arith.constant 0 : index
    %577 = vector.load %arg18[%c2_186, %c0_187, %c0_188] : memref<3x32x32xf32, #tpu.memory_space<vmem>>, vector<1x32x32xf32>
    %578 = vector.shape_cast %577 : vector<1x32x32xf32> to vector<32x32xf32>
    %cst_189 = arith.constant dense<0.000000e+00> : vector<1x32xf32>
    %579 = tpu.matmul %517, %578, %cst_189 {dimension_numbers = #tpu.dot_dimension_numbers<[1], [0], [0], [1], [0, 0, 1, 1], [], []>} : vector<1x32xf32>, vector<32x32xf32>, vector<1x32xf32> -> vector<1x32xf32>
    %c2_190 = arith.constant 2 : index
    %c0_191 = arith.constant 0 : index
    %c0_192 = arith.constant 0 : index
    %580 = vector.load %arg19[%c2_190, %c0_191, %c0_192] : memref<3x1x32xf32, #tpu.memory_space<vmem>>, vector<1x1x32xf32>
    %581 = vector.shape_cast %580 : vector<1x1x32xf32> to vector<1x32xf32>
    %582 = arith.addf %579, %581 : vector<1x32xf32>
    %583 = arith.mulf %582, %582 : vector<1x32xf32>
    %cst_193 = arith.constant dense<0.000000e+00> : vector<1xf32>
    %584 = vector.multi_reduction <add>, %583, %cst_193 [1] : vector<1x32xf32> to vector<1xf32>
    %585 = vector.shape_cast %584 : vector<1xf32> to vector<1x1xf32>
    %586 = math.sqrt %585 : vector<1x1xf32>
    %cst_194 = arith.constant dense<0.000000e+00> : vector<1x1xf32>
    %587 = tpu.matmul %582, %260, %cst_194 {dimension_numbers = #tpu.dot_dimension_numbers<[1], [1], [0], [0], [0, 0, 1, 0], [], []>} : vector<1x32xf32>, vector<1x32xf32>, vector<1x1xf32> -> vector<1x1xf32>
    %cst_195 = arith.constant dense<0.000000e+00> : vector<1x1xf32>
    %588 = tpu.matmul %586, %511, %cst_195 {dimension_numbers = #tpu.dot_dimension_numbers<[1], [1], [0], [0], [0, 0, 1, 0], [], []>} : vector<1x1xf32>, vector<1x1xf32>, vector<1x1xf32> -> vector<1x1xf32>
    %cst_196 = arith.constant 9.99999993E-9 : f32
    %589 = vector.broadcast %cst_196 : f32 to vector<1x1xf32>
    %590 = arith.maximumf %588, %589 : vector<1x1xf32>
    %591 = tpu.reciprocal %590 {approx = true} : vector<1x1xf32> -> vector<1x1xf32>
    %592 = arith.mulf %587, %591 : vector<1x1xf32>
    %cst_197 = arith.constant dense<0xFF800000> : vector<1xf32>
    %593 = vector.multi_reduction <maximumf>, %592, %cst_197 [1] : vector<1x1xf32> to vector<1xf32>
    %594 = vector.shape_cast %593 : vector<1xf32> to vector<1x1xf32>
    %595 = arith.subf %592, %594 : vector<1x1xf32>
    %596 = math.exp %595 : vector<1x1xf32>
    %cst_198 = arith.constant dense<0.000000e+00> : vector<1xf32>
    %597 = vector.multi_reduction <add>, %596, %cst_198 [1] : vector<1x1xf32> to vector<1xf32>
    %598 = vector.shape_cast %597 : vector<1xf32> to vector<1x1xf32>
    %599 = tpu.reciprocal %598 {approx = true} : vector<1x1xf32> -> vector<1x1xf32>
    %600 = arith.mulf %596, %599 : vector<1x1xf32>
    %cst_199 = arith.constant dense<0.000000e+00> : vector<1x32xf32>
    %601 = tpu.matmul %600, %260, %cst_199 {dimension_numbers = #tpu.dot_dimension_numbers<[1], [0], [0], [1], [0, 0, 1, 1], [], []>} : vector<1x1xf32>, vector<1x32xf32>, vector<1x32xf32> -> vector<1x32xf32>
    %c2_200 = arith.constant 2 : index
    %c0_201 = arith.constant 0 : index
    %c0_202 = arith.constant 0 : index
    %602 = vector.load %arg20[%c2_200, %c0_201, %c0_202] : memref<3x32x96xf32, #tpu.memory_space<vmem>>, vector<1x32x96xf32>
    %603 = vector.shape_cast %602 : vector<1x32x96xf32> to vector<32x96xf32>
    %cst_203 = arith.constant dense<0.000000e+00> : vector<1x96xf32>
    %604 = tpu.matmul %601, %603, %cst_203 {dimension_numbers = #tpu.dot_dimension_numbers<[1], [0], [0], [1], [0, 0, 1, 1], [], []>} : vector<1x32xf32>, vector<32x96xf32>, vector<1x96xf32> -> vector<1x96xf32>
    %605 = arith.addf %576, %604 : vector<1x96xf32>
    %c0_204 = arith.constant 0 : index
    %c0_205 = arith.constant 0 : index
    %606 = vector.load %arg21[%c0_204, %c0_205] : memref<32x96xf32, #tpu.memory_space<vmem>>, vector<32x96xf32>
    %cst_206 = arith.constant dense<0.000000e+00> : vector<4x96xf32>
    %607 = tpu.matmul %469, %606, %cst_206 {dimension_numbers = #tpu.dot_dimension_numbers<[1], [0], [0], [1], [0, 0, 1, 1], [], []>} : vector<4x32xf32>, vector<32x96xf32>, vector<4x96xf32> -> vector<4x96xf32>
    %608 = vector.broadcast %605 : vector<1x96xf32> to vector<4x96xf32>
    %609 = arith.addf %607, %608 : vector<4x96xf32>
    %c0_207 = arith.constant 0 : index
    %c0_208 = arith.constant 0 : index
    %610 = vector.load %arg22[%c0_207, %c0_208] : memref<1x96xf32, #tpu.memory_space<vmem>>, vector<1x96xf32>
    %611 = vector.broadcast %610 : vector<1x96xf32> to vector<4x96xf32>
    %612 = arith.addf %609, %611 : vector<4x96xf32>
    %cst_209 = arith.constant 0.000000e+00 : f32
    %613 = vector.broadcast %cst_209 : f32 to vector<4x96xf32>
    %614 = arith.maximumf %612, %613 : vector<4x96xf32>
    %c0_210 = arith.constant 0 : index
    %c0_211 = arith.constant 0 : index
    %615 = vector.load %arg23[%c0_210, %c0_211] : memref<96x64xf32, #tpu.memory_space<vmem>>, vector<96x64xf32>
    %cst_212 = arith.constant dense<0.000000e+00> : vector<4x64xf32>
    %616 = tpu.matmul %614, %615, %cst_212 {dimension_numbers = #tpu.dot_dimension_numbers<[1], [0], [0], [1], [0, 0, 1, 1], [], []>} : vector<4x96xf32>, vector<96x64xf32>, vector<4x64xf32> -> vector<4x64xf32>
    %c0_213 = arith.constant 0 : index
    %c0_214 = arith.constant 0 : index
    %617 = vector.load %arg24[%c0_213, %c0_214] : memref<1x64xf32, #tpu.memory_space<vmem>>, vector<1x64xf32>
    %618 = vector.broadcast %617 : vector<1x64xf32> to vector<4x64xf32>
    %619 = arith.addf %616, %618 : vector<4x64xf32>
    %cst_215 = arith.constant 0.000000e+00 : f32
    %620 = vector.broadcast %cst_215 : f32 to vector<4x64xf32>
    %621 = arith.maximumf %619, %620 : vector<4x64xf32>
    %c0_216 = arith.constant 0 : index
    %c0_217 = arith.constant 0 : index
    %622 = vector.load %arg25[%c0_216, %c0_217] : memref<64x32xf32, #tpu.memory_space<vmem>>, vector<64x32xf32>
    %cst_218 = arith.constant dense<0.000000e+00> : vector<4x32xf32>
    %623 = tpu.matmul %621, %622, %cst_218 {dimension_numbers = #tpu.dot_dimension_numbers<[1], [0], [0], [1], [0, 0, 1, 1], [], []>} : vector<4x64xf32>, vector<64x32xf32>, vector<4x32xf32> -> vector<4x32xf32>
    %c0_219 = arith.constant 0 : index
    %c0_220 = arith.constant 0 : index
    %624 = vector.load %arg26[%c0_219, %c0_220] : memref<1x32xf32, #tpu.memory_space<vmem>>, vector<1x32xf32>
    %625 = vector.broadcast %624 : vector<1x32xf32> to vector<4x32xf32>
    %626 = arith.addf %623, %625 : vector<4x32xf32>
    %cst_221 = arith.constant 0.000000e+00 : f32
    %627 = vector.broadcast %cst_221 : f32 to vector<4x32xf32>
    %628 = arith.maximumf %626, %627 : vector<4x32xf32>
    %c0_222 = arith.constant 0 : index
    %c0_223 = arith.constant 0 : index
    %629 = vector.load %arg27[%c0_222, %c0_223] : memref<32x128xf32, #tpu.memory_space<vmem>>, vector<32x128xf32>
    %cst_224 = arith.constant dense<0.000000e+00> : vector<4x128xf32>
    %630 = tpu.matmul %628, %629, %cst_224 {dimension_numbers = #tpu.dot_dimension_numbers<[1], [0], [0], [1], [0, 0, 1, 1], [], []>} : vector<4x32xf32>, vector<32x128xf32>, vector<4x128xf32> -> vector<4x128xf32>
    %c0_225 = arith.constant 0 : index
    %c0_226 = arith.constant 0 : index
    %631 = vector.load %arg28[%c0_225, %c0_226] : memref<1x128xf32, #tpu.memory_space<vmem>>, vector<1x128xf32>
    %632 = vector.broadcast %631 : vector<1x128xf32> to vector<4x128xf32>
    %633 = arith.addf %630, %632 : vector<4x128xf32>
    %c0_227 = arith.constant 0 : index
    %c0_228 = arith.constant 0 : index
    %634 = vector.load %arg29[%c0_227, %c0_228] : memref<4x128xf32, #tpu.memory_space<vmem>>, vector<4x128xf32>
    tpu.vector_store %arg29[%c0_227, %c0_228], %633 {strides = array<i32>} : memref<4x128xf32, #tpu.memory_space<vmem>>, vector<4x128xf32>,
    return
  }
}

</mosaic_0001>

<bundles_post_ra>
// kernel: tpu_custom_call.1
= control target key start
LH: loop header
LB: loop body
LE: loop exit
PB: predicated region body
PF: predicated region fallthrough
CT: control target
= control target key end

     0   :  { %s6195_s6 = smov 1   ;;  %s6196_s10 = smov 2   ;;  %s7110_s0 = inlined_call_operand.smem [shape: u32[33], index: -1, kind: input, shape index: {}] }
   0x1   :  { %s6270_s5 = sld [smem:[%s7110_s0]]   ;;  %s6197_s14 = smov 3  }
   0x2   :  { %s6275_s9 = sld [smem:[%s7110_s0 + %s6195_s6]]   ;;  %s6198_s18 = smov 4  }
   0x3   :  { %s6280_s13 = sld [smem:[%s7110_s0 + %s6196_s10]]   ;;  %s6199_s22 = smov 5  }
   0x4   :  { %s6285_s17 = sld [smem:[%s7110_s0 + %s6197_s14]]   ;;  %s6200_s26 = smov 6  }
   0x5   :  { %s6290_s21 = sld [smem:[%s7110_s0 + %s6198_s18]]   ;;  %s6201_s30 = smov 7  }
   0x6   :  { %s6295_s25 = sld [smem:[%s7110_s0 + %s6199_s22]]   ;;  %s6202_s4 = smov 8  }
   0x7   :  { %s6300_s29 = sld [smem:[%s7110_s0 + %s6200_s26]]   ;;  %s6203_s10 = smov 9  }
   0x8   :  { %s6305_s3 = sld [smem:[%s7110_s0 + %s6201_s30]]   ;;  %s6204_s15 = smov 10  }
   0x9   :  { %s6310_s8 = sld [smem:[%s7110_s0 + %s6202_s4]]   ;;  %s6205_s20 = smov 11  }
   0xa   :  { %s6315_s14 = sld [smem:[%s7110_s0 + %s6203_s10]]   ;;  %s6206_s26 = smov 12  }
   0xb   :  { %s6320_s19 = sld [smem:[%s7110_s0 + %s6204_s15]]   ;;  %s6207_s1 = smov 13  }
   0xc   :  { %s6325_s24 = sld [smem:[%s7110_s0 + %s6205_s20]]   ;;  %s6208_s7 = smov 14  }
   0xd   :  { %s6330_s30 = sld [smem:[%s7110_s0 + %s6206_s26]]   ;;  %s6209_s15 = smov 15  }
   0xe   :  { %s6335_s6 = sld [smem:[%s7110_s0 + %s6207_s1]]   ;;  %s6210_s22 = smov 16  }
   0xf   :  { %s6340_s12 = sld [smem:[%s7110_s0 + %s6208_s7]]   ;;  %s6211_s28 = smov 17  }
  0x10   :  { %7123 = sst [smem:[#allocation54_spill]] %s6315_s14  ;;  %s6212_s7 = smov 18  }
  0x11   :  { %s6345_s20 = sld [smem:[%s7110_s0 + %s6209_s15]]   ;;  %s6213_s15 = smov 19  }
  0x12   :  { %7124 = sst [smem:[#allocation55_spill]] %s6325_s24 }
  0x13   :  { %s6350_s27 = sld [smem:[%s7110_s0 + %s6210_s22]]   ;;  %s6214_s22 = smov 20  }
  0x14   :  { %7125 = sst [smem:[#allocation56_spill]] %s6335_s6 }
  0x15   :  { %s6355_s4 = sld [smem:[%s7110_s0 + %s6211_s28]]   ;;  %s6215_s28 = smov 21  }
  0x16   :  { %s6360_s14 = sld [smem:[%s7110_s0 + %s6212_s7]]   ;;  %s6216_s7 = smov 22  }
  0x17   :  { %7126 = sst [smem:[#allocation57_spill]] %s6345_s20 }
  0x18   :  { %s6365_s20 = sld [smem:[%s7110_s0 + %s6213_s15]]   ;;  %s6217_s15 = smov 23  }
  0x19   :  { %s6370_s6 = sld [smem:[%s7110_s0 + %s6214_s22]]   ;;  %s6218_s22 = smov 24  }
  0x1a   :  { %s6385_s24 = sld [smem:[%s7110_s0 + %s6217_s15]]   ;;  %s6221_s15 = smov 27  }
  0x1b   :  { %7127 = sst [smem:[#allocation58_spill]] %s6355_s4 }
  0x1c   :  { %7128 = sst [smem:[#allocation59_spill]] %s6360_s14 }
  0x1d   :  { %s6375_s4 = sld [smem:[%s7110_s0 + %s6215_s28]]   ;;  %s6219_s28 = smov 25  }
  0x1e   :  { %s6380_s14 = sld [smem:[%s7110_s0 + %s6216_s7]]   ;;  %s6220_s7 = smov 26  }
  0x1f   :  { %7129 = sst [smem:[#allocation60_spill]] %s6370_s6 }
  0x20   :  { %7132 = sst [smem:[#allocation63_spill]] %s6385_s24 }
  0x21   :  { %s6390_s6 = sld [smem:[%s7110_s0 + %s6218_s22]]   ;;  %s6222_s22 = smov 28  }
  0x22   :  { %s6405_s24 = sld [smem:[%s7110_s0 + %s6221_s15]]   ;;  %s6225_s15 = smov 31  }
  0x23   :  { %7130 = sst [smem:[#allocation61_spill]] %s6375_s4 }
  0x24   :  { %7131 = sst [smem:[#allocation62_spill]] %s6380_s14 }
  0x25   :  { %s6395_s4 = sld [smem:[%s7110_s0 + %s6219_s28]]   ;;  %s6223_s28 = smov 29  }
  0x26   :  { %s6400_s14 = sld [smem:[%s7110_s0 + %s6220_s7]]   ;;  %s6224_s7 = smov 30  }
  0x27   :  { %7133 = sst [smem:[#allocation64_spill]] %s6390_s6 }
  0x28   :  { %7136 = sst [smem:[#allocation67_spill]] %s6405_s24 }
  0x29   :  { %s6410_s6 = sld [smem:[%s7110_s0 + %s6222_s22]]   ;;  %s6226_s22 = smov 32  }
  0x2a   :  { %s6425_s24 = sld [smem:[%s7110_s0 + %s6225_s15]]  }
  0x2b   :  { %7134 = sst [smem:[#allocation65_spill]] %s6395_s4 }
  0x2c   :  { %7135 = sst [smem:[#allocation66_spill]] %s6400_s14 }
  0x2d   :  { %s6415_s4 = sld [smem:[%s7110_s0 + %s6223_s28]]  }
  0x2e   :  { %s6420_s14 = sld [smem:[%s7110_s0 + %s6224_s7]]  }
  0x2f   :  { %7137 = sst [smem:[#allocation68_spill]] %s6410_s6 }
  0x30   :  { %s6430_s6 = sld [smem:[%s7110_s0 + %s6226_s22]]  }
  0x31   :  { %71 = vsyncpa [#allocation3], 0 }
  0x32   :  { %72 = vsyncpa [#allocation6], 0 }
  0x33   :  { %73 = vsyncpa [#allocation9], 0 }
  0x34   :  { %74 = vsyncpa [#allocation12], 0 }
  0x35   :  { %75 = vsyncpa [#allocation15], 0 }
  0x36   :  { %76 = vsyncpa [#allocation18], 0 }
  0x37   :  { %77 = vsyncpa [#allocation21], 0 }
  0x38   :  { %78 = vsyncpa [#allocation24], 0 }
  0x39   :  { %79 = vsyncpa [#allocation27], 0 }
  0x3a   :  { %80 = vsyncpa [#allocation30], 0 }
  0x3b   :  { %81 = vsyncpa [#allocation33], 0 }
  0x3c   :  { %82 = vsyncpa [#allocation4], 0 }
  0x3d   :  { %83 = vsyncpa [#allocation36], 0 }
  0x3e   :  { %84 = vsyncpa [#allocation39], 0  ;;  %s6227_s28 = smov [#allocation5]   ;;  %s5639_s1 = scalar_lea.hbm %s6275_s9, 384 }
  0x3f   :  { %s102_s0 = sshll.u32 %s6227_s28, 4  ;;  %p5640_p0 = scmp.ne.s32.totalorder %s6275_s9, %s5639_s1  ;;  %s103_s0 = int_to_ptr.vmem [resolvable:$true] %s102_s0 }
  0x40   :  { %p5643_p1 = scmp.lt.u32.totalorder %s5639_s1, %s6275_s9 }
  0x42   :  { %p5645_p2 = pnand %p5643_p1, %p5640_p0 }
  0x44   :  { %5648 = shalt.err (!%p5645_p2)
}
  0x45   :  { %s5649_s2 = scalar_lea.vmem %s103_s0, 384  ;;  %p5654_p4 = scmp.lt.s32.totalorder %s103_s0, %s103_s0 }
  0x46   :  { %p5650_p3 = scmp.ne.s32.totalorder %s103_s0, %s5649_s2  ;;  %p5655_p5 = scmp.lt.s32.totalorder %s5649_s2, %s5649_s2 }
  0x48   :  { %p5656_p6 = por %p5655_p5, %p5654_p4 }
  0x4a   :  { %p5657_p7 = pnand %p5656_p6, %p5650_p3 }
  0x4c   :  { %5660 = shalt.err (!%p5657_p7)
}
  0x4d   :  { %s6228_s7 = smov 64   ;;  %s6229_s10 = smov 4  }
  0x4e   :  { %108 = dma.hbm_to_vmem [thread:$0]  %s6275_s9, 384, %s103_s0, [#allocation6], %s6228_s7, %s6228_s7, %s6229_s10  }
  0x4f   :  { %s6230_s11 = smov [#allocation8]   ;;  %s5661_s16 = scalar_lea.hbm %s6285_s17, 16 }
  0x50   :  { %s125_s15 = sshll.u32 %s6230_s11, 4  ;;  %p5662_p8 = scmp.ne.s32.totalorder %s6285_s17, %s5661_s16  ;;  %s126_s15 = int_to_ptr.vmem [resolvable:$true] %s125_s15 }
  0x51   :  { %p5665_p9 = scmp.lt.u32.totalorder %s5661_s16, %s6285_s17 }
  0x53   :  { %p5667_p10 = pnand %p5665_p9, %p5662_p8 }
  0x55   :  { %5670 = shalt.err (!%p5667_p10)
}
  0x56   :  { %s5671_s18 = scalar_lea.vmem %s126_s15, 16  ;;  %s5675_s22 = scalar_lea.vmem %s126_s15, 32 }
  0x57   :  { %p5672_p11 = scmp.ne.s32.totalorder %s126_s15, %s5671_s18  ;;  %p5676_p12 = scmp.lt.s32.totalorder %s126_s15, %s126_s15 }
  0x58   :  { %p5677_p13 = scmp.lt.s32.totalorder %s5675_s22, %s5671_s18 }
  0x5a   :  { %p5678_p0 = por %p5677_p13, %p5676_p12 }
  0x5c   :  { %p5679_p1 = pnand %p5678_p0, %p5672_p11 }
  0x5e   :  { %5682 = shalt.err (!%p5679_p1)
}
  0x5f   :  { %128 = dma.hbm_to_vmem [thread:$0]  %s6285_s17, 16, %s126_s15, [#allocation9]  }
  0x60   :  { %s6231_s9 = smov [#allocation11]   ;;  %s6232_s26 = smov [#allocation14]  }
  0x61   :  { %s146_s23 = sshll.u32 %s6231_s9, 4  ;;  %s169_s28 = sshll.u32 %s6232_s26, 4  ;;  %s147_s23 = int_to_ptr.vmem [resolvable:$true] %s146_s23  ;;  %s6442_s28 = int_to_ptr.vmem [resolvable:$true] %s169_s28 }
  0x62   :  { %s5683_s0 = scalar_lea.hbm %s6295_s25, 512 }
  0x63   :  { %p5684_p2 = scmp.ne.s32.totalorder %s6295_s25, %s5683_s0  ;;  %p5687_p3 = scmp.lt.u32.totalorder %s5683_s0, %s6295_s25 }
  0x65   :  { %p5689_p4 = pnand %p5687_p3, %p5684_p2 }
  0x67   :  { %5692 = shalt.err (!%p5689_p4)
}
  0x68   :  { %s5693_s1 = scalar_lea.vmem %s147_s23, 512  ;;  %p5698_p6 = scmp.lt.s32.totalorder %s147_s23, %s147_s23 }
  0x69   :  { %p5694_p5 = scmp.ne.s32.totalorder %s147_s23, %s5693_s1  ;;  %p5699_p7 = scmp.lt.s32.totalorder %s5693_s1, %s5693_s1 }
  0x6b   :  { %p5700_p8 = por %p5699_p7, %p5698_p6 }
  0x6d   :  { %p5701_p9 = pnand %p5700_p8, %p5694_p5 }
  0x6f   :  { %5704 = shalt.err (!%p5701_p9)
}
  0x70   :  { %s6233_s17 = smov 128   ;;  %s6234_s2 = smov 8  }
  0x71   :  { %152 = dma.hbm_to_vmem [thread:$0]  %s6295_s25, 512, %s147_s23, [#allocation12], %s6233_s17, %s6233_s17, %s6234_s2  }
  0x72   :  { %s5705_s10 = scalar_lea.hbm %s6305_s3, 16 }
  0x73   :  { %p5706_p10 = scmp.ne.s32.totalorder %s6305_s3, %s5705_s10  ;;  %p5709_p11 = scmp.lt.u32.totalorder %s5705_s10, %s6305_s3 }
  0x75   :  { %p5711_p12 = pnand %p5709_p11, %p5706_p10 }
  0x77   :  { %5714 = shalt.err (!%p5711_p12)
}
  0x78   :  { %s5715_s11 = scalar_lea.vmem %s6442_s28, 16  ;;  %s5719_s15 = scalar_lea.vmem %s6442_s28, 32 }
  0x79   :  { %p5716_p13 = scmp.ne.s32.totalorder %s6442_s28, %s5715_s11  ;;  %p5720_p0 = scmp.lt.s32.totalorder %s6442_s28, %s6442_s28 }
  0x7a   :  { %p5721_p1 = scmp.lt.s32.totalorder %s5719_s15, %s5715_s11 }
  0x7c   :  { %p5722_p2 = por %p5721_p1, %p5720_p0 }
  0x7e   :  { %p5723_p3 = pnand %p5722_p2, %p5716_p13 }
  0x80   :  { %5726 = shalt.err (!%p5723_p3)
}
  0x81   :  { %172 = dma.hbm_to_vmem [thread:$0]  %s6305_s3, 16, %s6442_s28, [#allocation15]  }
  0x82   :  { %s6235_s25 = smov [#allocation17]   ;;  %s6236_s18 = smov [#allocation20]  }
  0x83   :  { %s193_s16 = sshll.u32 %s6235_s25, 4  ;;  %s212_s22 = sshll.u32 %s6236_s18, 4  ;;  %s194_s16 = int_to_ptr.vmem [resolvable:$true] %s193_s16  ;;  %s6461_s22 = int_to_ptr.vmem [resolvable:$true] %s212_s22 }
  0x84   :  { %s5727_s9 = scalar_lea.hbm %s6320_s19, 16 }
  0x85   :  { %p5728_p4 = scmp.ne.s32.totalorder %s6320_s19, %s5727_s9  ;;  %p5731_p5 = scmp.lt.u32.totalorder %s5727_s9, %s6320_s19 }
  0x87   :  { %p5733_p6 = pnand %p5731_p5, %p5728_p4 }
  0x89   :  { %5736 = shalt.err (!%p5733_p6)
}
  0x8a   :  { %s5737_s23 = scalar_lea.vmem %s194_s16, 16  ;;  %s5741_s26 = scalar_lea.vmem %s194_s16, 32 }
  0x8b   :  { %p5738_p7 = scmp.ne.s32.totalorder %s194_s16, %s5737_s23  ;;  %p5742_p8 = scmp.lt.s32.totalorder %s194_s16, %s194_s16 }
  0x8c   :  { %p5743_p9 = scmp.lt.s32.totalorder %s5741_s26, %s5737_s23 }
  0x8e   :  { %p5744_p10 = por %p5743_p9, %p5742_p8 }
  0x90   :  { %p5745_p11 = pnand %p5744_p10, %p5738_p7 }
  0x92   :  { %5748 = shalt.err (!%p5745_p11)
}
  0x93   :  { %196 = dma.hbm_to_vmem [thread:$0]  %s6320_s19, 16, %s194_s16, [#allocation18]  }
  0x94   :  { %s5749_s3 = scalar_lea.hbm %s6330_s30, 512 }
  0x95   :  { %p5750_p12 = scmp.ne.s32.totalorder %s6330_s30, %s5749_s3  ;;  %p5753_p13 = scmp.lt.u32.totalorder %s5749_s3, %s6330_s30 }
  0x97   :  { %p5755_p0 = pnand %p5753_p13, %p5750_p12 }
  0x99   :  { %5758 = shalt.err (!%p5755_p0)
}
  0x9a   :  { %s5759_s28 = scalar_lea.vmem %s6461_s22, 512  ;;  %p5764_p2 = scmp.lt.s32.totalorder %s6461_s22, %s6461_s22 }
  0x9b   :  { %p5760_p1 = scmp.ne.s32.totalorder %s6461_s22, %s5759_s28  ;;  %p5765_p3 = scmp.lt.s32.totalorder %s5759_s28, %s5759_s28 }
  0x9d   :  { %p5766_p4 = por %p5765_p3, %p5764_p2 }
  0x9f   :  { %p5767_p5 = pnand %p5766_p4, %p5760_p1 }
  0xa1   :  { %5770 = shalt.err (!%p5767_p5)
}
  0xa2   :  { %218 = dma.hbm_to_vmem [thread:$0]  %s6330_s30, 512, %s6461_s22, [#allocation21], %s6233_s17, %s6233_s17, %s6234_s2  }
  0xa3   :  { %s6237_s19 = smov [#allocation23]   ;;  %s6238_s1 = smov [#allocation26]  }
  0xa4   :  { %s237_s0 = sshll.u32 %s6237_s19, 4  ;;  %s256_s10 = sshll.u32 %s6238_s1, 4  ;;  %s238_s0 = int_to_ptr.vmem [resolvable:$true] %s237_s0  ;;  %s6479_s10 = int_to_ptr.vmem [resolvable:$true] %s256_s10 }
  0xa5   :  { %s5771_s11 = scalar_lea.hbm %s6340_s12, 16 }
  0xa6   :  { %p5772_p6 = scmp.ne.s32.totalorder %s6340_s12, %s5771_s11  ;;  %p5775_p7 = scmp.lt.u32.totalorder %s5771_s11, %s6340_s12 }
  0xa8   :  { %p5777_p8 = pnand %p5775_p7, %p5772_p6 }
  0xaa   :  { %5780 = shalt.err (!%p5777_p8)
}
  0xab   :  { %s5781_s15 = scalar_lea.vmem %s238_s0, 16  ;;  %s5785_s25 = scalar_lea.vmem %s238_s0, 32 }
  0xac   :  { %p5782_p9 = scmp.ne.s32.totalorder %s238_s0, %s5781_s15  ;;  %p5786_p10 = scmp.lt.s32.totalorder %s238_s0, %s238_s0 }
  0xad   :  { %p5787_p11 = scmp.lt.s32.totalorder %s5785_s25, %s5781_s15 }
  0xaf   :  { %p5788_p12 = por %p5787_p11, %p5786_p10 }
  0xb1   :  { %p5789_p13 = pnand %p5788_p12, %p5782_p9 }
  0xb3   :  { %5792 = shalt.err (!%p5789_p13)
}
  0xb4   :  { %240 = dma.hbm_to_vmem [thread:$0]  %s6340_s12, 16, %s238_s0, [#allocation24]  }
  0xb5   :  { %s5793_s30 = scalar_lea.hbm %s6350_s27, 512 }
  0xb6   :  { %p5794_p0 = scmp.ne.s32.totalorder %s6350_s27, %s5793_s30  ;;  %p5797_p1 = scmp.lt.u32.totalorder %s5793_s30, %s6350_s27 }
  0xb8   :  { %p5799_p2 = pnand %p5797_p1, %p5794_p0 }
  0xba   :  { %5802 = shalt.err (!%p5799_p2)
}
  0xbb   :  { %s5803_s16 = scalar_lea.vmem %s6479_s10, 512  ;;  %p5808_p4 = scmp.lt.s32.totalorder %s6479_s10, %s6479_s10 }
  0xbc   :  { %p5804_p3 = scmp.ne.s32.totalorder %s6479_s10, %s5803_s16  ;;  %p5809_p5 = scmp.lt.s32.totalorder %s5803_s16, %s5803_s16 }
  0xbe   :  { %p5810_p6 = por %p5809_p5, %p5808_p4 }
  0xc0   :  { %p5811_p7 = pnand %p5810_p6, %p5804_p3 }
  0xc2   :  { %5814 = shalt.err (!%p5811_p7)
}
  0xc3   :  { %262 = dma.hbm_to_vmem [thread:$0]  %s6350_s27, 512, %s6479_s10, [#allocation27], %s6233_s17, %s6233_s17, %s6234_s2  }
  0xc4   :  { %s6239_s12 = smov [#allocation29]   ;;  %s6240_s22 = smov [#allocation2]  }
  0xc5   :  { %s280_s18 = sshll.u32 %s6239_s12, 4  ;;  %s90_s9 = sshll.u32 %s6240_s22, 4  ;;  %s281_s18 = int_to_ptr.vmem [resolvable:$true] %s280_s18  ;;  %s6497_s9 = int_to_ptr.vmem [resolvable:$true] %s90_s9 }
  0xc6   :  { %s5815_s23 = scalar_lea.hbm %s6365_s20, 48 }
  0xc7   :  { %p5816_p8 = scmp.ne.s32.totalorder %s6365_s20, %s5815_s23  ;;  %p5819_p9 = scmp.lt.u32.totalorder %s5815_s23, %s6365_s20 }
  0xc9   :  { %p5821_p10 = pnand %p5819_p9, %p5816_p8 }
  0xcb   :  { %5824 = shalt.err (!%p5821_p10)
}
  0xcc   :  { %s5825_s26 = scalar_lea.vmem %s281_s18, 48  ;;  %s5829_s3 = scalar_lea.vmem %s281_s18, 64 }
  0xcd   :  { %p5826_p11 = scmp.ne.s32.totalorder %s281_s18, %s5825_s26  ;;  %p5830_p12 = scmp.lt.s32.totalorder %s281_s18, %s281_s18 }
  0xce   :  { %p5831_p13 = scmp.lt.s32.totalorder %s5829_s3, %s5825_s26 }
  0xd0   :  { %p5832_p0 = por %p5831_p13, %p5830_p12 }
  0xd2   :  { %p5833_p1 = pnand %p5832_p0, %p5826_p11 }
  0xd4   :  { %5836 = shalt.err (!%p5833_p1)
}
  0xd5   :  { %s6241_s27 = smov 16   ;;  %s6242_s28 = smov 1  }
  0xd6   :  { %286 = dma.hbm_to_vmem [thread:$0]  %s6365_s20, 48, %s281_s18, [#allocation30], %s6241_s27, %s6241_s27, %s6242_s28  }
  0xd7   :  { %s5837_s19 = scalar_lea.hbm %s6270_s5, 128 }
  0xd8   :  { %p5838_p2 = scmp.ne.s32.totalorder %s6270_s5, %s5837_s19  ;;  %p5841_p3 = scmp.lt.u32.totalorder %s5837_s19, %s6270_s5 }
  0xda   :  { %p5843_p4 = pnand %p5841_p3, %p5838_p2 }
  0xdc   :  { %5846 = shalt.err (!%p5843_p4)
}
  0xdd   :  { %s5847_s0 = scalar_lea.vmem %s6497_s9, 128  ;;  %p5852_p6 = scmp.lt.s32.totalorder %s6497_s9, %s6497_s9 }
  0xde   :  { %p5848_p5 = scmp.ne.s32.totalorder %s6497_s9, %s5847_s0  ;;  %p5853_p7 = scmp.lt.s32.totalorder %s5847_s0, %s5847_s0 }
  0xe0   :  { %p5854_p8 = por %p5853_p7, %p5852_p6 }
  0xe2   :  { %p5855_p9 = pnand %p5854_p8, %p5848_p5 }
  0xe4   :  { %5858 = shalt.err (!%p5855_p9)
}
  0xe5   :  { %96 = dma.hbm_to_vmem [thread:$0]  %s6270_s5, 128, %s6497_s9, [#allocation3], %s6241_s27, %s6241_s27, %s6242_s28  }
  0xe6   :  { %s6243_s20 = smov [#allocation7]   ;;  %s6244_s10 = smov [#allocation10]  }
  0xe7   :  { %s115_s1 = sshll.u32 %s6243_s20, 4  ;;  %s134_s11 = sshll.u32 %s6244_s10, 4  ;;  %s116_s1 = int_to_ptr.vmem [resolvable:$true] %s115_s1  ;;  %s6512_s11 = int_to_ptr.vmem [resolvable:$true] %s134_s11 }
  0xe8   :  { %s5859_s15 = scalar_lea.hbm %s6280_s13, 16 }
  0xe9   :  { %p5860_p10 = scmp.ne.s32.totalorder %s6280_s13, %s5859_s15  ;;  %p5863_p11 = scmp.lt.u32.totalorder %s5859_s15, %s6280_s13 }
  0xeb   :  { %p5865_p12 = pnand %p5863_p11, %p5860_p10 }
  0xed   :  { %5868 = shalt.err (!%p5865_p12)
}
  0xee   :  { %s5869_s25 = scalar_lea.vmem %s116_s1, 16  ;;  %s5873_s30 = scalar_lea.vmem %s116_s1, 32 }
  0xef   :  { %p5870_p13 = scmp.ne.s32.totalorder %s116_s1, %s5869_s25  ;;  %p5874_p0 = scmp.lt.s32.totalorder %s116_s1, %s116_s1 }
  0xf0   :  { %p5875_p1 = scmp.lt.s32.totalorder %s5873_s30, %s5869_s25 }
  0xf2   :  { %p5876_p2 = por %p5875_p1, %p5874_p0 }
  0xf4   :  { %p5877_p3 = pnand %p5876_p2, %p5870_p13 }
  0xf6   :  { %5880 = shalt.err (!%p5877_p3)
}
  0xf7   :  { %118 = dma.hbm_to_vmem [thread:$0]  %s6280_s13, 16, %s116_s1, [#allocation6]  }
  0xf8   :  { %s5881_s5 = scalar_lea.hbm %s6290_s21, 512 }
  0xf9   :  { %p5882_p4 = scmp.ne.s32.totalorder %s6290_s21, %s5881_s5  ;;  %p5885_p5 = scmp.lt.u32.totalorder %s5881_s5, %s6290_s21 }
  0xfb   :  { %p5887_p6 = pnand %p5885_p5, %p5882_p4 }
  0xfd   :  { %5890 = shalt.err (!%p5887_p6)
}
  0xfe   :  { %s5891_s16 = scalar_lea.vmem %s6512_s11, 512  ;;  %p5896_p8 = scmp.lt.s32.totalorder %s6512_s11, %s6512_s11 }
  0xff   :  { %p5892_p7 = scmp.ne.s32.totalorder %s6512_s11, %s5891_s16  ;;  %p5897_p9 = scmp.lt.s32.totalorder %s5891_s16, %s5891_s16 }
 0x101   :  { %p5898_p10 = por %p5897_p9, %p5896_p8 }
 0x103   :  { %p5899_p11 = pnand %p5898_p10, %p5892_p7 }
 0x105   :  { %5902 = shalt.err (!%p5899_p11)
}
 0x106   :  { %140 = dma.hbm_to_vmem [thread:$0]  %s6290_s21, 512, %s6512_s11, [#allocation9], %s6233_s17, %s6233_s17, %s6234_s2  }
 0x107   :  { %s6245_s13 = smov [#allocation13]   ;;  %s6246_s18 = smov [#allocation16]  }
 0x108   :  { %s159_s12 = sshll.u32 %s6245_s13, 4  ;;  %s178_s22 = sshll.u32 %s6246_s18, 4  ;;  %s160_s12 = int_to_ptr.vmem [resolvable:$true] %s159_s12  ;;  %s6530_s22 = int_to_ptr.vmem [resolvable:$true] %s178_s22 }
 0x109   :  { %s5903_s9 = scalar_lea.hbm %s6300_s29, 16 }
 0x10a   :  { %p5904_p12 = scmp.ne.s32.totalorder %s6300_s29, %s5903_s9  ;;  %p5907_p13 = scmp.lt.u32.totalorder %s5903_s9, %s6300_s29 }
 0x10c   :  { %p5909_p0 = pnand %p5907_p13, %p5904_p12 }
 0x10e   :  { %5912 = shalt.err (!%p5909_p0)
}
 0x10f   :  { %s5913_s23 = scalar_lea.vmem %s160_s12, 16  ;;  %s5917_s26 = scalar_lea.vmem %s160_s12, 32 }
 0x110   :  { %p5914_p1 = scmp.ne.s32.totalorder %s160_s12, %s5913_s23  ;;  %p5918_p2 = scmp.lt.s32.totalorder %s160_s12, %s160_s12 }
 0x111   :  { %p5919_p3 = scmp.lt.s32.totalorder %s5917_s26, %s5913_s23 }
 0x113   :  { %p5920_p4 = por %p5919_p3, %p5918_p2 }
 0x115   :  { %p5921_p5 = pnand %p5920_p4, %p5914_p1 }
 0x117   :  { %5924 = shalt.err (!%p5921_p5)
}
 0x118   :  { %162 = dma.hbm_to_vmem [thread:$0]  %s6300_s29, 16, %s160_s12, [#allocation12]  }
 0x119   :  { %s5925_s21 = scalar_lea.hbm %s6310_s8, 512 }
 0x11a   :  { %p5926_p6 = scmp.ne.s32.totalorder %s6310_s8, %s5925_s21  ;;  %p5929_p7 = scmp.lt.u32.totalorder %s5925_s21, %s6310_s8 }
 0x11c   :  { %p5931_p8 = pnand %p5929_p7, %p5926_p6 }
 0x11e   :  { %5934 = shalt.err (!%p5931_p8)
}
 0x11f   :  { %s5935_s3 = scalar_lea.vmem %s6530_s22, 512  ;;  %p5940_p10 = scmp.lt.s32.totalorder %s6530_s22, %s6530_s22 }
 0x120   :  { %p5936_p9 = scmp.ne.s32.totalorder %s6530_s22, %s5935_s3  ;;  %p5941_p11 = scmp.lt.s32.totalorder %s5935_s3, %s5935_s3 }
 0x122   :  { %p5942_p12 = por %p5941_p11, %p5940_p10 }
 0x124   :  { %p5943_p13 = pnand %p5942_p12, %p5936_p9 }
 0x126   :  { %5946 = shalt.err (!%p5943_p13)
}
 0x127   :  { %s7138_s29 = sld [smem:[#allocation55_spill]]  ;;  %s6247_s27 = smov [#allocation19]  }
 0x128   :  { %184 = dma.hbm_to_vmem [thread:$0]  %s6310_s8, 512, %s6530_s22, [#allocation15], %s6233_s17, %s6233_s17, %s6234_s2  }
 0x129   :  { %s203_s28 = sshll.u32 %s6247_s27, 4  ;;  %s6248_s19 = smov [#allocation22]   ;;  %s204_s28 = int_to_ptr.vmem [resolvable:$true] %s203_s28 }
 0x12a   :  { %s224_s0 = sshll.u32 %s6248_s19, 4  ;;  %s6548_s0 = int_to_ptr.vmem [resolvable:$true] %s224_s0 }
 0x12d   :  { %s5947_s20 = scalar_lea.hbm %s7138_s29, 16 }
 0x12e   :  { %p5948_p0 = scmp.ne.s32.totalorder %s7138_s29, %s5947_s20  ;;  %p5951_p1 = scmp.lt.u32.totalorder %s5947_s20, %s7138_s29 }
 0x130   :  { %p5953_p2 = pnand %p5951_p1, %p5948_p0 }
 0x132   :  { %5956 = shalt.err (!%p5953_p2)
}
 0x133   :  { %s5957_s1 = scalar_lea.vmem %s204_s28, 16  ;;  %s5961_s10 = scalar_lea.vmem %s204_s28, 32 }
 0x134   :  { %p5958_p3 = scmp.ne.s32.totalorder %s204_s28, %s5957_s1  ;;  %p5962_p4 = scmp.lt.s32.totalorder %s204_s28, %s204_s28 }
 0x135   :  { %p5963_p5 = scmp.lt.s32.totalorder %s5961_s10, %s5957_s1 }
 0x137   :  { %p5964_p6 = por %p5963_p5, %p5962_p4 }
 0x139   :  { %p5965_p7 = pnand %p5964_p6, %p5958_p3 }
 0x13b   :  { %5968 = shalt.err (!%p5965_p7)
}
 0x13c   :  { %s7139_s8 = sld [smem:[#allocation56_spill]] }
 0x13d   :  { %206 = dma.hbm_to_vmem [thread:$0]  %s7138_s29, 16, %s204_s28, [#allocation18]  }
 0x142   :  { %s5969_s11 = scalar_lea.hbm %s7139_s8, 512 }
 0x143   :  { %p5970_p8 = scmp.ne.s32.totalorder %s7139_s8, %s5969_s11  ;;  %p5973_p9 = scmp.lt.u32.totalorder %s5969_s11, %s7139_s8 }
 0x145   :  { %p5975_p10 = pnand %p5973_p9, %p5970_p8 }
 0x147   :  { %5978 = shalt.err (!%p5975_p10)
}
 0x148   :  { %s5979_s15 = scalar_lea.vmem %s6548_s0, 512  ;;  %p5984_p12 = scmp.lt.s32.totalorder %s6548_s0, %s6548_s0 }
 0x149   :  { %p5980_p11 = scmp.ne.s32.totalorder %s6548_s0, %s5979_s15  ;;  %p5985_p13 = scmp.lt.s32.totalorder %s5979_s15, %s5979_s15 }
 0x14b   :  { %p5986_p0 = por %p5985_p13, %p5984_p12 }
 0x14d   :  { %p5987_p1 = pnand %p5986_p0, %p5980_p11 }
 0x14f   :  { %5990 = shalt.err (!%p5987_p1)
}
 0x150   :  { %s7140_s25 = sld [smem:[#allocation57_spill]]  ;;  %s6249_s30 = smov [#allocation25]  }
 0x151   :  { %230 = dma.hbm_to_vmem [thread:$0]  %s7139_s8, 512, %s6548_s0, [#allocation21], %s6233_s17, %s6233_s17, %s6234_s2  }
 0x152   :  { %s247_s5 = sshll.u32 %s6249_s30, 4  ;;  %s6250_s16 = smov [#allocation28]   ;;  %s248_s5 = int_to_ptr.vmem [resolvable:$true] %s247_s5 }
 0x153   :  { %s269_s13 = sshll.u32 %s6250_s16, 4  ;;  %s270_s13 = int_to_ptr.vmem [resolvable:$true] %s269_s13 }
 0x156   :  { %s5991_s12 = scalar_lea.hbm %s7140_s25, 16 }
 0x157   :  { %p5992_p2 = scmp.ne.s32.totalorder %s7140_s25, %s5991_s12  ;;  %p5995_p3 = scmp.lt.u32.totalorder %s5991_s12, %s7140_s25 }
 0x159   :  { %p5997_p4 = pnand %p5995_p3, %p5992_p2 }
 0x15b   :  { %6000 = shalt.err (!%p5997_p4)
}
 0x15c   :  { %s6001_s18 = scalar_lea.vmem %s248_s5, 16  ;;  %s6005_s22 = scalar_lea.vmem %s248_s5, 32 }
 0x15d   :  { %p6002_p5 = scmp.ne.s32.totalorder %s248_s5, %s6001_s18  ;;  %p6006_p6 = scmp.lt.s32.totalorder %s248_s5, %s248_s5 }
 0x15e   :  { %p6007_p7 = scmp.lt.s32.totalorder %s6005_s22, %s6001_s18 }
 0x160   :  { %p6008_p8 = por %p6007_p7, %p6006_p6 }
 0x162   :  { %p6009_p9 = pnand %p6008_p8, %p6002_p5 }
 0x164   :  { %6012 = shalt.err (!%p6009_p9)
}
 0x165   :  { %s7141_s9 = sld [smem:[#allocation58_spill]] }
 0x166   :  { %250 = dma.hbm_to_vmem [thread:$0]  %s7140_s25, 16, %s248_s5, [#allocation24]  }
 0x16b   :  { %s6013_s23 = scalar_lea.hbm %s7141_s9, 16 }
 0x16c   :  { %p6014_p10 = scmp.ne.s32.totalorder %s7141_s9, %s6013_s23  ;;  %p6017_p11 = scmp.lt.u32.totalorder %s6013_s23, %s7141_s9 }
 0x16e   :  { %p6019_p12 = pnand %p6017_p11, %p6014_p10 }
 0x170   :  { %6022 = shalt.err (!%p6019_p12)
}
 0x171   :  { %s6023_s26 = scalar_lea.vmem %s270_s13, 16  ;;  %s6027_s21 = scalar_lea.vmem %s270_s13, 32 }
 0x172   :  { %p6024_p13 = scmp.ne.s32.totalorder %s270_s13, %s6023_s26  ;;  %p6028_p0 = scmp.lt.s32.totalorder %s270_s13, %s270_s13 }
 0x173   :  { %p6029_p1 = scmp.lt.s32.totalorder %s6027_s21, %s6023_s26 }
 0x175   :  { %p6030_p2 = por %p6029_p1, %p6028_p0 }
 0x177   :  { %p6031_p3 = pnand %p6030_p2, %p6024_p13 }
 0x179   :  { %6034 = shalt.err (!%p6031_p3)
}
 0x17a   :  { %s7142_s3 = sld [smem:[#allocation61_spill]]  ;;  %s6251_s29 = smov [#allocation31]  }
 0x17b   :  { %272 = dma.hbm_to_vmem [thread:$0]  %s7141_s9, 16, %s270_s13, [#allocation27]  }
 0x17c   :  { %s294_s27 = sshll.u32 %s6251_s29, 4  ;;  %s6252_s28 = smov [#allocation32]   ;;  %s295_s27 = int_to_ptr.vmem [resolvable:$true] %s294_s27 }
 0x17d   :  { %s315_s19 = sshll.u32 %s6252_s28, 4  ;;  %s316_s19 = int_to_ptr.vmem [resolvable:$true] %s315_s19 }
 0x180   :  { %s6035_s0 = scalar_lea.hbm %s7142_s3, 512 }
 0x181   :  { %p6036_p4 = scmp.ne.s32.totalorder %s7142_s3, %s6035_s0  ;;  %p6039_p5 = scmp.lt.u32.totalorder %s6035_s0, %s7142_s3 }
 0x183   :  { %p6041_p6 = pnand %p6039_p5, %p6036_p4 }
 0x185   :  { %6044 = shalt.err (!%p6041_p6)
}
 0x186   :  { %s6045_s20 = scalar_lea.vmem %s295_s27, 512  ;;  %p6050_p8 = scmp.lt.s32.totalorder %s295_s27, %s295_s27 }
 0x187   :  { %p6046_p7 = scmp.ne.s32.totalorder %s295_s27, %s6045_s20  ;;  %p6051_p9 = scmp.lt.s32.totalorder %s6045_s20, %s6045_s20 }
 0x189   :  { %p6052_p10 = por %p6051_p9, %p6050_p8 }
 0x18b   :  { %p6053_p11 = pnand %p6052_p10, %p6046_p7 }
 0x18d   :  { %6056 = shalt.err (!%p6053_p11)
}
 0x18e   :  { %s7143_s1 = sld [smem:[#allocation66_spill]] }
 0x18f   :  { %300 = dma.hbm_to_vmem [thread:$0]  %s7142_s3, 512, %s295_s27, [#allocation30], %s6233_s17, %s6233_s17, %s6234_s2  }
 0x194   :  { %s6057_s10 = scalar_lea.hbm %s7143_s1, 16 }
 0x195   :  { %p6058_p12 = scmp.ne.s32.totalorder %s7143_s1, %s6057_s10  ;;  %p6061_p13 = scmp.lt.u32.totalorder %s6057_s10, %s7143_s1 }
 0x197   :  { %p6063_p0 = pnand %p6061_p13, %p6058_p12 }
 0x199   :  { %6066 = shalt.err (!%p6063_p0)
}
 0x19a   :  { %s6067_s8 = scalar_lea.vmem %s316_s19, 16  ;;  %s6071_s11 = scalar_lea.vmem %s316_s19, 32 }
 0x19b   :  { %p6068_p1 = scmp.ne.s32.totalorder %s316_s19, %s6067_s8  ;;  %p6072_p2 = scmp.lt.s32.totalorder %s316_s19, %s316_s19 }
 0x19c   :  { %p6073_p3 = scmp.lt.s32.totalorder %s6071_s11, %s6067_s8 }
 0x19e   :  { %p6074_p4 = por %p6073_p3, %p6072_p2 }
 0x1a0   :  { %p6075_p5 = pnand %p6074_p4, %p6068_p1 }
 0x1a2   :  { %6078 = shalt.err (!%p6075_p5)
}
 0x1a3   :  { %318 = dma.hbm_to_vmem [thread:$0]  %s7143_s1, 16, %s316_s19, [#allocation33]  }
 0x1a4   :  { %6167 = dma.done.wait [#allocation3], 128  }
 0x1a5   :  { %6168 = vsyncadd [#allocation3], 4294967168 }
 0x1a6   :  { %6169 = dma.done.wait [#allocation6], 400  }
 0x1a7   :  { %6170 = vsyncadd [#allocation6], 4294966896 }
 0x1a8   :  { %6171 = dma.done.wait [#allocation9], 528  }
 0x1a9   :  { %6172 = vsyncadd [#allocation9], 4294966768 }
 0x1aa   :  { %6173 = dma.done.wait [#allocation12], 528  }
 0x1ab   :  { %6174 = vsyncadd [#allocation12], 4294966768 }
 0x1ac   :  { %6175 = dma.done.wait [#allocation15], 528  }
 0x1ad   :  { %6176 = vsyncadd [#allocation15], 4294966768 }
 0x1ae   :  { %6177 = dma.done.wait [#allocation18], 32  }
 0x1af   :  { %6178 = vsyncadd [#allocation18], 4294967264 }
 0x1b0   :  { %6179 = dma.done.wait [#allocation21], 1024  }
 0x1b1   :  { %6180 = vsyncadd [#allocation21], 4294966272 }
 0x1b2   :  { %6181 = dma.done.wait [#allocation24], 32  }
 0x1b3   :  { %6182 = vsyncadd [#allocation24], 4294967264 }
 0x1b4   :  { %6183 = dma.done.wait [#allocation27], 528  }
 0x1b5   :  { %6184 = vsyncadd [#allocation27], 4294966768 }
 0x1b6   :  { %6185 = dma.done.wait [#allocation30], 560  }
 0x1b7   :  { %6186 = vsyncadd [#allocation30], 4294966736 }
 0x1b8   :  { %6187 = dma.done.wait [#allocation33], 16  }
 0x1b9   :  { %6188 = vsyncadd [#allocation33], 4294967280  ;;  %v6253_v0 = vmov 0.0|0.0   ;;  %vm6254_vm0 = vmmov 0   ;;  %v6255_v1 = vmov 0.0   ;;  %v383_v2 = vld [vmem:[#allocation10] sm:$0xff] }
 0x1ba   :  { %5188 = vmatprep.subr.bf16.mxu0 %v6253_v0  ;;  %5194 = vmatprep.subr.bf16.mxu1 %v6253_v0  ;;  %v384_v3 = vld [vmem:[#allocation10 + $0x8] sm:$0xff]  ;;  %v387_v4 = vld [vmem:[#allocation11] sm:$0xff]  ;;  %v385_v7 = vld [vmem:[#allocation10 + $0x10] sm:$0xff]  ;;  %vm394_vm1 = vcmask 261120   ;;  %s6256_s17 = smov 96   ;;  %s7144_s2 = sld [smem:[#allocation54_spill]] }
 0x1bb   :  { %4706 = vmatprep.mubr.msk.f32.mxu0 %vm6254_vm0, %v6255_v1  ;;  %4717 = vmatprep.mubr.msk.f32.mxu1 %vm6254_vm0, %v6255_v1  ;;  %v6591_v5 = vpack.c.bf16 %v384_v3, %v383_v2  ;;  %v388_v6 = vld [vmem:[#allocation11 + $0x8] sm:$0xff]  ;;  %v386_v8 = vld [vmem:[#allocation10 + $0x18] sm:$0xff]  ;;  %v389_v10 = vld [vmem:[#allocation11 + $0x10] sm:$0xff]  ;;  %vm3064_vm2 = vcmask 253952   ;;  %s6257_s15 = smov 32   ;;  %s7145_s25 = sld [smem:[#allocation59_spill]] }
 0x1bc   :  { %v6593_v9 = vpack.c.bf16 %v388_v6, %v387_v4  ;;  %v390_v11 = vld [vmem:[#allocation11 + $0x18] sm:$0xff]  ;;  %v6596_v12 = vpack.c.bf16 %v386_v8, %v385_v7  ;;  %v6621_v15 = vld [vmem:[#allocation14] sm:$0x1]  ;;  %v6625_v21 = vld [vmem:[#allocation13] sm:$0x1]  ;;  %vm3278_vm3 = vcmask 1040384  }
 0x1bd   :  { %5190 = vmatpush3.bf16.msra.mxu0 %v6591_v5  ;;  %v6600_v13 = vpack.c.bf16 %v390_v11, %v389_v10  ;;  %v393_v14 = vld [vmem:[#allocation2] sm:$0x1]  ;;  %v568_v33 = vld [vmem:[#allocation2 + $0x1] sm:$0x1]  ;;  %v744_v56 = vld [vmem:[#allocation2 + $0x2] sm:$0x1] }
 0x1be   :  { %5196 = vmatpush3.bf16.msra.mxu1 %v6593_v9  ;;  %5191 = vmatprep.subr.bf16.mxu0 %v6253_v0  ;;  %vm3274_vm12 = vcmask 7168   ;;  %s7147_s30 = sld [smem:[#allocation63_spill]]  ;;  %vm3070_vm13 = vcmask 257024   ;;  %s7148_s5 = sld [smem:[#allocation65_spill]]  ;;  %vm4045_vm14 = vcmask 785408   ;;  %vm4135_vm15 = vcmask 523264  }
 0x1bf   :  { %5197 = vmatprep.subr.bf16.mxu1 %v6253_v0  ;;  %s7149_s16 = sld [smem:[#allocation62_spill]]  ;;  %s7150_s13 = sld [smem:[#allocation64_spill]] }
 0x1c0   :  { %s7151_s12 = sld [smem:[#allocation67_spill]]  ;;  %s6258_s18 = smov [#allocation35]  }
 0x1c1   :  { %5193 = vmatpush3.bf16.msra.mxu0 %v6596_v12  ;;  %s4311_s22 = sshll.u32 %s6258_s18, 4  ;;  %s4312_s22 = int_to_ptr.vmem [resolvable:$true] %s4311_s22 }
 0x1c2   :  { %5199 = vmatpush3.bf16.msra.mxu1 %v6600_v13  ;;  %5200 = vmatprep.subr.bf16.mxu0 %v6253_v0  ;;  %s6079_s9 = scalar_lea.vmem %s4312_s22, 16  ;;  %s6083_s23 = scalar_lea.vmem %s4312_s22, 32 }
 0x1c3   :  { %5206 = vmatprep.subr.bf16.mxu1 %v6253_v0  ;;  %p6080_p6 = scmp.ne.s32.totalorder %s4312_s22, %s6079_s9  ;;  %p6084_p7 = scmp.lt.s32.totalorder %s4312_s22, %s4312_s22 }
 0x1c4   :  { %4707 = vmatmul.mubr.msk.f32.vlgmr.msra.gmra.mrb[0].mxu0 %vm394_vm1, %v393_v14  ;;  %p6085_p8 = scmp.lt.s32.totalorder %s6083_s23, %s6079_s9 }
 0x1c5   :  { %4718 = vmatmul.mubr.f32.vlgmr.msra.gmra.mrb[0].mxu1 %v6255_v1  ;;  %5202 = vmatpush3.bf16.msra.mxu0 %v6591_v5 }
 0x1c6   :  { %5208 = vmatpush3.bf16.msra.mxu1 %v6593_v9  ;;  %5203 = vmatprep.subr.bf16.mxu0 %v6253_v0  ;;  %p6086_p9 = por %p6085_p8, %p6084_p7 }
 0x1c7   :  { %5209 = vmatprep.subr.bf16.mxu1 %v6253_v0  ;;  %4728 = vmatprep.mubr.msk.f32.mxu0 %vm6254_vm0, %v6255_v1 }
 0x1c8   :  { %4739 = vmatprep.mubr.msk.f32.mxu1 %vm6254_vm0, %v6255_v1  ;;  %p6087_p10 = pnand %p6086_p9, %p6080_p6 }
 0x1c9   :  { %5205 = vmatpush3.bf16.msra.mxu0 %v6596_v12 }
 0x1ca   :  { %5211 = vmatpush3.bf16.msra.mxu1 %v6600_v13  ;;  %5212 = vmatprep.subr.bf16.mxu0 %v6253_v0 }
 0x1cb   :  { %5218 = vmatprep.subr.bf16.mxu1 %v6253_v0 }
 0x1cc   :  { %4729 = vmatmul.mubr.msk.f32.vlgmr.msra.gmra.mrb[2].mxu0 %vm394_vm1, %v568_v33 }
 0x1cd   :  { %5214 = vmatpush3.bf16.msra.mxu0 %v6591_v5  ;;  %4750 = vmatprep.mubr.msk.f32.mxu0 %vm6254_vm0, %v6255_v1 }
 0x1ce   :  { %5215 = vmatprep.subr.bf16.mxu0 %v6253_v0 }
 0x1d1   :  { %5217 = vmatpush3.bf16.msra.mxu0 %v6596_v12 }
 0x1d2   :  { %5224 = vmatprep.subr.bf16.mxu0 %v6253_v0 }
 0x1d4   :  { %4751 = vmatmul.mubr.msk.f32.vlgmr.msra.gmra.mrb[4].mxu0 %vm394_vm1, %v744_v56 }
 0x1d5   :  { %5226 = vmatpush3.bf16.msra.mxu0 %v6591_v5  ;;  %4772 = vmatprep.mubr.msk.f32.mxu0 %vm6254_vm0, %v6255_v1 }
 0x1d6   :  { %5227 = vmatprep.subr.bf16.mxu0 %v6253_v0 }
 0x1d9   :  { %5229 = vmatpush3.bf16.msra.mxu0 %v6596_v12 }
 0x1da   :  { %5236 = vmatprep.subr.bf16.mxu0 %v6253_v0 }
 0x297   :  { %v464_v16 = vpop.f32.mrb[0].mxu0 }
 0x298   :  { %v537_v17 = vpop.f32.mrb[0].mxu1  ;;  %v4708_v18 = vpop.f32.mrb[1].mxu0  ;;  %v465_v22 = vadd.f32 %v464_v16, %v6625_v21 }
 0x299   :  { %v538_v19 = vadd.f32 %v537_v17, %v6621_v15  ;;  %v4719_v20 = vpop.f32.mrb[1].mxu1 }
 0x29b   :  { %549 = vrot.lane.b32.xlu0 %v538_v19, %s6228_s7  ;;  %v541_v23 = vadd.f32 %v538_v19, %v465_v22 }
 0x29d   :  { %v4394_v24 = vmul.f32 -1.442695, %v541_v23  ;;  %v920_v23 = vld [vmem:[#allocation2 + $0x3] sm:$0x1] }
 0x29e   :  { %4773 = vmatmul.mubr.msk.f32.vlgmr.msra.gmra.mrb[6].mxu0 %vm394_vm1, %v920_v23 }
 0x29f   :  { %5523 = vpow2.f32 %v4394_v24  ;;  %v638_v40 = vpop.f32.mrb[2].mxu0  ;;  %5238 = vmatpush3.bf16.msra.mxu0 %v6591_v5  ;;  %4794 = vmatprep.mubr.msk.f32.mxu0 %vm6254_vm0, %v6255_v1 }
 0x2a0   :  { %v4730_v41 = vpop.f32.mrb[3].mxu0  ;;  %v639_v45 = vadd.f32 %v638_v40, %v6625_v21  ;;  %5239 = vmatprep.subr.bf16.mxu0 %v6253_v0 }
 0x2a3   :  { %5241 = vmatpush3.bf16.msra.mxu0 %v6596_v12 }
 0x2a4   :  { %5248 = vmatprep.subr.bf16.mxu0 %v6253_v0 }
 0x2a7   :  { %v814_v63 = vpop.f32.mrb[4].mxu0 }
 0x2a8   :  { %v4752_v2 = vpop.f32.mrb[5].mxu0  ;;  %v815_v7 = vadd.f32 %v814_v63, %v6625_v21 }
 0x2a9   :  { %v5524_v25 = vpop.eup %5523 }
 0x2aa   :  { %v545_v26 = vadd.f32 1.0, %v5524_v25 }
 0x2ac   :  { %5525 = vrcp.f32 %v545_v26 }
 0x2b6   :  { %v5526_v27 = vpop.eup %5525 }
 0x2b7   :  { %v559_v34 = vsub.f32 1.0, %v5526_v27  ;;  %v565_v36 = vmul.f32 0.0, %v5526_v27 }
 0x30d   :  { %v550_v28 = vpop.permute.xlu0 %549 }
 0x30e   :  { %v552_v29 = vmul.f32 %v5526_v27, %v550_v28 }
 0x310   :  { %554 = vrot.lane.b32.xlu0 %v552_v29, %s6228_s7 }
 0x382   :  { %v555_v30 = vpop.permute.xlu0 %554 }
 0x383   :  { %v557_v31 = vadd.f32 %v555_v30, %v465_v22  ;;  %v990_v30 = vpop.f32.mrb[6].mxu0 }
 0x385   :  { %5527 = vtanh.f32 %v557_v31  ;;  %v4774_v31 = vpop.f32.mrb[7].mxu0 }
 0x38f   :  { %v5528_v32 = vpop.eup %5527 }
 0x390   :  { %561 = vrot.lane.b32.xlu1 %v5528_v32, %s6256_s17 }
 0x402   :  { %v562_v35 = vpop.permute.xlu1 %561 }
 0x403   :  { %v564_v37 = vmul.f32 %v562_v35, %v559_v34  ;;  %v991_v35 = vadd.f32 %v990_v30, %v6625_v21 }
 0x405   :  { %v566_v38 = vadd.f32 %v565_v36, %v564_v37 }
 0x407   :  { %643 = vrot.lane.b32.xlu1 %v566_v38, %s6256_s17 }
 0x479   :  { %v644_v39 = vpop.permute.xlu1 %643 }
 0x47a   :  { %4740 = vmatmul.mubr.msk.f32.vlgmr.msra.gmra.mrb[2].mxu1 %vm394_vm1, %v644_v39 }
 0x47b   :  { %5220 = vmatpush3.bf16.msra.mxu1 %v6593_v9  ;;  %4761 = vmatprep.mubr.msk.f32.mxu1 %vm6254_vm0, %v6255_v1 }
 0x47c   :  { %5221 = vmatprep.subr.bf16.mxu1 %v6253_v0 }
 0x47f   :  { %5223 = vmatpush3.bf16.msra.mxu1 %v6600_v13 }
 0x480   :  { %5230 = vmatprep.subr.bf16.mxu1 %v6253_v0 }
 0x54d   :  { %v713_v42 = vpop.f32.mrb[2].mxu1 }
 0x54e   :  { %v714_v43 = vadd.f32 %v713_v42, %v6621_v15  ;;  %v4741_v44 = vpop.f32.mrb[3].mxu1 }
 0x550   :  { %725 = vrot.lane.b32.xlu0 %v714_v43, %s6228_s7  ;;  %v717_v46 = vadd.f32 %v714_v43, %v639_v45 }
 0x552   :  { %v4397_v47 = vmul.f32 -1.442695, %v717_v46  ;;  %v1096_v46 = vld [vmem:[#allocation2 + $0x4] sm:$0x1] }
 0x553   :  { %4795 = vmatmul.mubr.msk.f32.vlgmr.msra.gmra.mrb[8].mxu0 %vm394_vm1, %v1096_v46 }
 0x554   :  { %5529 = vpow2.f32 %v4397_v47  ;;  %5250 = vmatpush3.bf16.msra.mxu0 %v6591_v5  ;;  %4816 = vmatprep.mubr.msk.f32.mxu0 %vm6254_vm0, %v6255_v1 }
 0x555   :  { %5251 = vmatprep.subr.bf16.mxu0 %v6253_v0 }
 0x558   :  { %5253 = vmatpush3.bf16.msra.mxu0 %v6596_v12 }
 0x559   :  { %5260 = vmatprep.subr.bf16.mxu0 %v6253_v0 }
 0x55e   :  { %v5530_v48 = vpop.eup %5529 }
 0x55f   :  { %v721_v49 = vadd.f32 1.0, %v5530_v48 }
 0x561   :  { %5531 = vrcp.f32 %v721_v49 }
 0x56b   :  { %v5532_v50 = vpop.eup %5531 }
 0x56c   :  { %v735_v57 = vsub.f32 1.0, %v5532_v50  ;;  %v741_v59 = vmul.f32 %v5532_v50, %v566_v38 }
 0x5c2   :  { %v726_v51 = vpop.permute.xlu0 %725 }
 0x5c3   :  { %v728_v52 = vmul.f32 %v5532_v50, %v726_v51 }
 0x5c5   :  { %730 = vrot.lane.b32.xlu1 %v728_v52, %s6228_s7 }
 0x637   :  { %v731_v53 = vpop.permute.xlu1 %730 }
 0x638   :  { %v733_v54 = vadd.f32 %v731_v53, %v639_v45  ;;  %v1166_v53 = vpop.f32.mrb[8].mxu0 }
 0x63a   :  { %5533 = vtanh.f32 %v733_v54  ;;  %v4796_v54 = vpop.f32.mrb[9].mxu0 }
 0x644   :  { %v5534_v55 = vpop.eup %5533 }
 0x645   :  { %737 = vrot.lane.b32.xlu0 %v5534_v55, %s6256_s17 }
 0x6b7   :  { %v738_v58 = vpop.permute.xlu0 %737 }
 0x6b8   :  { %v740_v60 = vmul.f32 %v738_v58, %v735_v57  ;;  %v1167_v58 = vadd.f32 %v1166_v53, %v6625_v21 }
 0x6ba   :  { %v742_v61 = vadd.f32 %v741_v59, %v740_v60 }
 0x6bc   :  { %819 = vrot.lane.b32.xlu1 %v742_v61, %s6256_s17 }
 0x72e   :  { %v820_v62 = vpop.permute.xlu1 %819 }
 0x72f   :  { %4762 = vmatmul.mubr.msk.f32.vlgmr.msra.gmra.mrb[4].mxu1 %vm394_vm1, %v820_v62 }
 0x730   :  { %5232 = vmatpush3.bf16.msra.mxu1 %v6593_v9  ;;  %4783 = vmatprep.mubr.msk.f32.mxu1 %vm6254_vm0, %v6255_v1 }
 0x731   :  { %5233 = vmatprep.subr.bf16.mxu1 %v6253_v0 }
 0x734   :  { %5235 = vmatpush3.bf16.msra.mxu1 %v6600_v13 }
 0x735   :  { %5242 = vmatprep.subr.bf16.mxu1 %v6253_v0 }
 0x802   :  { %v889_v3 = vpop.f32.mrb[4].mxu1 }
 0x803   :  { %v890_v4 = vadd.f32 %v889_v3, %v6621_v15  ;;  %v4763_v6 = vpop.f32.mrb[5].mxu1 }
 0x805   :  { %901 = vrot.lane.b32.xlu0 %v890_v4, %s6228_s7  ;;  %v893_v8 = vadd.f32 %v890_v4, %v815_v7 }
 0x807   :  { %v4400_v10 = vmul.f32 -1.442695, %v893_v8  ;;  %v1272_v8 = vld [vmem:[#allocation2 + $0x5] sm:$0x1] }
 0x808   :  { %4817 = vmatmul.mubr.msk.f32.vlgmr.msra.gmra.mrb[10].mxu0 %vm394_vm1, %v1272_v8  ;;  %v1804_v8 = vld [vmem:[%s7144_s2 + $0x8] sm:$0xff] }
 0x809   :  { %5535 = vpow2.f32 %v4400_v10  ;;  %5262 = vmatpush3.bf16.msra.mxu0 %v6591_v5  ;;  %4838 = vmatprep.mubr.msk.f32.mxu0 %vm6254_vm0, %v6255_v1 }
 0x80a   :  { %5263 = vmatprep.subr.bf16.mxu0 %v6253_v0 }
 0x80d   :  { %5265 = vmatpush3.bf16.msra.mxu0 %v6596_v12 }
 0x80e   :  { %5272 = vmatprep.subr.bf16.mxu0 %v6253_v0 }
 0x813   :  { %v5536_v11 = vpop.eup %5535 }
 0x814   :  { %v897_v14 = vadd.f32 1.0, %v5536_v11 }
 0x816   :  { %5537 = vrcp.f32 %v897_v14 }
 0x820   :  { %v5538_v16 = vpop.eup %5537 }
 0x821   :  { %v911_v24 = vsub.f32 1.0, %v5538_v16  ;;  %v917_v26 = vmul.f32 %v5538_v16, %v742_v61 }
 0x877   :  { %v902_v17 = vpop.permute.xlu0 %901 }
 0x878   :  { %v904_v18 = vmul.f32 %v5538_v16, %v902_v17 }
 0x87a   :  { %906 = vrot.lane.b32.xlu1 %v904_v18, %s6228_s7 }
 0x8ec   :  { %v907_v19 = vpop.permute.xlu1 %906 }
 0x8ed   :  { %v909_v20 = vadd.f32 %v907_v19, %v815_v7  ;;  %v1342_v19 = vpop.f32.mrb[10].mxu0 }
 0x8ef   :  { %5539 = vtanh.f32 %v909_v20  ;;  %v4818_v20 = vpop.f32.mrb[11].mxu0 }
 0x8f9   :  { %v5540_v22 = vpop.eup %5539 }
 0x8fa   :  { %913 = vrot.lane.b32.xlu0 %v5540_v22, %s6256_s17 }
 0x96c   :  { %v914_v25 = vpop.permute.xlu0 %913 }
 0x96d   :  { %v916_v27 = vmul.f32 %v914_v25, %v911_v24  ;;  %v1343_v25 = vadd.f32 %v1342_v19, %v6625_v21 }
 0x96f   :  { %v918_v28 = vadd.f32 %v917_v26, %v916_v27 }
 0x971   :  { %995 = vrot.lane.b32.xlu1 %v918_v28, %s6256_s17 }
 0x9e3   :  { %v996_v29 = vpop.permute.xlu1 %995 }
 0x9e4   :  { %4784 = vmatmul.mubr.msk.f32.vlgmr.msra.gmra.mrb[6].mxu1 %vm394_vm1, %v996_v29 }
 0x9e5   :  { %5244 = vmatpush3.bf16.msra.mxu1 %v6593_v9  ;;  %4805 = vmatprep.mubr.msk.f32.mxu1 %vm6254_vm0, %v6255_v1 }
 0x9e6   :  { %5245 = vmatprep.subr.bf16.mxu1 %v6253_v0 }
 0x9e9   :  { %5247 = vmatpush3.bf16.msra.mxu1 %v6600_v13 }
 0x9ea   :  { %5254 = vmatprep.subr.bf16.mxu1 %v6253_v0 }
 0xab7   :  { %v1065_v32 = vpop.f32.mrb[6].mxu1 }
 0xab8   :  { %v1066_v33 = vadd.f32 %v1065_v32, %v6621_v15  ;;  %v4785_v34 = vpop.f32.mrb[7].mxu1 }
 0xaba   :  { %1077 = vrot.lane.b32.xlu0 %v1066_v33, %s6228_s7  ;;  %v1069_v36 = vadd.f32 %v1066_v33, %v991_v35 }
 0xabc   :  { %v4403_v37 = vmul.f32 -1.442695, %v1069_v36  ;;  %v1448_v36 = vld [vmem:[#allocation2 + $0x6] sm:$0x1] }
 0xabd   :  { %4839 = vmatmul.mubr.msk.f32.vlgmr.msra.gmra.mrb[12].mxu0 %vm394_vm1, %v1448_v36 }
 0xabe   :  { %5541 = vpow2.f32 %v4403_v37  ;;  %5274 = vmatpush3.bf16.msra.mxu0 %v6591_v5  ;;  %4860 = vmatprep.mubr.msk.f32.mxu0 %vm6254_vm0, %v6255_v1 }
 0xabf   :  { %5275 = vmatprep.subr.bf16.mxu0 %v6253_v0 }
 0xac2   :  { %5277 = vmatpush3.bf16.msra.mxu0 %v6596_v12 }
 0xac3   :  { %5284 = vmatprep.subr.bf16.mxu0 %v6253_v0 }
 0xac8   :  { %v5542_v38 = vpop.eup %5541 }
 0xac9   :  { %v1073_v39 = vadd.f32 1.0, %v5542_v38 }
 0xacb   :  { %5543 = vrcp.f32 %v1073_v39 }
 0xad5   :  { %v5544_v40 = vpop.eup %5543 }
 0xad6   :  { %v1087_v47 = vsub.f32 1.0, %v5544_v40  ;;  %v1093_v49 = vmul.f32 %v5544_v40, %v918_v28 }
 0xb2c   :  { %v1078_v41 = vpop.permute.xlu0 %1077 }
 0xb2d   :  { %v1080_v42 = vmul.f32 %v5544_v40, %v1078_v41 }
 0xb2f   :  { %1082 = vrot.lane.b32.xlu1 %v1080_v42, %s6228_s7 }
 0xb90   :  { %v1518_v5 = vpop.f32.mrb[12].mxu0 }
 0xb91   :  { %v4840_v12 = vpop.f32.mrb[13].mxu0  ;;  %v1519_v46 = vadd.f32 %v1518_v5, %v6625_v21 }
 0xba1   :  { %v1083_v43 = vpop.permute.xlu1 %1082 }
 0xba2   :  { %v1085_v44 = vadd.f32 %v1083_v43, %v991_v35 }
 0xba4   :  { %5545 = vtanh.f32 %v1085_v44 }
 0xbae   :  { %v5546_v45 = vpop.eup %5545 }
 0xbaf   :  { %1089 = vrot.lane.b32.xlu0 %v5546_v45, %s6256_s17 }
 0xc21   :  { %v1090_v48 = vpop.permute.xlu0 %1089 }
 0xc22   :  { %v1092_v50 = vmul.f32 %v1090_v48, %v1087_v47 }
 0xc24   :  { %v1094_v51 = vadd.f32 %v1093_v49, %v1092_v50 }
 0xc26   :  { %1171 = vrot.lane.b32.xlu1 %v1094_v51, %s6256_s17 }
 0xc98   :  { %v1172_v52 = vpop.permute.xlu1 %1171 }
 0xc99   :  { %4806 = vmatmul.mubr.msk.f32.vlgmr.msra.gmra.mrb[8].mxu1 %vm394_vm1, %v1172_v52 }
 0xc9a   :  { %5256 = vmatpush3.bf16.msra.mxu1 %v6593_v9  ;;  %4827 = vmatprep.mubr.msk.f32.mxu1 %vm6254_vm0, %v6255_v1 }
 0xc9b   :  { %5257 = vmatprep.subr.bf16.mxu1 %v6253_v0 }
 0xc9e   :  { %5259 = vmatpush3.bf16.msra.mxu1 %v6600_v13 }
 0xc9f   :  { %5266 = vmatprep.subr.bf16.mxu1 %v6253_v0 }
 0xd6c   :  { %v1241_v55 = vpop.f32.mrb[8].mxu1 }
 0xd6d   :  { %v1242_v56 = vadd.f32 %v1241_v55, %v6621_v15  ;;  %v4807_v57 = vpop.f32.mrb[9].mxu1  ;;  %v1799_v55 = vld [vmem:[#allocation16] sm:$0xff] }
 0xd6f   :  { %1253 = vrot.lane.b32.xlu0 %v1242_v56, %s6228_s7  ;;  %v1245_v59 = vadd.f32 %v1242_v56, %v1167_v58  ;;  %v1800_v56 = vld [vmem:[#allocation16 + $0x8] sm:$0xff] }
 0xd70   :  { %v6750_v57 = vpack.c.bf16 %v1800_v56, %v1799_v55 }
 0xd71   :  { %v4406_v60 = vmul.f32 -1.442695, %v1245_v59  ;;  %v1801_v59 = vld [vmem:[#allocation16 + $0x10] sm:$0xff] }
 0xd73   :  { %5547 = vpow2.f32 %v4406_v60  ;;  %v1802_v60 = vld [vmem:[#allocation16 + $0x18] sm:$0xff] }
 0xd7d   :  { %v5548_v61 = vpop.eup %5547 }
 0xd7e   :  { %v1249_v62 = vadd.f32 1.0, %v5548_v61  ;;  %v6757_v61 = vpack.c.bf16 %v1802_v60, %v1801_v59 }
 0xd80   :  { %5549 = vrcp.f32 %v1249_v62  ;;  %v1809_v62 = vld [vmem:[#allocation5] sm:$0xf] }
 0xd8a   :  { %v5550_v63 = vpop.eup %5549 }
 0xd8b   :  { %v1263_v10 = vsub.f32 1.0, %v5550_v63  ;;  %v1269_v14 = vmul.f32 %v5550_v63, %v1094_v51 }
 0xde1   :  { %v1254_v2 = vpop.permute.xlu0 %1253 }
 0xde2   :  { %v1256_v3 = vmul.f32 %v5550_v63, %v1254_v2 }
 0xde4   :  { %1258 = vrot.lane.b32.xlu1 %v1256_v3, %s6228_s7 }
 0xe56   :  { %v1259_v4 = vpop.permute.xlu1 %1258 }
 0xe57   :  { %v1261_v6 = vadd.f32 %v1259_v4, %v1167_v58  ;;  %v1624_v58 = vld [vmem:[#allocation2 + $0x7] sm:$0x1] }
 0xe58   :  { %4861 = vmatmul.mubr.msk.f32.vlgmr.msra.gmra.mrb[14].mxu0 %vm394_vm1, %v1624_v58 }
 0xe59   :  { %5551 = vtanh.f32 %v1261_v6  ;;  %5286 = vmatpush3.bf16.msra.mxu0 %v6750_v57  ;;  %4882 = vmatprep.mubr.msk.f32.mxu0 %vm6254_vm0, %v6255_v1 }
 0xe5a   :  { %5287 = vmatprep.subr.bf16.mxu0 %v6253_v0 }
 0xe5d   :  { %5289 = vmatpush3.bf16.msra.mxu0 %v6757_v61 }
 0xe5e   :  { %5296 = vmatprep.subr.bf16.mxu0 %v6253_v0 }
 0xe60   :  { %4883 = vmatmul.mubr.msk.f32.vlgmr.msra.gmra.mrb[16].mxu0 %vm394_vm1, %v1809_v62  ;;  %v2168_v62 = vld [vmem:[#allocation5 + $0x8] sm:$0xf] }
 0xe61   :  { %5298 = vmatpush3.bf16.msra.mxu0 %v6750_v57  ;;  %4904 = vmatprep.mubr.msk.f32.mxu0 %vm6254_vm0, %v6255_v1 }
 0xe62   :  { %5299 = vmatprep.subr.bf16.mxu0 %v6253_v0 }
 0xe63   :  { %v5552_v7 = vpop.eup %5551 }
 0xe64   :  { %1265 = vrot.lane.b32.xlu0 %v5552_v7, %s6256_s17  ;;  %v1803_v7 = vld [vmem:[%s7144_s2] sm:$0xff] }
 0xe65   :  { %5301 = vmatpush3.bf16.msra.mxu0 %v6757_v61 }
 0xe66   :  { %5308 = vmatprep.subr.bf16.mxu0 %v6253_v0 }
 0xed6   :  { %v1266_v11 = vpop.permute.xlu0 %1265 }
 0xed7   :  { %v1268_v16 = vmul.f32 %v1266_v11, %v1263_v10  ;;  %v6774_v10 = vpack.c.bf16 %v1804_v8, %v1803_v7  ;;  %v1805_v11 = vld [vmem:[%s7144_s2 + $0x10] sm:$0xff] }
 0xed9   :  { %v1270_v17 = vadd.f32 %v1269_v14, %v1268_v16  ;;  %v1806_v14 = vld [vmem:[%s7144_s2 + $0x18] sm:$0xff] }
 0xedb   :  { %1347 = vrot.lane.b32.xlu1 %v1270_v17, %s6256_s17 }
 0xf4d   :  { %v1348_v18 = vpop.permute.xlu1 %1347 }
 0xf4e   :  { %4828 = vmatmul.mubr.msk.f32.vlgmr.msra.gmra.mrb[10].mxu1 %vm394_vm1, %v1348_v18  ;;  %v6794_v18 = vpop.f32.mrb[14].mxu0 }
 0xf4f   :  { %5268 = vmatpush3.bf16.msra.mxu1 %v6593_v9  ;;  %4849 = vmatprep.mubr.msk.f32.mxu1 %vm6254_vm0, %v6255_v1  ;;  %v4862_v19 = vpop.f32.mrb[15].mxu0 }
 0xf50   :  { %5269 = vmatprep.subr.bf16.mxu1 %v6253_v0  ;;  %v1885_v20 = vpop.f32.mrb[16].mxu0 }
 0xf53   :  { %5271 = vmatpush3.bf16.msra.mxu1 %v6600_v13 }
 0xf54   :  { %5278 = vmatprep.subr.bf16.mxu1 %v6253_v0 }
0x1021   :  { %v1417_v22 = vpop.f32.mrb[10].mxu1 }
0x1022   :  { %v1418_v23 = vadd.f32 %v1417_v22, %v6621_v15  ;;  %v4829_v24 = vpop.f32.mrb[11].mxu1  ;;  %v4884_v22 = vpop.f32.mrb[17].mxu0 }
0x1024   :  { %1429 = vrot.lane.b32.xlu0 %v1418_v23, %s6228_s7  ;;  %v1421_v26 = vadd.f32 %v1418_v23, %v1343_v25 }
0x1026   :  { %v4409_v27 = vmul.f32 -1.442695, %v1421_v26 }
0x1028   :  { %5553 = vpow2.f32 %v4409_v27 }
0x1032   :  { %v5554_v28 = vpop.eup %5553 }
0x1033   :  { %v1425_v29 = vadd.f32 1.0, %v5554_v28 }
0x1035   :  { %5555 = vrcp.f32 %v1425_v29  ;;  %v6802_v29 = vld [vmem:[#allocation17] ss:$0 sm:$0xff] }
0x103f   :  { %v5556_v30 = vpop.eup %5555 }
0x1040   :  { %v1439_v37 = vsub.f32 1.0, %v5556_v30  ;;  %v1445_v39 = vmul.f32 %v5556_v30, %v1270_v17  ;;  %v6780_v17 = vpack.c.bf16 %v1806_v14, %v1805_v11 }
0x1096   :  { %v1430_v31 = vpop.permute.xlu0 %1429 }
0x1097   :  { %v1432_v32 = vmul.f32 %v5556_v30, %v1430_v31  ;;  %v1886_v30 = vadd.f32 %v6802_v29, %v1885_v20 }
0x1099   :  { %1434 = vrot.lane.b32.xlu1 %v1432_v32, %s6228_s7 }
0x110b   :  { %v1435_v33 = vpop.permute.xlu1 %1434 }
0x110c   :  { %v1437_v34 = vadd.f32 %v1435_v33, %v1343_v25  ;;  %v6798_v25 = vld [vmem:[#allocation19] ss:$0 sm:$0xff] }
0x110e   :  { %5557 = vtanh.f32 %v1437_v34 }
0x1118   :  { %v5558_v35 = vpop.eup %5557 }
0x1119   :  { %1441 = vrot.lane.b32.xlu0 %v5558_v35, %s6256_s17 }
0x118b   :  { %v1442_v38 = vpop.permute.xlu0 %1441 }
0x118c   :  { %v1444_v40 = vmul.f32 %v1442_v38, %v1439_v37 }
0x118e   :  { %v1446_v41 = vadd.f32 %v1445_v39, %v1444_v40 }
0x1190   :  { %1523 = vrot.lane.b32.xlu1 %v1446_v41, %s6256_s17 }
0x1202   :  { %v1524_v42 = vpop.permute.xlu1 %1523 }
0x1203   :  { %4850 = vmatmul.mubr.msk.f32.vlgmr.msra.gmra.mrb[12].mxu1 %vm394_vm1, %v1524_v42 }
0x1204   :  { %5280 = vmatpush3.bf16.msra.mxu1 %v6593_v9  ;;  %4871 = vmatprep.mubr.msk.f32.mxu1 %vm6254_vm0, %v6255_v1 }
0x1205   :  { %5281 = vmatprep.subr.bf16.mxu1 %v6253_v0 }
0x1208   :  { %5283 = vmatpush3.bf16.msra.mxu1 %v6600_v13 }
0x1209   :  { %5290 = vmatprep.subr.bf16.mxu1 %v6253_v0 }
0x12d6   :  { %v1593_v43 = vpop.f32.mrb[12].mxu1 }
0x12d7   :  { %v1594_v44 = vadd.f32 %v1593_v43, %v6621_v15  ;;  %v4851_v45 = vpop.f32.mrb[13].mxu1 }
0x12d9   :  { %1605 = vrot.lane.b32.xlu0 %v1594_v44, %s6228_s7  ;;  %v1597_v9 = vadd.f32 %v1594_v44, %v1519_v46 }
0x12db   :  { %v4412_v47 = vmul.f32 -1.442695, %v1597_v9 }
0x12dd   :  { %5559 = vpow2.f32 %v4412_v47 }
0x12e7   :  { %v5560_v48 = vpop.eup %5559 }
0x12e8   :  { %v1601_v49 = vadd.f32 1.0, %v5560_v48 }
0x12ea   :  { %5561 = vrcp.f32 %v1601_v49 }
0x12f4   :  { %v5562_v50 = vpop.eup %5561 }
0x12f5   :  { %v1615_v63 = vsub.f32 1.0, %v5562_v50  ;;  %v1621_v3 = vmul.f32 %v5562_v50, %v1446_v41  ;;  %v1992_v41 = vld [vmem:[#allocation5 + $0x4] sm:$0xf] }
0x12f6   :  { %4905 = vmatmul.mubr.msk.f32.vlgmr.msra.gmra.mrb[18].mxu0 %vm394_vm1, %v1992_v41 }
0x12f7   :  { %5310 = vmatpush3.bf16.msra.mxu0 %v6750_v57  ;;  %4926 = vmatprep.mubr.msk.f32.mxu0 %vm6254_vm0, %v6255_v1 }
0x12f8   :  { %5311 = vmatprep.subr.bf16.mxu0 %v6253_v0 }
0x12fb   :  { %5313 = vmatpush3.bf16.msra.mxu0 %v6757_v61 }
0x12fc   :  { %5320 = vmatprep.subr.bf16.mxu0 %v6253_v0 }
0x12fe   :  { %4927 = vmatmul.mubr.msk.f32.vlgmr.msra.gmra.mrb[20].mxu0 %vm394_vm1, %v2168_v62 }
0x12ff   :  { %5322 = vmatpush3.bf16.msra.mxu0 %v6750_v57  ;;  %4948 = vmatprep.mubr.msk.f32.mxu0 %vm6254_vm0, %v6255_v1 }
0x1300   :  { %5323 = vmatprep.subr.bf16.mxu0 %v6253_v0 }
0x1303   :  { %5325 = vmatpush3.bf16.msra.mxu0 %v6757_v61 }
0x1304   :  { %5332 = vmatprep.subr.bf16.mxu0 %v6253_v0 }
0x134b   :  { %v1606_v13 = vpop.permute.xlu0 %1605 }
0x134c   :  { %v1608_v51 = vmul.f32 %v5562_v50, %v1606_v13 }
0x134e   :  { %1610 = vrot.lane.b32.xlu1 %v1608_v51, %s6228_s7 }
0x13c0   :  { %v1611_v52 = vpop.permute.xlu1 %1610 }
0x13c1   :  { %v1613_v53 = vadd.f32 %v1611_v52, %v1519_v46 }
0x13c3   :  { %5563 = vtanh.f32 %v1613_v53 }
0x13c9   :  { %v2062_v46 = vpop.f32.mrb[18].mxu0 }
0x13ca   :  { %v4906_v9 = vpop.f32.mrb[19].mxu0  ;;  %v2063_v50 = vadd.f32 %v6802_v29, %v2062_v46 }
0x13cd   :  { %v5564_v54 = vpop.eup %5563 }
0x13ce   :  { %1617 = vrot.lane.b32.xlu0 %v5564_v54, %s6256_s17 }
0x13d1   :  { %v2238_v11 = vpop.f32.mrb[20].mxu0 }
0x13d2   :  { %v4928_v14 = vpop.f32.mrb[21].mxu0  ;;  %v2239_v22 = vadd.f32 %v6802_v29, %v2238_v11 }
0x1440   :  { %v1618_v2 = vpop.permute.xlu0 %1617 }
0x1441   :  { %v1620_v4 = vmul.f32 %v1618_v2, %v1615_v63 }
0x1443   :  { %v6766_v6 = vadd.f32 %v1621_v3, %v1620_v4 }
0x1445   :  { %1699 = vrot.lane.b32.xlu1 %v6766_v6, %s6256_s17 }
0x14b7   :  { %v1700_v16 = vpop.permute.xlu1 %1699 }
0x14b8   :  { %4872 = vmatmul.mubr.msk.f32.vlgmr.msra.gmra.mrb[14].mxu1 %vm394_vm1, %v1700_v16 }
0x14b9   :  { %5292 = vmatpush3.bf16.msra.mxu1 %v6774_v10  ;;  %4893 = vmatprep.mubr.msk.f32.mxu1 %vm6254_vm0, %v6255_v1 }
0x14ba   :  { %5293 = vmatprep.subr.bf16.mxu1 %v6253_v0 }
0x14bd   :  { %5295 = vmatpush3.bf16.msra.mxu1 %v6780_v17 }
0x14be   :  { %5302 = vmatprep.subr.bf16.mxu1 %v6253_v0 }
0x14c0   :  { %4894 = vmatmul.mubr.f32.vlgmr.msra.gmra.mrb[16].mxu1 %v6255_v1 }
0x14c1   :  { %5304 = vmatpush3.bf16.msra.mxu1 %v6774_v10  ;;  %4915 = vmatprep.mubr.msk.f32.mxu1 %vm6254_vm0, %v6255_v1 }
0x14c2   :  { %5305 = vmatprep.subr.bf16.mxu1 %v6253_v0 }
0x14c5   :  { %5307 = vmatpush3.bf16.msra.mxu1 %v6780_v17 }
0x14c6   :  { %5314 = vmatprep.subr.bf16.mxu1 %v6253_v0 }
0x158b   :  { %v6796_v23 = vpop.f32.mrb[14].mxu1 }
0x158c   :  { %v4873_v24 = vpop.f32.mrb[15].mxu1 }
0x1593   :  { %v1961_v26 = vpop.f32.mrb[16].mxu1 }
0x1594   :  { %v1962_v27 = vadd.f32 %v6798_v25, %v1961_v26  ;;  %v4895_v28 = vpop.f32.mrb[17].mxu1 }
0x1596   :  { %1973 = vrot.lane.b32.xlu0 %v1962_v27, %s6228_s7  ;;  %v1965_v31 = vadd.f32 %v1962_v27, %v1886_v30 }
0x1598   :  { %v4419_v32 = vmul.f32 -1.442695, %v1965_v31 }
0x159a   :  { %5565 = vpow2.f32 %v4419_v32 }
0x15a4   :  { %v5566_v33 = vpop.eup %5565 }
0x15a5   :  { %v1969_v34 = vadd.f32 1.0, %v5566_v33 }
0x15a7   :  { %5567 = vrcp.f32 %v1969_v34 }
0x15b1   :  { %v5568_v35 = vpop.eup %5567 }
0x15b2   :  { %v1983_v42 = vsub.f32 1.0, %v5568_v35  ;;  %v1989_v12 = vmul.f32 0.0, %v5568_v35 }
0x1608   :  { %v1974_v36 = vpop.permute.xlu0 %1973 }
0x1609   :  { %v1976_v37 = vmul.f32 %v5568_v35, %v1974_v36  ;;  %v2344_v36 = vld [vmem:[#allocation5 + $0xc] sm:$0xf] }
0x160a   :  { %4949 = vmatmul.mubr.msk.f32.vlgmr.msra.gmra.mrb[22].mxu0 %vm394_vm1, %v2344_v36 }
0x160b   :  { %1978 = vrot.lane.b32.xlu1 %v1976_v37, %s6228_s7  ;;  %5334 = vmatpush3.bf16.msra.mxu0 %v6750_v57 }
0x160c   :  { %4970 = vmatprep.mubr.msk.f32.mxu0 %vm6254_vm0, %v6255_v1  ;;  %5335 = vmatprep.subr.bf16.mxu0 %v6253_v0 }
0x160f   :  { %5337 = vmatpush3.bf16.msra.mxu0 %v6757_v61 }
0x1610   :  { %5344 = vmatprep.subr.bf16.mxu0 %v6253_v0 }
0x167d   :  { %v1979_v38 = vpop.permute.xlu1 %1978 }
0x167e   :  { %v1981_v39 = vadd.f32 %v1979_v38, %v1886_v30 }
0x1680   :  { %5569 = vtanh.f32 %v1981_v39 }
0x168a   :  { %v5570_v40 = vpop.eup %5569 }
0x168b   :  { %1985 = vrot.lane.b32.xlu0 %v5570_v40, %s6256_s17 }
0x16fd   :  { %v1986_v5 = vpop.permute.xlu0 %1985 }
0x16fe   :  { %v1988_v43 = vmul.f32 %v1986_v5, %v1983_v42  ;;  %v2414_v5 = vpop.f32.mrb[22].mxu0 }
0x16ff   :  { %v2415_v46 = vadd.f32 %v6802_v29, %v2414_v5 }
0x1700   :  { %v1990_v44 = vadd.f32 %v1989_v12, %v1988_v43  ;;  %v4950_v12 = vpop.f32.mrb[23].mxu0 }
0x1702   :  { %2067 = vrot.lane.b32.xlu1 %v1990_v44, %s6256_s17 }
0x1774   :  { %v2068_v45 = vpop.permute.xlu1 %2067 }
0x1775   :  { %4916 = vmatmul.mubr.msk.f32.vlgmr.msra.gmra.mrb[18].mxu1 %vm394_vm1, %v2068_v45 }
0x1776   :  { %5316 = vmatpush3.bf16.msra.mxu1 %v6774_v10  ;;  %4937 = vmatprep.mubr.msk.f32.mxu1 %vm6254_vm0, %v6255_v1 }
0x1777   :  { %5317 = vmatprep.subr.bf16.mxu1 %v6253_v0 }
0x177a   :  { %5319 = vmatpush3.bf16.msra.mxu1 %v6780_v17 }
0x177b   :  { %5326 = vmatprep.subr.bf16.mxu1 %v6253_v0 }
0x1848   :  { %v2137_v47 = vpop.f32.mrb[18].mxu1 }
0x1849   :  { %v2138_v48 = vadd.f32 %v6798_v25, %v2137_v47  ;;  %v4917_v49 = vpop.f32.mrb[19].mxu1 }
0x184b   :  { %2149 = vrot.lane.b32.xlu0 %v2138_v48, %s6228_s7  ;;  %v2141_v13 = vadd.f32 %v2138_v48, %v2063_v50 }
0x184d   :  { %v4422_v51 = vmul.f32 -1.442695, %v2141_v13 }
0x184f   :  { %5571 = vpow2.f32 %v4422_v51 }
0x1859   :  { %v5572_v52 = vpop.eup %5571 }
0x185a   :  { %v2145_v53 = vadd.f32 1.0, %v5572_v52 }
0x185c   :  { %5573 = vrcp.f32 %v2145_v53 }
0x1866   :  { %v5574_v54 = vpop.eup %5573 }
0x1867   :  { %v2159_v63 = vsub.f32 1.0, %v5574_v54  ;;  %v2165_v3 = vmul.f32 %v5574_v54, %v1990_v44 }
0x18bd   :  { %v2150_v55 = vpop.permute.xlu0 %2149 }
0x18be   :  { %v2152_v56 = vmul.f32 %v5574_v54, %v2150_v55  ;;  %v2520_v55 = vld [vmem:[#allocation5 + $0x10] sm:$0xf] }
0x18bf   :  { %4971 = vmatmul.mubr.msk.f32.vlgmr.msra.gmra.mrb[24].mxu0 %vm394_vm1, %v2520_v55  ;;  %v2878_v55 = vld [vmem:[#allocation22 + $0x10] sm:$0xff] }
0x18c0   :  { %2154 = vrot.lane.b32.xlu1 %v2152_v56, %s6228_s7  ;;  %5346 = vmatpush3.bf16.msra.mxu0 %v6750_v57  ;;  %v1770_v57 = vadd.f32 %v6796_v23, %v6621_v15 }
0x18c1   :  { %4992 = vmatprep.mubr.msk.f32.mxu0 %vm6254_vm0, %v6255_v1  ;;  %5347 = vmatprep.subr.bf16.mxu0 %v6253_v0 }
0x18c4   :  { %5349 = vmatpush3.bf16.msra.mxu0 %v6757_v61 }
0x18c5   :  { %5356 = vmatprep.subr.bf16.mxu0 %v6253_v0 }
0x1932   :  { %v2155_v58 = vpop.permute.xlu1 %2154 }
0x1933   :  { %v2157_v59 = vadd.f32 %v2155_v58, %v2063_v50 }
0x1935   :  { %5575 = vtanh.f32 %v2157_v59 }
0x193f   :  { %v5576_v60 = vpop.eup %5575 }
0x1940   :  { %2161 = vrot.lane.b32.xlu0 %v5576_v60, %s6256_s17 }
0x19b2   :  { %v2162_v2 = vpop.permute.xlu0 %2161 }
0x19b3   :  { %v2164_v4 = vmul.f32 %v2162_v2, %v2159_v63  ;;  %v1695_v63 = vadd.f32 %v6794_v18, %v6625_v21  ;;  %v2590_v21 = vpop.f32.mrb[24].mxu0 }
0x19b4   :  { %v4972_v18 = vpop.f32.mrb[25].mxu0  ;;  %v2591_v36 = vadd.f32 %v6802_v29, %v2590_v21 }
0x19b5   :  { %v2166_v7 = vadd.f32 %v2165_v3, %v2164_v4  ;;  %v1773_v61 = vadd.f32 %v1770_v57, %v1695_v63  ;;  %v3054_v18 = vlaneseq }
0x19b7   :  { %2243 = vrot.lane.b32.xlu1 %v2166_v7, %s6256_s17  ;;  %v4415_v2 = vmul.f32 -1.442695, %v1773_v61 }
0x1a29   :  { %v2244_v8 = vpop.permute.xlu1 %2243 }
0x1a2a   :  { %4938 = vmatmul.mubr.msk.f32.vlgmr.msra.gmra.mrb[20].mxu1 %vm394_vm1, %v2244_v8 }
0x1a2b   :  { %5328 = vmatpush3.bf16.msra.mxu1 %v6774_v10  ;;  %4959 = vmatprep.mubr.msk.f32.mxu1 %vm6254_vm0, %v6255_v1 }
0x1a2c   :  { %5329 = vmatprep.subr.bf16.mxu1 %v6253_v0 }
0x1a2f   :  { %5331 = vmatpush3.bf16.msra.mxu1 %v6780_v17 }
0x1a30   :  { %5338 = vmatprep.subr.bf16.mxu1 %v6253_v0 }
0x1afd   :  { %v2313_v16 = vpop.f32.mrb[20].mxu1 }
0x1afe   :  { %v2314_v19 = vadd.f32 %v6798_v25, %v2313_v16  ;;  %v4939_v20 = vpop.f32.mrb[21].mxu1  ;;  %v2696_v16 = vld [vmem:[#allocation5 + $0x14] sm:$0xf] }
0x1aff   :  { %v2873_v20 = vld [vmem:[#allocation20 + $0x8] sm:$0xff]  ;;  %4993 = vmatmul.mubr.msk.f32.vlgmr.msra.gmra.mrb[26].mxu0 %vm394_vm1, %v2696_v16 }
0x1b00   :  { %2325 = vrot.lane.b32.xlu0 %v2314_v19, %s6228_s7  ;;  %v2317_v24 = vadd.f32 %v2314_v19, %v2239_v22  ;;  %v2872_v19 = vld [vmem:[#allocation20] sm:$0xff]  ;;  %5014 = vmatprep.mubr.msk.f32.mxu0 %vm6254_vm0, %v6255_v1 }
0x1b02   :  { %v4425_v26 = vmul.f32 -1.442695, %v2317_v24  ;;  %v2874_v24 = vld [vmem:[#allocation20 + $0x10] sm:$0xff] }
0x1b04   :  { %5577 = vpow2.f32 %v4425_v26 }
0x1b0e   :  { %v5578_v27 = vpop.eup %5577 }
0x1b0f   :  { %v2321_v28 = vadd.f32 1.0, %v5578_v27 }
0x1b11   :  { %5579 = vrcp.f32 %v2321_v28 }
0x1b1b   :  { %v5580_v30 = vpop.eup %5579 }
0x1b1c   :  { %v2335_v37 = vsub.f32 1.0, %v5580_v30  ;;  %v2341_v39 = vmul.f32 %v5580_v30, %v2166_v7 }
0x1b72   :  { %v2326_v31 = vpop.permute.xlu0 %2325 }
0x1b73   :  { %v2328_v32 = vmul.f32 %v5580_v30, %v2326_v31 }
0x1b75   :  { %2330 = vrot.lane.b32.xlu1 %v2328_v32, %s6228_s7 }
0x1be7   :  { %v2331_v33 = vpop.permute.xlu1 %2330 }
0x1be8   :  { %v2333_v34 = vadd.f32 %v2331_v33, %v2239_v22  ;;  %v5357_v22 = vpack.c.bf16 %v2873_v20, %v2872_v19 }
0x1bea   :  { %5581 = vtanh.f32 %v2333_v34  ;;  %5358 = vmatpush3.bf16.msra.mxu0 %v5357_v22 }
0x1beb   :  { %5359 = vmatprep.subr.bf16.mxu0 %v6253_v0 }
0x1bf4   :  { %v5582_v35 = vpop.eup %5581 }
0x1bf5   :  { %2337 = vrot.lane.b32.xlu0 %v5582_v35, %s6256_s17 }
0x1c67   :  { %v2338_v38 = vpop.permute.xlu0 %2337 }
0x1c68   :  { %v2340_v40 = vmul.f32 %v2338_v38, %v2335_v37 }
0x1c6a   :  { %v2342_v41 = vadd.f32 %v2341_v39, %v2340_v40 }
0x1c6c   :  { %2419 = vrot.lane.b32.xlu1 %v2342_v41, %s6256_s17 }
0x1cde   :  { %v2420_v42 = vpop.permute.xlu1 %2419 }
0x1cdf   :  { %4960 = vmatmul.mubr.msk.f32.vlgmr.msra.gmra.mrb[22].mxu1 %vm394_vm1, %v2420_v42 }
0x1ce0   :  { %5340 = vmatpush3.bf16.msra.mxu1 %v6774_v10  ;;  %4981 = vmatprep.mubr.msk.f32.mxu1 %vm6254_vm0, %v6255_v1 }
0x1ce1   :  { %5341 = vmatprep.subr.bf16.mxu1 %v6253_v0 }
0x1ce4   :  { %5343 = vmatpush3.bf16.msra.mxu1 %v6780_v17 }
0x1ce5   :  { %5350 = vmatprep.subr.bf16.mxu1 %v6253_v0 }
0x1db2   :  { %v2489_v43 = vpop.f32.mrb[22].mxu1 }
0x1db3   :  { %v2490_v44 = vadd.f32 %v6798_v25, %v2489_v43  ;;  %v4961_v45 = vpop.f32.mrb[23].mxu1 }
0x1db5   :  { %2501 = vrot.lane.b32.xlu0 %v2490_v44, %s6228_s7  ;;  %v2493_v9 = vadd.f32 %v2490_v44, %v2415_v46  ;;  %v6914_v44 = vpop.f32.mrb[26].mxu0 }
0x1db6   :  { %v4994_v45 = vpop.f32.mrb[27].mxu0 }
0x1db7   :  { %v4428_v47 = vmul.f32 -1.442695, %v2493_v9  ;;  %v3172_v45 = vld [vmem:[%s7145_s25 + $0x10] sm:$0xff] }
0x1db9   :  { %5583 = vpow2.f32 %v4428_v47 }
0x1dc3   :  { %v5584_v48 = vpop.eup %5583 }
0x1dc4   :  { %v2497_v49 = vadd.f32 1.0, %v5584_v48 }
0x1dc6   :  { %5585 = vrcp.f32 %v2497_v49 }
0x1dd0   :  { %v5586_v50 = vpop.eup %5585 }
0x1dd1   :  { %v2511_v56 = vsub.f32 1.0, %v5586_v50  ;;  %v2517_v59 = vmul.f32 %v5586_v50, %v2342_v41 }
0x1e27   :  { %v2502_v13 = vpop.permute.xlu0 %2501 }
0x1e28   :  { %v2504_v51 = vmul.f32 %v5586_v50, %v2502_v13 }
0x1e2a   :  { %2506 = vrot.lane.b32.xlu1 %v2504_v51, %s6228_s7 }
0x1e9c   :  { %v2507_v52 = vpop.permute.xlu1 %2506 }
0x1e9d   :  { %v2509_v53 = vadd.f32 %v2507_v52, %v2415_v46  ;;  %v2876_v52 = vld [vmem:[#allocation22] sm:$0xff] }
0x1e9f   :  { %5587 = vtanh.f32 %v2509_v53  ;;  %v2877_v53 = vld [vmem:[#allocation22 + $0x8] sm:$0xff] }
0x1ea0   :  { %5589 = vpow2.f32 %v4415_v2 }
0x1ea9   :  { %v5588_v54 = vpop.eup %5587 }
0x1eaa   :  { %2513 = vrot.lane.b32.xlu0 %v5588_v54, %s6256_s17  ;;  %v5590_v3 = vpop.eup %5589  ;;  %v5363_v54 = vpack.c.bf16 %v2877_v53, %v2876_v52 }
0x1eab   :  { %v1777_v4 = vadd.f32 1.0, %v5590_v3 }
0x1ead   :  { %5591 = vrcp.f32 %v1777_v4  ;;  %v2880_v4 = vld [vmem:[#allocation23] sm:$0x1] }
0x1eb7   :  { %v5592_v15 = vpop.eup %5591 }
0x1eb8   :  { %v1791_v31 = vsub.f32 1.0, %v5592_v15  ;;  %v1797_v33 = vmul.f32 %v5592_v15, %v6766_v6 }
0x1f1c   :  { %v2514_v58 = vpop.permute.xlu0 %2513 }
0x1f1d   :  { %v2516_v60 = vmul.f32 %v2514_v58, %v2511_v56  ;;  %v2879_v56 = vld [vmem:[#allocation22 + $0x18] sm:$0xff] }
0x1f1f   :  { %v6874_v62 = vadd.f32 %v2517_v59, %v2516_v60  ;;  %v5366_v59 = vpack.c.bf16 %v2879_v56, %v2878_v55  ;;  %v2871_v60 = vld [vmem:[#allocation7] sm:$0x1]  ;;  %v4444_v55 = vld [vmem:[%s7145_s25 + $0x30] sm:$0xff]  ;;  %v4445_v56 = vld [vmem:[%s7145_s25 + $0x38] sm:$0xff] }
0x1f21   :  { %2595 = vrot.lane.b32.xlu1 %v6874_v62, %s6256_s17 }
0x1f25   :  { %1781 = vrot.lane.b32.xlu1 %v1770_v57, %s6228_s7 }
0x1f93   :  { %v2596_v7 = vpop.permute.xlu1 %2595 }
0x1f94   :  { %4982 = vmatmul.mubr.msk.f32.vlgmr.msra.gmra.mrb[24].mxu1 %vm394_vm1, %v2596_v7 }
0x1f95   :  { %5352 = vmatpush3.bf16.msra.mxu1 %v6774_v10  ;;  %5003 = vmatprep.mubr.msk.f32.mxu1 %vm6254_vm0, %v6255_v1 }
0x1f96   :  { %5353 = vmatprep.subr.bf16.mxu1 %v6253_v0 }
0x1f97   :  { %v1782_v23 = vpop.permute.xlu1 %1781 }
0x1f98   :  { %v1784_v8 = vmul.f32 %v5592_v15, %v1782_v23 }
0x1f99   :  { %5355 = vmatpush3.bf16.msra.mxu1 %v6780_v17  ;;  %v2875_v17 = vld [vmem:[#allocation20 + $0x18] sm:$0xff] }
0x1f9a   :  { %1786 = vrot.lane.b32.xlu1 %v1784_v8, %s6228_s7  ;;  %5362 = vmatprep.subr.bf16.mxu1 %v6253_v0  ;;  %v5360_v26 = vpack.c.bf16 %v2875_v17, %v2874_v24 }
0x1f9c   :  { %5361 = vmatpush3.bf16.msra.mxu0 %v5360_v26 }
0x1f9d   :  { %5368 = vmatprep.subr.bf16.mxu0 %v6253_v0 }
0x200c   :  { %v1787_v11 = vpop.permute.xlu1 %1786 }
0x200d   :  { %v1789_v14 = vadd.f32 %v1787_v11, %v1695_v63  ;;  %v2881_v63 = vld [vmem:[#allocation25] sm:$0x1]  ;;  %v6933_v11 = vshrl.u32 %v3054_v18, 7  ;;  %v3361_v18 = vld [vmem:[#allocation29 + $0x1] sm:$0x1] }
0x200f   :  { %5593 = vtanh.f32 %v1789_v14  ;;  %v3056_v14 = vsub.s32 0, %v6933_v11  ;;  %v4469_v11 = vld [vmem:[%s7150_s13] ss:$0 sm:$0xff] }
0x2011   :  { %v3057_v20 = vrot.slane %v2871_v60, %v3056_v14 }
0x2019   :  { %v5594_v10 = vpop.eup %5593 }
0x201a   :  { %1793 = vrot.lane.b32.xlu1 %v5594_v10, %s6256_s17 }
0x2067   :  { %v2665_v27 = vpop.f32.mrb[24].mxu1 }
0x2068   :  { %v2666_v28 = vadd.f32 %v6798_v25, %v2665_v27  ;;  %v4983_v30 = vpop.f32.mrb[25].mxu1  ;;  %v3092_v27 = vld [vmem:[#allocation26] sm:$0xff] }
0x2069   :  { %v3094_v30 = vld [vmem:[#allocation26 + $0x10] sm:$0xff] }
0x206a   :  { %2677 = vrot.lane.b32.xlu0 %v2666_v28, %s6228_s7  ;;  %v2669_v37 = vadd.f32 %v2666_v28, %v2591_v36  ;;  %v3093_v28 = vld [vmem:[#allocation26 + $0x8] sm:$0xff] }
0x206c   :  { %v4431_v38 = vmul.f32 -1.442695, %v2669_v37 }
0x206e   :  { %5595 = vpow2.f32 %v4431_v38 }
0x2078   :  { %v5596_v39 = vpop.eup %5595 }
0x2079   :  { %v2673_v40 = vadd.f32 1.0, %v5596_v39 }
0x207b   :  { %5597 = vrcp.f32 %v2673_v40 }
0x2085   :  { %v5598_v41 = vpop.eup %5597 }
0x2086   :  { %v2687_v9 = vsub.f32 1.0, %v5598_v41  ;;  %v2693_v48 = vmul.f32 %v5598_v41, %v6874_v62 }
0x208c   :  { %v1794_v32 = vpop.permute.xlu1 %1793 }
0x208d   :  { %v1796_v34 = vmul.f32 %v1794_v32, %v1791_v31  ;;  %v5369_v31 = vpack.c.bf16 %v3093_v28, %v3092_v27  ;;  %v3095_v32 = vld [vmem:[#allocation26 + $0x18] sm:$0xff] }
0x208f   :  { %v6900_v35 = vadd.f32 %v1797_v33, %v1796_v34  ;;  %v5372_v33 = vpack.c.bf16 %v3095_v32, %v3094_v30 }
0x2091   :  { %2883 = vrot.lane.b32.xlu1 %v6900_v35, %s6256_s17  ;;  %v3077_v22 = vmul.f32 %v6900_v35, %v6900_v35 }
0x20dc   :  { %v2678_v42 = vpop.permute.xlu0 %2677 }
0x20dd   :  { %v2680_v5 = vmul.f32 %v5598_v41, %v2678_v42  ;;  %v3170_v42 = vld [vmem:[%s7145_s25] sm:$0xff] }
0x20df   :  { %2682 = vrot.lane.b32.xlu0 %v2680_v5, %s6228_s7  ;;  %v3171_v5 = vld [vmem:[%s7145_s25 + $0x8] sm:$0xff] }
0x2103   :  { %v6906_v6 = vpop.permute.xlu1 %2883 }
0x2104   :  { %5015 = vmatmul.mubr.msk.f32.vlgmr.msra.gmra.mrb[28].mxu0 %vm394_vm1, %v6906_v6  ;;  %3065 = vst.msk [vmem:[#allocation37] sm:$0x1] %vm3064_vm2, %v6906_v6 }
0x2105   :  { %5036 = vmatprep.mubr.msk.f32.mxu0 %vm6254_vm0, %v6255_v1  ;;  %5370 = vmatpush3.bf16.msra.mxu0 %v5369_v31 }
0x2106   :  { %5371 = vmatprep.subr.bf16.mxu0 %v6253_v0 }
0x2109   :  { %5373 = vmatpush3.bf16.msra.mxu0 %v5372_v33 }
0x210a   :  { %5050 = vmatprep.subr.mxu0 %v6255_v1 }
0x2151   :  { %v2683_v12 = vpop.permute.xlu0 %2682 }
0x2152   :  { %v2685_v43 = vadd.f32 %v2683_v12, %v2591_v36  ;;  %v5375_v12 = vpack.c.bf16 %v3171_v5, %v3170_v42 }
0x2154   :  { %5599 = vtanh.f32 %v2685_v43 }
0x215e   :  { %v5600_v46 = vpop.eup %5599 }
0x215f   :  { %2689 = vrot.lane.b32.xlu0 %v5600_v46, %s6256_s17  ;;  %v3173_v46 = vld [vmem:[%s7145_s25 + $0x18] sm:$0xff] }
0x21d1   :  { %v2690_v47 = vpop.permute.xlu0 %2689 }
0x21d2   :  { %v2692_v49 = vmul.f32 %v2690_v47, %v2687_v9  ;;  %v5378_v9 = vpack.c.bf16 %v3173_v46, %v3172_v45  ;;  %v3096_v47 = vld [vmem:[#allocation28] sm:$0x1] }
0x21d4   :  { %v6918_v50 = vadd.f32 %v2693_v48, %v2692_v49  ;;  %v4442_v48 = vld [vmem:[%s7145_s25 + $0x20] sm:$0xff]  ;;  %v4443_v49 = vld [vmem:[%s7145_s25 + $0x28] sm:$0xff] }
0x21d5   :  { %v5381_v53 = vpack.c.bf16 %v4443_v49, %v4442_v48 }
0x21d6   :  { %2771 = vrot.lane.b32.xlu0 %v6918_v50, %s6256_s17 }
0x21d7   :  { %v2953_v13 = vpop.f32.mrb[28].mxu0 }
0x21d8   :  { %v5016_v51 = vpop.f32.mrb[29].mxu0  ;;  %v2954_v7 = vadd.f32 %v2953_v13, %v2880_v4 }
0x2248   :  { %v2772_v58 = vpop.permute.xlu0 %2771 }
0x2249   :  { %5004 = vmatmul.mubr.msk.f32.vlgmr.msra.gmra.mrb[26].mxu1 %vm394_vm1, %v2772_v58  ;;  %v5384_v58 = vpack.c.bf16 %v4445_v56, %v4444_v55 }
0x224a   :  { %5364 = vmatpush3.bf16.msra.mxu1 %v5363_v54  ;;  %5025 = vmatprep.mubr.msk.f32.mxu1 %vm6254_vm0, %v6255_v1 }
0x224b   :  { %5365 = vmatprep.subr.bf16.mxu1 %v6253_v0 }
0x224e   :  { %5367 = vmatpush3.bf16.msra.mxu1 %v5366_v59  ;;  %v4455_v59 = vld [vmem:[%s7145_s25 + $0x40] sm:$0xff] }
0x224f   :  { %5374 = vmatprep.subr.bf16.mxu1 %v6253_v0 }
0x2251   :  { %5026 = vmatmul.mubr.msk.f32.vlgmr.msra.gmra.mrb[28].mxu1 %vm394_vm1, %v2871_v60  ;;  %v4456_v60 = vld [vmem:[%s7145_s25 + $0x48] sm:$0xff] }
0x2252   :  { %5047 = vmatprep.mubr.msk.f32.mxu1 %vm6254_vm0, %v6255_v1  ;;  %5376 = vmatpush3.bf16.msra.mxu1 %v5375_v12 }
0x2253   :  { %5377 = vmatprep.subr.bf16.mxu1 %v6253_v0 }
0x2256   :  { %5379 = vmatpush3.bf16.msra.mxu1 %v5378_v9 }
0x2257   :  { %5380 = vmatprep.subr.bf16.mxu1 %v6253_v0 }
0x231c   :  { %v6930_v62 = vpop.f32.mrb[26].mxu1 }
0x231d   :  { %v5005_v57 = vpop.f32.mrb[27].mxu1 }
0x231e   :  { %v5399_v57 = vpack.c.bf16 %v4456_v60, %v4455_v59 }
0x2324   :  { %v3026_v61 = vpop.f32.mrb[28].mxu1 }
0x2325   :  { %v3027_v2 = vadd.f32 %v3026_v61, %v2881_v63  ;;  %v5027_v3 = vpop.f32.mrb[29].mxu1  ;;  %v4457_v63 = vld [vmem:[%s7145_s25 + $0x50] sm:$0xff]  ;;  %v4458_v61 = vld [vmem:[%s7145_s25 + $0x58] sm:$0xff] }
0x2326   :  { %v3174_v3 = vld [vmem:[#allocation29] sm:$0x1] }
0x2327   :  { %3038 = vrot.lane.b32.xlu0 %v3027_v2, %s6228_s7  ;;  %v3030_v15 = vadd.f32 %v3027_v2, %v2954_v7  ;;  %v5402_v2 = vpack.c.bf16 %v4458_v61, %v4457_v63 }
0x2329   :  { %v4437_v23 = vmul.f32 -1.442695, %v3030_v15 }
0x232b   :  { %5601 = vpow2.f32 %v4437_v23 }
0x2335   :  { %v5602_v8 = vpop.eup %5601 }
0x2336   :  { %v3034_v21 = vadd.f32 1.0, %v5602_v8 }
0x2338   :  { %5603 = vrcp.f32 %v3034_v21 }
0x2342   :  { %v5604_v10 = vpop.eup %5603 }
0x2343   :  { %v3048_v35 = vsub.f32 1.0, %v5604_v10 }
0x2399   :  { %v3039_v16 = vpop.permute.xlu0 %3038 }
0x239a   :  { %v3041_v19 = vmul.f32 %v5604_v10, %v3039_v16 }
0x239c   :  { %3043 = vrot.lane.b32.xlu1 %v3041_v19, %s6228_s7 }
0x23a0   :  { %3058 = vrot.lane.b32.xlu1 %v3057_v20, %s6257_s15 }
0x23a4   :  { %3079 = vrot.lane.b32.xlu1 %v3077_v22, %s6256_s17 }
0x240e   :  { %v3044_v24 = vpop.permute.xlu1 %3043 }
0x240f   :  { %v3046_v17 = vadd.f32 %v3044_v24, %v2954_v7 }
0x2411   :  { %5605 = vtanh.f32 %v3046_v17  ;;  %v3688_v17 = vld [vmem:[#allocation29 + $0x2] sm:$0x1] }
0x2412   :  { %v3059_v34 = vpop.permute.xlu1 %3058 }
0x2413   :  { %v3061_v37 = vmul.f32 %v5604_v10, %v3059_v34 }
0x2416   :  { %v3080_v40 = vpop.permute.xlu1 %3079 }
0x2417   :  { %v3082_v41 = vsel %vm3064_vm2, %v3080_v40, 0.0 }
0x241b   :  { %v5606_v26 = vpop.eup %5605 }
0x241c   :  { %3050 = vrot.lane.b32.xlu0 %v5606_v26, %s6256_s17 }
0x248e   :  { %v3051_v36 = vpop.permute.xlu0 %3050 }
0x248f   :  { %v3053_v38 = vmul.f32 %v3051_v36, %v3048_v35  ;;  %v2842_v36 = vadd.f32 %v6798_v25, %v6930_v62 }
0x2491   :  { %v3062_v39 = vadd.f32 %v3061_v37, %v3053_v38  ;;  %v6998_v37 = vadd.f32 %v6802_v29, %v6914_v44 }
0x2493   :  { %3073 = vrot.lane.b32.xlu0 %v3062_v39, %s6256_s17  ;;  %v2845_v38 = vadd.f32 %v2842_v36, %v6998_v37 }
0x2495   :  { %v4434_v40 = vmul.f32 -1.442695, %v2845_v38 }
0x24b2   :  { %3083 = vadd.xlane.f32.xlu0 %v3082_v41 }
0x2505   :  { %v3074_v43 = vpop.permute.xlu0 %3073 }
0x2506   :  { %3076 = vst.msk [vmem:[#allocation35] sm:$0x1] %vm3064_vm2, %v3074_v43  ;;  %5037 = vmatmul.mubr.msk.f32.vlgmr.msra.gmra.mrb[30].mxu0 %vm394_vm1, %v3074_v43 }
0x2507   :  { %5051 = vmatpush3.msk.msra.mxu0 %vm3278_vm3, %v6906_v6  ;;  %5052 = vmatprep.mubr.msk.f32.mxu0 %vm6254_vm0, %v6255_v1 }
0x2508   :  { %5066 = vmatprep.subr.mxu0 %v6255_v1 }
0x253f   :  { %v3084_v39 = vpop.xlane.xlu0 %3083 }
0x2540   :  { %5607 = vrsqrt.f32 %v3084_v39  ;;  %vm3087_vm4 = vcmp.eq.f32.partialorder %v3084_v39, inf  ;;  %v3090_v29 = vand.u32 2147483648, %v3084_v39  ;;  %vm3089_vm6 = vcmp.eq.f32.partialorder %v3084_v39, 0.0 }
0x2541   :  { %5609 = vpow2.f32 %v4434_v40 }
0x254a   :  { %v5608_v42 = vpop.eup %5607 }
0x254b   :  { %v5610_v5 = vpop.eup %5609  ;;  %v3086_v12 = vmul.f32 %v5608_v42, %v3084_v39 }
0x254c   :  { %v2849_v25 = vadd.f32 1.0, %v5610_v5 }
0x254d   :  { %v3088_v45 = vsel %vm3087_vm4, %v3084_v39, %v3086_v12 }
0x25d9   :  { %v3165_v13 = vpop.f32.mrb[30].mxu0 }
0x25da   :  { %v3166_v51 = vadd.f32 %v3165_v13, %v3096_v47  ;;  %v5038_v52 = vpop.f32.mrb[31].mxu0  ;;  %v3091_v47 = vsel %vm3089_vm6, %v3090_v29, %v3088_v45  ;;  %v3937_v29 = vld [vmem:[#allocation31] sm:$0xff] }
0x25dc   :  { %v3169_v54 = vmax.f32 %v3166_v51, 0.0 }
0x25de   :  { %5048 = vmatmul.mubr.msk.f32.vlgmr.msra.gmra.mrb[30].mxu1 %vm394_vm1, %v3169_v54 }
0x25df   :  { %5382 = vmatpush3.bf16.msra.mxu1 %v5381_v53  ;;  %5063 = vmatprep.mubr.msk.f32.mxu1 %vm6254_vm0, %v6255_v1 }
0x25e0   :  { %5383 = vmatprep.subr.bf16.mxu1 %v6253_v0 }
0x25e3   :  { %5385 = vmatpush3.bf16.msra.mxu1 %v5384_v58 }
0x25e4   :  { %5398 = vmatprep.subr.bf16.mxu1 %v6253_v0 }
0x25e6   :  { %5064 = vmatmul.mubr.msk.f32.vlgmr.msra.gmra.mrb[32].mxu1 %vm394_vm1, %v3169_v54 }
0x25e7   :  { %5400 = vmatpush3.bf16.msra.mxu1 %v5399_v57  ;;  %5101 = vmatprep.mubr.msk.f32.mxu1 %vm6254_vm0, %v6255_v1 }
0x25e8   :  { %5401 = vmatprep.subr.bf16.mxu1 %v6253_v0 }
0x25eb   :  { %5403 = vmatpush3.bf16.msra.mxu1 %v5402_v2 }
0x25ec   :  { %5104 = vmatprep.subr.mxu1 %v6255_v1 }
0x25ee   :  { %5102 = vmatmul.mubr.msk.f32.vlgmr.msra.gmra.mrb[34].mxu1 %vm394_vm1, %v3169_v54 }
0x25ef   :  { %5105 = vmatpush3.msk.msra.mxu1 %vm3278_vm3, %v6906_v6  ;;  %5106 = vmatprep.mubr.msk.f32.mxu1 %vm6254_vm0, %v6255_v1 }
0x25f0   :  { %5410 = vmatprep.subr.bf16.mxu1 %v6253_v0 }
0x26b1   :  { %v3244_v4 = vpop.f32.mrb[30].mxu1 }
0x26b2   :  { %v3245_v7 = vadd.f32 %v3244_v4, %v3174_v3  ;;  %v5049_v15 = vpop.f32.mrb[31].mxu1 }
0x26b4   :  { %v3248_v23 = vmul.f32 %v3245_v7, %v3245_v7  ;;  %v3259_v21 = vmul.f32 %v3245_v7, %v6906_v6 }
0x26b6   :  { %v3249_v8 = vsel %vm3064_vm2, %v3248_v23, 0.0  ;;  %v3260_v20 = vsel %vm3064_vm2, %v3259_v21, 0.0 }
0x26b7   :  { %3250 = vadd.xlane.f32.xlu1 %v3249_v8 }
0x26b9   :  { %v3428_v10 = vpop.f32.mrb[32].mxu1 }
0x26ba   :  { %v3429_v16 = vadd.f32 %v3428_v10, %v3361_v18  ;;  %v5065_v19 = vpop.f32.mrb[33].mxu1 }
0x26bb   :  { %3261 = vadd.xlane.f32.xlu1 %v3260_v20 }
0x26bc   :  { %v3432_v22 = vmul.f32 %v3429_v16, %v3429_v16  ;;  %v3443_v34 = vmul.f32 %v3429_v16, %v6906_v6 }
0x26be   :  { %v3433_v24 = vsel %vm3064_vm2, %v3432_v22, 0.0  ;;  %v3444_v35 = vsel %vm3064_vm2, %v3443_v34, 0.0 }
0x26bf   :  { %3434 = vadd.xlane.f32.xlu0 %v3433_v24 }
0x26c1   :  { %v3755_v26 = vpop.f32.mrb[34].mxu1 }
0x26c2   :  { %v3756_v27 = vadd.f32 %v3755_v26, %v3688_v17  ;;  %v5103_v28 = vpop.f32.mrb[35].mxu1 }
0x26c4   :  { %v3770_v30 = vmul.f32 %v3756_v27, %v6906_v6  ;;  %v3759_v31 = vmul.f32 %v3756_v27, %v3756_v27 }
0x26c6   :  { %v3771_v32 = vsel %vm3064_vm2, %v3770_v30, 0.0  ;;  %v3760_v33 = vsel %vm3064_vm2, %v3759_v31, 0.0 }
0x26c7   :  { %3772 = vadd.xlane.f32.xlu1 %v3771_v32  ;;  %3761 = vadd.xlane.f32.xlu0 %v3760_v33 }
0x26cb   :  { %3445 = vadd.xlane.f32.xlu0 %v3444_v35 }
0x26e1   :  { %2853 = vrot.lane.b32.xlu0 %v2842_v36, %s6228_s7 }
0x2744   :  { %v3251_v41 = vpop.xlane.xlu1 %3250 }
0x2745   :  { %5611 = vrsqrt.f32 %v3251_v41  ;;  %vm3254_vm5 = vcmp.eq.f32.partialorder %v3251_v41, inf  ;;  %v3257_v44 = vand.u32 2147483648, %v3251_v41  ;;  %vm3256_vm7 = vcmp.eq.f32.partialorder %v3251_v41, 0.0 }
0x2748   :  { %v3262_v15 = vpop.xlane.xlu1 %3261 }
0x274c   :  { %v3435_v43 = vpop.xlane.xlu0 %3434 }
0x274d   :  { %5613 = vrsqrt.f32 %v3435_v43  ;;  %vm3438_vm8 = vcmp.eq.f32.partialorder %v3435_v43, inf  ;;  %v3441_v55 = vand.u32 2147483648, %v3435_v43  ;;  %vm3440_vm9 = vcmp.eq.f32.partialorder %v3435_v43, 0.0 }
0x274e   :  { %5615 = vrcp.f32 %v2849_v25 }
0x274f   :  { %v5612_v62 = vpop.eup %5611 }
0x2750   :  { %v3253_v46 = vmul.f32 %v5612_v62, %v3251_v41 }
0x2752   :  { %v3255_v9 = vsel %vm3254_vm5, %v3251_v41, %v3253_v46 }
0x2753   :  { %v3258_v48 = vsel %vm3256_vm7, %v3257_v44, %v3255_v9  ;;  %v3938_v44 = vld [vmem:[#allocation31 + $0x8] sm:$0xff]  ;;  %v3939_v9 = vld [vmem:[#allocation31 + $0x10] sm:$0xff] }
0x2754   :  { %v3263_v49 = vmul.f32 %v3258_v48, %v3091_v47  ;;  %v3762_v13 = vpop.xlane.xlu0 %3761  ;;  %v3773_v27 = vpop.xlane.xlu1 %3772 }
0x2755   :  { %5617 = vrsqrt.f32 %v3762_v13  ;;  %vm3765_vm10 = vcmp.eq.f32.partialorder %v3762_v13, inf  ;;  %v3768_v4 = vand.u32 2147483648, %v3762_v13  ;;  %vm3767_vm11 = vcmp.eq.f32.partialorder %v3762_v13, 0.0 }
0x2756   :  { %v3265_v51 = vmax.f32 %v3263_v49, 1e-08 }
0x2757   :  { %v5614_v52 = vpop.eup %5613 }
0x2758   :  { %5619 = vrcp.f32 %v3265_v51  ;;  %v3437_v53 = vmul.f32 %v5614_v52, %v3435_v43  ;;  %v3446_v54 = vpop.xlane.xlu0 %3445  ;;  %v7001_v59 = vpop.eup %5615 }
0x2759   :  { %v2863_v49 = vsub.f32 1.0, %v7001_v59  ;;  %v2869_v51 = vmul.f32 %v7001_v59, %v6918_v50 }
0x275a   :  { %v3439_v56 = vsel %vm3438_vm8, %v3435_v43, %v3437_v53 }
0x275b   :  { %v3442_v58 = vsel %vm3440_vm9, %v3441_v55, %v3439_v56 }
0x275c   :  { %v3447_v60 = vmul.f32 %v3442_v58, %v3091_v47  ;;  %v2854_v57 = vpop.permute.xlu0 %2853 }
0x275d   :  { %v2856_v63 = vmul.f32 %v7001_v59, %v2854_v57 }
0x275e   :  { %v3449_v61 = vmax.f32 %v3447_v60, 1e-08 }
0x275f   :  { %v5618_v2 = vpop.eup %5617  ;;  %2858 = vrot.lane.b32.xlu1 %v2856_v63, %s6228_s7  ;;  %s7146_s7 = sld [smem:[#allocation60_spill]] }
0x2760   :  { %v3764_v3 = vmul.f32 %v5618_v2, %v3762_v13  ;;  %5621 = vrcp.f32 %v3449_v61 }
0x2762   :  { %v5620_v7 = vpop.eup %5619  ;;  %v3766_v23 = vsel %vm3765_vm10, %v3762_v13, %v3764_v3 }
0x2763   :  { %v3267_v8 = vmul.f32 %v5620_v7, %v3262_v15  ;;  %v3769_v21 = vsel %vm3767_vm11, %v3768_v4, %v3766_v23 }
0x2764   :  { %v3774_v18 = vmul.f32 %v3769_v21, %v3091_v47  ;;  %v3940_v47 = vld [vmem:[#allocation31 + $0x18] sm:$0xff] }
0x2765   :  { %v3268_v10 = vsub.f32 %v3267_v8, %v3267_v8  ;;  %v4449_v5 = vld [vmem:[%s7146_s7 + $0x20] sm:$0xff]  ;;  %v4450_v12 = vld [vmem:[%s7146_s7 + $0x28] sm:$0xff]  ;;  %v4451_v25 = vld [vmem:[%s7146_s7 + $0x30] sm:$0xff]  ;;  %v5414_v48 = vpack.c.bf16 %v3940_v47, %v3939_v9 }
0x2766   :  { %v3776_v16 = vmax.f32 %v3774_v18, 1e-08  ;;  %v5387_v43 = vpack.c.bf16 %v4450_v12, %v4449_v5  ;;  %v4452_v62 = vld [vmem:[%s7146_s7 + $0x38] sm:$0xff]  ;;  %v3351_v56 = vld [vmem:[%s7146_s7] sm:$0xff]  ;;  %v3352_v58 = vld [vmem:[%s7146_s7 + $0x8] sm:$0xff] }
0x2767   :  { %v3269_v19 = vmul.f32 1.442695, %v3268_v10  ;;  %v5390_v45 = vpack.c.bf16 %v4452_v62, %v4451_v25  ;;  %v5393_v60 = vpack.c.bf16 %v3352_v58, %v3351_v56  ;;  %v3353_v57 = vld [vmem:[%s7146_s7 + $0x10] sm:$0xff]  ;;  %v3354_v63 = vld [vmem:[%s7146_s7 + $0x18] sm:$0xff]  ;;  %v4462_v59 = vld [vmem:[%s7146_s7 + $0x40] sm:$0xff] }
0x2768   :  { %5623 = vrcp.f32 %v3776_v16  ;;  %v5396_v50 = vpack.c.bf16 %v3354_v63, %v3353_v57  ;;  %v4463_v3 = vld [vmem:[%s7146_s7 + $0x48] sm:$0xff]  ;;  %v4464_v7 = vld [vmem:[%s7146_s7 + $0x50] sm:$0xff]  ;;  %v4465_v15 = vld [vmem:[%s7146_s7 + $0x58] sm:$0xff] }
0x2769   :  { %5625 = vpow2.f32 %v3269_v19  ;;  %v5405_v4 = vpack.c.bf16 %v4463_v3, %v4462_v59  ;;  %v5408_v21 = vpack.c.bf16 %v4465_v15, %v4464_v7  ;;  %v4026_v18 = vld [vmem:[%s7147_s30] sm:$0xff]  ;;  %v4027_v10 = vld [vmem:[%s7147_s30 + $0x8] sm:$0xff]  ;;  %v4028_v19 = vld [vmem:[%s7147_s30 + $0x10] sm:$0xff] }
0x276a   :  { %v5622_v20 = vpop.eup %5621  ;;  %v5417_v16 = vpack.c.bf16 %v4027_v10, %v4026_v18  ;;  %v4124_v12 = vld [vmem:[%s7148_s5 + $0x20] sm:$0xff]  ;;  %v4213_v57 = vld [vmem:[%s7151_s12 + $0x18] sm:$0xff] }
0x276b   :  { %v3451_v22 = vmul.f32 %v5622_v20, %v3446_v54  ;;  %v4029_v20 = vld [vmem:[%s7147_s30 + $0x18] sm:$0xff] }
0x276d   :  { %v3452_v24 = vsub.f32 %v3451_v22, %v3451_v22 }
0x276f   :  { %v3453_v17 = vmul.f32 1.442695, %v3452_v24  ;;  %v5420_v24 = vpack.c.bf16 %v4029_v20, %v4028_v19 }
0x2771   :  { %5627 = vpow2.f32 %v3453_v17  ;;  %v4030_v17 = vld [vmem:[%s7147_s30 + $0x20] sm:$0xff] }
0x2772   :  { %v5624_v26 = vpop.eup %5623 }
0x2773   :  { %v5626_v28 = vpop.eup %5625  ;;  %v3778_v30 = vmul.f32 %v5624_v26, %v3773_v27  ;;  %v4031_v26 = vld [vmem:[%s7147_s30 + $0x28] sm:$0xff] }
0x2774   :  { %5629 = vrcp.f32 %v5626_v28  ;;  %v5423_v27 = vpack.c.bf16 %v4031_v26, %v4030_v17 }
0x2775   :  { %v3779_v31 = vsub.f32 %v3778_v30, %v3778_v30  ;;  %v4033_v30 = vld [vmem:[%s7147_s30 + $0x38] sm:$0xff] }
0x2777   :  { %v3780_v32 = vmul.f32 1.442695, %v3779_v31 }
0x2779   :  { %5631 = vpow2.f32 %v3780_v32  ;;  %v4034_v32 = vld [vmem:[%s7147_s30 + $0x40] sm:$0xff] }
0x277b   :  { %v5628_v33 = vpop.eup %5627 }
0x277c   :  { %5633 = vrcp.f32 %v5628_v33 }
0x277e   :  { %v5630_v34 = vpop.eup %5629 }
0x277f   :  { %v3273_v35 = vmul.f32 %v5630_v34, %v5626_v28  ;;  %v4032_v28 = vld [vmem:[%s7147_s30 + $0x30] sm:$0xff] }
0x2780   :  { %v5426_v31 = vpack.c.bf16 %v4033_v30, %v4032_v28 }
0x2781   :  { %5053 = vmatmul.mubr.msk.f32.vlgmr.msra.gmra.mrb[32].mxu0 %vm3274_vm12, %v3273_v35  ;;  %v4036_v35 = vld [vmem:[%s7147_s30 + $0x50] sm:$0xff] }
0x2782   :  { %5067 = vmatpush3.msk.msra.mxu0 %vm3278_vm3, %v6906_v6  ;;  %5068 = vmatprep.mubr.msk.f32.mxu0 %vm6254_vm0, %v6255_v1 }
0x2783   :  { %v5632_v36 = vpop.eup %5631  ;;  %5386 = vmatprep.subr.bf16.mxu0 %v6253_v0 }
0x2784   :  { %5635 = vrcp.f32 %v5632_v36 }
0x2786   :  { %v5634_v38 = vpop.eup %5633 }
0x2787   :  { %v3457_v39 = vmul.f32 %v5634_v38, %v5628_v33  ;;  %v4035_v33 = vld [vmem:[%s7147_s30 + $0x48] sm:$0xff] }
0x2788   :  { %v5429_v34 = vpack.c.bf16 %v4035_v33, %v4034_v32 }
0x2789   :  { %5069 = vmatmul.mubr.msk.f32.vlgmr.msra.gmra.mrb[34].mxu0 %vm3274_vm12, %v3457_v39  ;;  %v4120_v39 = vld [vmem:[%s7148_s5] sm:$0xff] }
0x278a   :  { %5079 = vmatprep.mubr.msk.f32.mxu0 %vm6254_vm0, %v6255_v1  ;;  %5388 = vmatpush3.bf16.msra.mxu0 %v5387_v43  ;;  %v4125_v43 = vld [vmem:[%s7148_s5 + $0x28] sm:$0xff] }
0x278b   :  { %5389 = vmatprep.subr.bf16.mxu0 %v6253_v0  ;;  %v5441_v25 = vpack.c.bf16 %v4125_v43, %v4124_v12 }
0x278e   :  { %v5636_v40 = vpop.eup %5635  ;;  %5391 = vmatpush3.bf16.msra.mxu0 %v5390_v45 }
0x278f   :  { %v3784_v41 = vmul.f32 %v5636_v40, %v5632_v36  ;;  %5392 = vmatprep.subr.bf16.mxu0 %v6253_v0  ;;  %v4037_v36 = vld [vmem:[%s7147_s30 + $0x58] sm:$0xff]  ;;  %v4121_v40 = vld [vmem:[%s7148_s5 + $0x8] sm:$0xff] }
0x2790   :  { %v5432_v38 = vpack.c.bf16 %v4037_v36, %v4036_v35 }
0x2791   :  { %5107 = vmatmul.mubr.msk.f32.vlgmr.msra.gmra.mrb[36].mxu1 %vm3274_vm12, %v3784_v41  ;;  %v4122_v41 = vld [vmem:[%s7148_s5 + $0x10] sm:$0xff] }
0x2792   :  { %5128 = vmatprep.mubr.msk.f32.mxu1 %vm6254_vm0, %v6255_v1 }
0x27d1   :  { %v2859_v6 = vpop.permute.xlu1 %2858 }
0x27d2   :  { %v2861_v42 = vadd.f32 %v2859_v6, %v6998_v37  ;;  %v5411_v37 = vpack.c.bf16 %v3938_v44, %v3937_v29  ;;  %v5435_v6 = vpack.c.bf16 %v4121_v40, %v4120_v39  ;;  %v4468_v44 = vld [vmem:[%s7149_s16] ss:$0 sm:$0xff] }
0x27d4   :  { %5637 = vtanh.f32 %v2861_v42  ;;  %5412 = vmatpush3.bf16.msra.mxu1 %v5411_v37  ;;  %v4123_v42 = vld [vmem:[%s7148_s5 + $0x18] sm:$0xff] }
0x27d5   :  { %5413 = vmatprep.subr.bf16.mxu1 %v6253_v0  ;;  %v5438_v5 = vpack.c.bf16 %v4123_v42, %v4122_v41 }
0x27d8   :  { %5415 = vmatpush3.bf16.msra.mxu1 %v5414_v48 }
0x27d9   :  { %5416 = vmatprep.subr.bf16.mxu1 %v6253_v0 }
0x27de   :  { %v5638_v46 = vpop.eup %5637 }
0x27df   :  { %2865 = vrot.lane.b32.xlu1 %v5638_v46, %s6256_s17 }
0x2851   :  { %v2866_v13 = vpop.permute.xlu1 %2865 }
0x2852   :  { %v2868_v52 = vmul.f32 %v2866_v13, %v2863_v49  ;;  %v4126_v49 = vld [vmem:[%s7148_s5 + $0x30] sm:$0xff]  ;;  %v4127_v13 = vld [vmem:[%s7148_s5 + $0x38] sm:$0xff] }
0x2854   :  { %v2870_v53 = vadd.f32 %v2869_v51, %v2868_v52  ;;  %v3347_v54 = vpop.f32.mrb[32].mxu0  ;;  %v5444_v51 = vpack.c.bf16 %v4127_v13, %v4126_v49  ;;  %v4210_v52 = vld [vmem:[%s7151_s12] sm:$0xff] }
0x2855   :  { %v5054_v55 = vpop.f32.mrb[33].mxu0 }
0x2856   :  { %3067 = vrot.lane.b32.xlu0 %v2870_v53, %s6256_s17 }
0x285c   :  { %v3527_v61 = vpop.f32.mrb[34].mxu0 }
0x285d   :  { %v5070_v2 = vpop.f32.mrb[35].mxu0  ;;  %5080 = vmatmul.mubr.msk.f32.vlgmr.msra.gmra.mrb[36].mxu0 %vm394_vm1, %v3527_v61  ;;  %v4471_v61 = vld [vmem:[#allocation32] ss:$0 sm:$0xff] }
0x285e   :  { %5394 = vmatpush3.bf16.msra.mxu0 %v5393_v60  ;;  %5090 = vmatprep.mubr.msk.f32.mxu0 %vm6254_vm0, %v6255_v1  ;;  %v4212_v60 = vld [vmem:[%s7151_s12 + $0x10] sm:$0xff] }
0x285f   :  { %5395 = vmatprep.subr.bf16.mxu0 %v6253_v0  ;;  %v5450_v63 = vpack.c.bf16 %v4213_v57, %v4212_v60 }
0x2862   :  { %5397 = vmatpush3.bf16.msra.mxu0 %v5396_v50 }
0x2863   :  { %5404 = vmatprep.subr.bf16.mxu0 %v6253_v0 }
0x2864   :  { %v3854_v23 = vpop.f32.mrb[36].mxu1 }
0x2865   :  { %5091 = vmatmul.mubr.msk.f32.vlgmr.msra.gmra.mrb[36].mxu0 %vm394_vm1, %v3347_v54  ;;  %v5108_v8 = vpop.f32.mrb[37].mxu1 }
0x2866   :  { %5406 = vmatpush3.bf16.msra.mxu0 %v5405_v4  ;;  %5117 = vmatprep.mubr.msk.f32.mxu0 %vm6254_vm0, %v6255_v1 }
0x2867   :  { %5407 = vmatprep.subr.bf16.mxu0 %v6253_v0 }
0x286a   :  { %5409 = vmatpush3.bf16.msra.mxu0 %v5408_v21 }
0x286b   :  { %5434 = vmatprep.subr.bf16.mxu0 %v6253_v0 }
0x286d   :  { %5118 = vmatmul.mubr.msk.f32.vlgmr.msra.gmra.mrb[36].mxu0 %vm394_vm1, %v3854_v23 }
0x286e   :  { %5174 = vmatprep.mubr.msk.f32.mxu0 %vm6254_vm0, %v6255_v1  ;;  %5436 = vmatpush3.bf16.msra.mxu0 %v5435_v6 }
0x286f   :  { %5437 = vmatprep.subr.bf16.mxu0 %v6253_v0 }
0x2872   :  { %5439 = vmatpush3.bf16.msra.mxu0 %v5438_v5 }
0x2873   :  { %5440 = vmatprep.subr.bf16.mxu0 %v6253_v0 }
0x2876   :  { %5442 = vmatpush3.bf16.msra.mxu0 %v5441_v25 }
0x2877   :  { %5443 = vmatprep.subr.bf16.mxu0 %v6253_v0 }
0x287a   :  { %5445 = vmatpush3.bf16.msra.mxu0 %v5444_v51 }
0x287b   :  { %5446 = vmatprep.subr.bf16.mxu0 %v6253_v0 }
0x28c8   :  { %v3068_v22 = vpop.permute.xlu0 %3067 }
0x28c9   :  { %5129 = vmatmul.mubr.msk.f32.vlgmr.msra.gmra.mrb[38].mxu1 %vm394_vm1, %v3068_v22  ;;  %3071 = vst.msk [vmem:[#allocation38] sm:$0xf] %vm3070_vm13, %v3068_v22 }
0x28ca   :  { %5418 = vmatpush3.bf16.msra.mxu1 %v5417_v16  ;;  %5155 = vmatprep.mubr.msk.f32.mxu1 %vm6254_vm0, %v6255_v1 }
0x28cb   :  { %5419 = vmatprep.subr.bf16.mxu1 %v6253_v0 }
0x28ce   :  { %5421 = vmatpush3.bf16.msra.mxu1 %v5420_v24 }
0x28cf   :  { %5422 = vmatprep.subr.bf16.mxu1 %v6253_v0 }
0x28d2   :  { %5424 = vmatpush3.bf16.msra.mxu1 %v5423_v27 }
0x28d3   :  { %5425 = vmatprep.subr.bf16.mxu1 %v6253_v0 }
0x28d6   :  { %5427 = vmatpush3.bf16.msra.mxu1 %v5426_v31 }
0x28d7   :  { %5428 = vmatprep.subr.bf16.mxu1 %v6253_v0 }
0x28da   :  { %5430 = vmatpush3.bf16.msra.mxu1 %v5429_v34 }
0x28db   :  { %5431 = vmatprep.subr.bf16.mxu1 %v6253_v0 }
0x28de   :  { %5433 = vmatpush3.bf16.msra.mxu1 %v5432_v38 }
0x2940   :  { %v3932_v62 = vpop.f32.mrb[36].mxu0 }
0x2941   :  { %v5119_v45 = vpop.f32.mrb[37].mxu0  ;;  %v3944_v46 = vrot.slane %v3932_v62, %v3056_v14  ;;  %v4211_v14 = vld [vmem:[%s7151_s12 + $0x8] sm:$0xff] }
0x2942   :  { %v5447_v56 = vpack.c.bf16 %v4211_v14, %v4210_v52 }
0x299c   :  { %v4013_v29 = vpop.f32.mrb[38].mxu1 }
0x299d   :  { %v4014_v9 = vadd.f32 %v4013_v29, %v3944_v46  ;;  %v5130_v37 = vpop.f32.mrb[39].mxu1 }
0x299f   :  { %v4024_v47 = vadd.f32 %v4468_v44, %v4014_v9 }
0x29a1   :  { %v4025_v48 = vmax.f32 %v4024_v47, 0.0 }
0x29a3   :  { %5156 = vmatmul.mubr.msk.f32.vlgmr.msra.gmra.mrb[40].mxu1 %vm4045_vm14, %v4025_v48 }
0x2a76   :  { %v4115_v53 = vpop.f32.mrb[40].mxu1 }
0x2a77   :  { %v4116_v54 = vadd.f32 %v4469_v11, %v4115_v53  ;;  %v5157_v55 = vpop.f32.mrb[41].mxu1 }
0x2a79   :  { %v4119_v58 = vmax.f32 %v4116_v54, 0.0 }
0x2a7b   :  { %5175 = vmatmul.mubr.msk.f32.vlgmr.msra.gmra.mrb[38].mxu0 %vm4135_vm15, %v4119_v58 }
0x2a7c   :  { %5448 = vmatpush3.bf16.msra.mxu0 %v5447_v56  ;;  %5185 = vmatprep.mubr.msk.f32.mxu0 %vm6254_vm0, %v6255_v1 }
0x2a7d   :  { %5449 = vmatprep.subr.bf16.mxu0 %v6253_v0 }
0x2a80   :  { %5451 = vmatpush3.bf16.msra.mxu0 %v5450_v63 }
0x2b4e   :  { %v4205_v2 = vpop.f32.mrb[38].mxu0 }
0x2b4f   :  { %v4206_v50 = vadd.f32 %v4471_v61, %v4205_v2  ;;  %v5176_v59 = vpop.f32.mrb[39].mxu0 }
0x2b51   :  { %v4209_v3 = vmax.f32 %v4206_v50, 0.0 }
0x2b53   :  { %5186 = vmatmul.mubr.msk.f32.vlgmr.msra.gmra.mrb[40].mxu0 %vm394_vm1, %v4209_v3 }
0x2b54   :  { %6090 = shalt.err (!%p6087_p10)
}
0x2b55   :  { %s6091_s26 = scalar_lea.hbm %s6420_s14, 16 }
0x2b56   :  { %p6092_p11 = scmp.ne.s32.totalorder %s6420_s14, %s6091_s26  ;;  %p6095_p12 = scmp.lt.u32.totalorder %s6091_s26, %s6420_s14 }
0x2b58   :  { %p6097_p13 = pnand %p6095_p12, %p6092_p11 }
0x2b5a   :  { %6100 = shalt.err (!%p6097_p13)
}
0x2b5b   :  { %4314 = dma.vmem_to_hbm [thread:$0]  %s4312_s22, 16, %s6420_s14, [#allocation36]  }
0x2b5c   :  { %s6259_s21 = smov [#allocation37]   ;;  %s6260_s29 = smov [#allocation38]  }
0x2b5d   :  { %s4321_s3 = sshll.u32 %s6259_s21, 4  ;;  %s4331_s27 = sshll.u32 %s6260_s29, 4  ;;  %s4322_s3 = int_to_ptr.vmem [resolvable:$true] %s4321_s3  ;;  %s4332_s27 = int_to_ptr.vmem [resolvable:$true] %s4331_s27 }
0x2b5e   :  { %s6101_s28 = scalar_lea.vmem %s4322_s3, 16  ;;  %s6105_s19 = scalar_lea.vmem %s4322_s3, 32 }
0x2b5f   :  { %p6102_p0 = scmp.ne.s32.totalorder %s4322_s3, %s6101_s28  ;;  %p6106_p1 = scmp.lt.s32.totalorder %s4322_s3, %s4322_s3 }
0x2b60   :  { %p6107_p2 = scmp.lt.s32.totalorder %s6105_s19, %s6101_s28 }
0x2b62   :  { %p6108_p3 = por %p6107_p2, %p6106_p1 }
0x2b64   :  { %p6109_p4 = pnand %p6108_p3, %p6102_p0 }
0x2b66   :  { %6112 = shalt.err (!%p6109_p4)
}
0x2b67   :  { %s6113_s0 = scalar_lea.hbm %s6425_s24, 16 }
0x2b68   :  { %p6114_p5 = scmp.ne.s32.totalorder %s6425_s24, %s6113_s0  ;;  %p6117_p6 = scmp.lt.u32.totalorder %s6113_s0, %s6425_s24 }
0x2b6a   :  { %p6119_p7 = pnand %p6117_p6, %p6114_p5 }
0x2b6c   :  { %6122 = shalt.err (!%p6119_p7)
}
0x2b6d   :  { %4324 = dma.vmem_to_hbm [thread:$0]  %s4322_s3, 16, %s6425_s24, [#allocation36]  }
0x2b6e   :  { %s6123_s14 = scalar_lea.vmem %s4332_s27, 64  ;;  %p6128_p9 = scmp.lt.s32.totalorder %s4332_s27, %s4332_s27 }
0x2b6f   :  { %p6124_p8 = scmp.ne.s32.totalorder %s4332_s27, %s6123_s14  ;;  %p6129_p10 = scmp.lt.s32.totalorder %s6123_s14, %s6123_s14 }
0x2b71   :  { %p6130_p11 = por %p6129_p10, %p6128_p9 }
0x2b73   :  { %p6131_p12 = pnand %p6130_p11, %p6124_p8 }
0x2b75   :  { %6134 = shalt.err (!%p6131_p12)
}
0x2b76   :  { %s6135_s20 = scalar_lea.hbm %s6430_s6, 64 }
0x2b77   :  { %p6136_p13 = scmp.ne.s32.totalorder %s6430_s6, %s6135_s20  ;;  %p6139_p0 = scmp.lt.u32.totalorder %s6135_s20, %s6430_s6 }
0x2b79   :  { %p6141_p1 = pnand %p6139_p0, %p6136_p13 }
0x2b7b   :  { %6144 = shalt.err (!%p6141_p1)
}
0x2b7c   :  { %s7152_s1 = sld [smem:[#allocation68_spill]]  ;;  %s6261_s24 = smov [#allocation34]  }
0x2b7d   :  { %4334 = dma.vmem_to_hbm [thread:$0]  %s4332_s27, 64, %s6430_s6, [#allocation39]  }
0x2b7e   :  { %s4301_s10 = sshll.u32 %s6261_s24, 4  ;;  %s4302_s10 = int_to_ptr.vmem [resolvable:$true] %s4301_s10 }
0x2b7f   :  { %s6145_s8 = scalar_lea.vmem %s4302_s10, 64  ;;  %p6150_p3 = scmp.lt.s32.totalorder %s4302_s10, %s4302_s10 }
0x2b80   :  { %p6146_p2 = scmp.ne.s32.totalorder %s4302_s10, %s6145_s8  ;;  %p6151_p4 = scmp.lt.s32.totalorder %s6145_s8, %s6145_s8 }
0x2b82   :  { %v4473_v0 = vld [vmem:[%s7152_s1] ss:$0 sm:$0xff]  ;;  %p6152_p5 = por %p6151_p4, %p6150_p3 }
0x2b84   :  { %p6153_p6 = pnand %p6152_p5, %p6146_p2 }
0x2c26   :  { %v4290_v1 = vpop.f32.mrb[40].mxu0 }
0x2c27   :  { %v4291_v4 = vadd.f32 %v4473_v0, %v4290_v1  ;;  %v5187_v7 = vpop.f32.mrb[41].mxu0 }
0x2c29   :  { %4294 = vst [vmem:[#allocation34] sm:$0xf] %v4291_v4 }
0x2c2a   :  { %6156 = shalt.err (!%p6153_p6)
}
0x2c2b   :  { %s6157_s11 = scalar_lea.hbm %s6415_s4, 64 }
0x2c2c   :  { %p6158_p7 = scmp.ne.s32.totalorder %s6415_s4, %s6157_s11  ;;  %p6161_p8 = scmp.lt.u32.totalorder %s6157_s11, %s6415_s4 }
0x2c2e   :  { %p6163_p9 = pnand %p6161_p8, %p6158_p7 }
0x2c30   :  { %6166 = shalt.err (!%p6163_p9)
}
0x2c31   :  { %4304 = dma.vmem_to_hbm [thread:$0]  %s4302_s10, 64, %s6415_s4, [#allocation4]  }
0x2c32   :  { %6189 = dma.done.wait [#allocation4], 64  }
0x2c33   :  { %6190 = vsyncadd [#allocation4], 4294967232 }
0x2c34   :  { %6191 = dma.done.wait [#allocation36], 32  }
0x2c35   :  { %6192 = vsyncadd [#allocation36], 4294967264 }
0x2c36   :  { %6193 = dma.done.wait [#allocation39], 64  }
0x2c37   :  { %6194 = vsyncadd [#allocation39], 4294967232 }
0x2c38   :  { %4347 = vsyncpa [#allocation3], 1 }
0x2c39   :  { %4348 = vsyncpa [#allocation6], 1 }
0x2c3a   :  { %4349 = vsyncpa [#allocation9], 1 }
0x2c3b   :  { %4350 = vsyncpa [#allocation12], 1 }
0x2c3c   :  { %4351 = vsyncpa [#allocation15], 1 }
0x2c3d   :  { %4352 = vsyncpa [#allocation18], 1 }
0x2c3e   :  { %4353 = vsyncpa [#allocation21], 1 }
0x2c3f   :  { %4354 = vsyncpa [#allocation24], 1 }
0x2c40   :  { %4355 = vsyncpa [#allocation27], 1 }
0x2c41   :  { %4356 = vsyncpa [#allocation30], 1 }
0x2c42   :  { %4357 = vsyncpa [#allocation33], 1 }
0x2c43   :  { %4358 = vsyncpa [#allocation4], 1 }
0x2c44   :  { %4359 = vsyncpa [#allocation36], 1 }
0x2c45   :  { %4360 = vsyncpa [#allocation39], 1 }

</bundles_post_ra>
